<compile_context>
chip_gen: v7x
topology: tpu7x:2x2x1
jax: 0.10.0
libtpu: 0.0.40
codegen_flags: <defaults>
</compile_context>

<pallas_src>
import functools

import jax
import jax.numpy as jnp
from jax.experimental import pallas as pl
from jax.experimental.pallas import tpu as pltpu

_ZP = 128  # lane-dense padded latent width (>= z_dim, handled per-half)


# ----------------------------------------------------------------------------
# Pallas kernels
# ----------------------------------------------------------------------------
def _matmul_bias_act_kernel(*refs, has_bias, apply_relu):
    """bf16 operands, f32 accumulation on the MXU, store in o_ref.dtype."""
    if has_bias:
        x_ref, w_ref, b_ref, o_ref = refs
    else:
        x_ref, w_ref, o_ref = refs
        b_ref = None
    acc = jnp.dot(x_ref[...], w_ref[...], preferred_element_type=jnp.float32)
    if b_ref is not None:
        acc = acc + b_ref[...]
    if apply_relu:
        acc = jnp.maximum(acc, 0.0)
    o_ref[...] = acc.astype(o_ref.dtype)


def _bottleneck_kernel(x_ref, w5_ref, b5_ref, wmu_ref, bmu_ref, wlv_ref, blv_ref,
                       eps_ref, wd1_ref, bd1_ref, wd2_ref, bd2_ref,
                       mu_ref, lv_ref, z_ref, h_ref):
    """Fused: enc conv5(64->256, 4x4 valid) -> enc conv6(256->2z, 1x1) ->
    reparametrize -> dec conv1(z->256, 1x1) -> dec convT2(256->64, 4x4 on 1x1).
    x / w5 / wd2 are bf16 (the bulk of this launch's DMA traffic); the
    mu/logvar/z path is kept f32.  All matmuls are chained in VMEM."""
    h5 = jnp.dot(x_ref[...], w5_ref[...], preferred_element_type=jnp.float32)
    h5 = jnp.maximum(h5 + b5_ref[...], 0.0)                       # enc conv5 + ReLU
    mu = jnp.dot(h5, wmu_ref[...], preferred_element_type=jnp.float32) + bmu_ref[...]
    lv = jnp.dot(h5, wlv_ref[...], preferred_element_type=jnp.float32) + blv_ref[...]
    z = mu + eps_ref[...] * jnp.exp(0.5 * lv)                     # reparametrize
    h1 = jnp.dot(z, wd1_ref[...], preferred_element_type=jnp.float32)
    h1 = jnp.maximum(h1 + bd1_ref[...], 0.0)                      # dec conv1 + ReLU
    h2 = jnp.dot(h1.astype(jnp.bfloat16), wd2_ref[...],
                 preferred_element_type=jnp.float32)
    h2 = jnp.maximum(h2 + bd2_ref[...], 0.0)                      # dec convT2 + ReLU
    mu_ref[...] = mu
    lv_ref[...] = lv
    z_ref[...] = z
    h_ref[...] = h2.astype(h_ref.dtype)


# ----------------------------------------------------------------------------
# Pallas wrappers
# ----------------------------------------------------------------------------
def _ceil_to(x, m):
    return ((x + m - 1) // m) * m


def _choose_tm(M):
    """Small M -> one tile (no per-step overhead on single-TC v5e/v6e).
    Large M -> >= 4 grid steps so v7x's two TensorCores each get a >=2-deep
    pipeline; same split still gives DMA/compute overlap on v5e/v6e."""
    M16 = _ceil_to(M, 16)          # bf16 outputs pack 16 rows / vreg sublane
    if M16 <= 256:
        return M16
    tm = _ceil_to((M16 + 3) // 4, 16)
    return min(tm, 512)


def matmul_bias_act(x, w, b, *, relu, out_dtype=jnp.bfloat16):
    """x:(M,K) float, w:(K,N) f32, b:(N,) f32 or None -> (M_pad, N_pad) out_dtype.

    bf16 MXU matmul with f32 accumulation; N zero-padded to a multiple of 128
    so stores are lane-dense (unmasked vst).  The *padded* result is returned;
    callers slice only where an exact shape is required (usually never, since
    the next layer's im2col consumes the channel pad)."""
    M, K = x.shape
    N = w.shape[1]
    N_pad = _ceil_to(N, 128)
    if N_pad != N:
        w = jnp.pad(w, ((0, 0), (0, N_pad - N)))
        if b is not None:
            b = jnp.pad(b, (0, N_pad - N))
    tm = _choose_tm(M)
    M_pad = _ceil_to(M, tm)
    if M_pad != M:
        x = jnp.pad(x, ((0, M_pad - M), (0, 0)))

    xb = x.astype(jnp.bfloat16)
    wb = w.astype(jnp.bfloat16)
    has_bias = b is not None

    args = [xb, wb]
    in_specs = [
        pl.BlockSpec((tm, K), lambda i: (i, 0)),
        pl.BlockSpec((K, N_pad), lambda i: (0, 0)),
    ]
    if has_bias:
        args.append(b.reshape(1, N_pad).astype(jnp.float32))
        in_specs.append(pl.BlockSpec((1, N_pad), lambda i: (0, 0)))

    out_bytes = M_pad * N_pad * jnp.dtype(out_dtype).itemsize
    cost = pl.CostEstimate(
        flops=2 * M_pad * K * N_pad,
        transcendentals=0,
        bytes_accessed=int(sum(a.size * a.dtype.itemsize for a in args) + out_bytes),
    )
    kernel = functools.partial(_matmul_bias_act_kernel,
                               has_bias=has_bias, apply_relu=relu)
    out = pl.pallas_call(
        kernel,
        out_shape=jax.ShapeDtypeStruct((M_pad, N_pad), out_dtype),
        grid_spec=pltpu.PrefetchScalarGridSpec(
            num_scalar_prefetch=0,
            grid=(M_pad // tm,),
            in_specs=in_specs,
            out_specs=pl.BlockSpec((tm, N_pad), lambda i: (i, 0)),
        ),
        compiler_params=pltpu.CompilerParams(
            dimension_semantics=("parallel",)),
        cost_estimate=cost,
    )(*args)
    return out


def fused_bottleneck(x5, w5m, b5, wmu, bmu, wlv, blv, eps_p, wd1m, bd1, wd2m, bd2t):
    """One pallas_call for the whole 1x1-spatial chain.  Batch pre-padded to a
    multiple of 16, latent pre-padded to _ZP=128 so every dot is tile-aligned."""
    MP = x5.shape[0]
    Nh = wd2m.shape[1]
    args = (x5, w5m, b5.reshape(1, -1), wmu, bmu.reshape(1, -1),
            wlv, blv.reshape(1, -1), eps_p, wd1m, bd1.reshape(1, -1),
            wd2m, bd2t.reshape(1, -1))
    in_specs = [pl.BlockSpec(a.shape, lambda i: (0, 0)) for a in args]
    out_shapes = (
        jax.ShapeDtypeStruct((MP, _ZP), jnp.float32),     # mu (padded)
        jax.ShapeDtypeStruct((MP, _ZP), jnp.float32),     # logvar (padded)
        jax.ShapeDtypeStruct((MP, _ZP), jnp.float32),     # z (padded)
        jax.ShapeDtypeStruct((MP, Nh), jnp.bfloat16),     # decoder hidden (4*4*64)
    )
    out_specs = [pl.BlockSpec(s.shape, lambda i: (0, 0)) for s in out_shapes]
    flops = 2 * MP * (x5.shape[1] * w5m.shape[1] + w5m.shape[1] * _ZP * 2
                      + _ZP * wd1m.shape[1] + wd1m.shape[1] * Nh)
    bytes_accessed = int(sum(a.size * a.dtype.itemsize for a in args)
                         + MP * _ZP * 4 * 3 + MP * Nh * 2)
    return pl.pallas_call(
        _bottleneck_kernel,
        out_shape=out_shapes,
        grid_spec=pltpu.PrefetchScalarGridSpec(
            num_scalar_prefetch=0,
            grid=(1,),
            in_specs=in_specs,
            out_specs=out_specs,
        ),
        compiler_params=pltpu.CompilerParams(
            dimension_semantics=("arbitrary",)),
        cost_estimate=pl.CostEstimate(flops=flops, transcendentals=MP * _ZP,
                                      bytes_accessed=bytes_accessed),
    )(*args)


# ----------------------------------------------------------------------------
# Conv lowering (glue: patches / col2im in XLA; compute: Pallas matmul)
# ----------------------------------------------------------------------------
def im2col(x, cin, k, stride, pad):
    """x:(N,H,W,C>=cin) (extra channels are zero pad from the previous layer and
    are dropped here) -> (N*Ho*Wo, k*k*cin) bf16 patches ordered ((ki,kj),c)."""
    x = x[..., :cin].astype(jnp.bfloat16)       # slice channel pad + cast, one pass
    if pad > 0:
        x = jnp.pad(x, ((0, 0), (pad, pad), (pad, pad), (0, 0)))
    n, H, W, _ = x.shape
    Ho = (H - k) // stride + 1
    Wo = (W - k) // stride + 1
    cols = [x[:, i:i + stride * Ho:stride, j:j + stride * Wo:stride, :]
            for i in range(k) for j in range(k)]
    patches = jnp.stack(cols, axis=3)           # (N, Ho, Wo, k*k, cin)
    return patches.reshape(n * Ho * Wo, k * k * cin), Ho, Wo


def conv2d(x, cin, w, b, stride, pad, relu):
    """x:(N,H,W,C>=cin) NHWC; w:(Cout,Cin,k,k) torch Conv2d layout; b:(Cout,).
    Returns ((N,Ho,Wo,ceil128(Cout)) bf16 with zero-padded channels, Cout)."""
    Cout, _, k, _ = w.shape
    cols, Ho, Wo = im2col(x, cin, k, stride, pad)
    w2 = jnp.transpose(w, (2, 3, 1, 0)).reshape(k * k * cin, Cout)
    out = matmul_bias_act(cols, w2, b, relu=relu, out_dtype=jnp.bfloat16)
    M = x.shape[0] * Ho * Wo
    return out[:M].reshape(x.shape[0], Ho, Wo, -1), Cout


def conv_transpose2d_s2(x, w, b, relu, out_dtype=jnp.bfloat16):
    """ConvTranspose2d(k=4, stride=2, pad=1) via col2im overlap-add.
    x:(N,H,W,Cin) NHWC bf16; w:(Cin,Cout,4,4) torch layout; b:(Cout,)."""
    n, H, W, Cin = x.shape
    Cout = w.shape[1]
    k, p = 4, 1
    # Matmul with lane-dense N = k*k*Cout, no zero-dilated MACs, no bias DMA.
    w2 = jnp.transpose(w, (0, 2, 3, 1)).reshape(Cin, k * k * Cout)  # cols (ki,kj,co)
    y = matmul_bias_act(x.reshape(n * H * W, Cin), w2, None,
                        relu=False, out_dtype=jnp.bfloat16)
    y = y[:n * H * W, :k * k * Cout]
    y = y.reshape(n, H, W, 2, 2, 2, 2, Cout)    # taps split as (qi,ri,qj,rj)
    # col2im overlap-add (in bf16): output row 2*i + ki = 2*(i+qi) + ri, ki=2*qi+ri.
    out = None
    for qi in range(2):
        for qj in range(2):
            c = y[:, :, :, qi, :, qj, :, :]                     # (n,H,W,ri,rj,Cout)
            c = jnp.pad(c, ((0, 0), (qi, 1 - qi), (qj, 1 - qj),
                            (0, 0), (0, 0), (0, 0)))
            out = c if out is None else out + c
    # (n, bi, bj, ri, rj, C) -> (n, 2*(H+1), 2*(W+1), C), crop padding p.
    out = out.transpose(0, 1, 3, 2, 4, 5).reshape(n, 2 * (H + 1), 2 * (W + 1), Cout)
    out = out[:, p:p + 2 * H, p:p + 2 * W, :].astype(out_dtype)
    out = out + b.astype(out_dtype).reshape(1, 1, 1, Cout)
    if relu:
        out = jnp.maximum(out, 0.0)
    return out


# ----------------------------------------------------------------------------
# FactorVAE2 configuration, parameters and forward
# ----------------------------------------------------------------------------
def encoder_cfg(z_dim):
    return [
        ("conv", 3, 32, 4, 2, 1, True),
        ("conv", 32, 32, 4, 2, 1, True),
        ("conv", 32, 64, 4, 2, 1, True),
        ("conv", 64, 64, 4, 2, 1, True),
        ("conv", 64, 256, 4, 1, 0, True),
        ("conv", 256, 2 * z_dim, 1, 1, 0, False),
    ]


def decoder_cfg(z_dim):
    return [
        ("conv", z_dim, 256, 1, 1, 0, True),
        ("convT", 256, 64, 4, 1, 0, True),
        ("convT", 64, 64, 4, 2, 1, True),
        ("convT", 64, 32, 4, 2, 1, True),
        ("convT", 32, 32, 4, 2, 1, True),
        ("convT", 32, 3, 4, 2, 1, False),
    ]


def init_params(key, z_dim=10):
    # normal_init: weights ~ N(0, 0.02), biases = 0 (deterministic via PRNGKey).
    cfgs = [("enc", encoder_cfg(z_dim)), ("dec", decoder_cfg(z_dim))]
    params = {"enc": [], "dec": []}
    keys = jax.random.split(key, sum(len(c) for _, c in cfgs))
    ki = 0
    for name, cfg in cfgs:
        for kind, cin, cout, k, s, p, relu in cfg:
            wshape = (cout, cin, k, k) if kind == "conv" else (cin, cout, k, k)
            w = 0.02 * jax.random.normal(keys[ki], wshape, jnp.float32)
            b = jnp.zeros((cout,), jnp.float32)
            params[name].append({"w": w, "b": b})
            ki += 1
    return params


def factor_vae2_forward(params, x_nchw, eps_key, z_dim=10, no_dec=False):
    assert z_dim <= _ZP
    enc_cfg = encoder_cfg(z_dim)
    dec_cfg = decoder_cfg(z_dim)
    n = x_nchw.shape[0]
    x = jnp.transpose(x_nchw, (0, 2, 3, 1)).astype(jnp.float32)   # NHWC

    # --- encoder convs 1-4 (bf16 im2col + Pallas bf16 matmul, lane-dense out) ---
    h, c = x, 3
    for li in range(4):
        _, cin, cout, k, s, p, relu = enc_cfg[li]
        layer = params["enc"][li]
        h, c = conv2d(h, c, layer["w"], layer["b"], s, p, relu)

    # --- fused 1x1-spatial bottleneck (one pallas_call) ---
    MP = _ceil_to(max(n, 16), 16)
    x5 = h[..., :c].reshape(n, -1)                        # (n, 4*4*64) bf16, NHWC order
    x5p = jnp.pad(x5, ((0, MP - n), (0, 0)))
    w5, b5 = params["enc"][4]["w"], params["enc"][4]["b"]
    w6, b6 = params["enc"][5]["w"], params["enc"][5]["b"]
    wd1, bd1 = params["dec"][0]["w"], params["dec"][0]["b"]
    wd2, bd2 = params["dec"][1]["w"], params["dec"][1]["b"]

    w5m = jnp.transpose(w5, (2, 3, 1, 0)).reshape(4 * 4 * 64, 256).astype(jnp.bfloat16)
    w6m = jnp.transpose(w6, (2, 3, 1, 0)).reshape(256, 2 * z_dim)
    zp = _ZP - z_dim
    wmu = jnp.pad(w6m[:, :z_dim], ((0, 0), (0, zp)))
    wlv = jnp.pad(w6m[:, z_dim:], ((0, 0), (0, zp)))
    bmu = jnp.pad(b6[:z_dim], (0, zp))
    blv = jnp.pad(b6[z_dim:], (0, zp))
    wd1m = jnp.pad(jnp.transpose(wd1, (2, 3, 1, 0)).reshape(z_dim, 256),
                   ((0, zp), (0, 0)))
    # NOTE: per-tap tiled bias bd2t is only valid because the dec convT2 input
    # is 1x1 spatial (each output pixel receives exactly one tap).
    wd2m = jnp.transpose(wd2, (0, 2, 3, 1)).reshape(256, 4 * 4 * 64).astype(jnp.bfloat16)
    bd2t = jnp.tile(bd2, 4 * 4)                                       # (ki,kj,co) bias

    eps = jax.random.normal(eps_key, (n, z_dim), jnp.float32)
    eps_p = jnp.pad(eps, ((0, MP - n), (0, zp)))

    mu_f, lv_f, z_f, hdec = fused_bottleneck(
        x5p, w5m, b5, wmu, bmu, wlv, blv, eps_p, wd1m, bd1, wd2m, bd2t)
    mu = mu_f[:n, :z_dim]
    logvar = lv_f[:n, :z_dim]
    z = z_f[:n, :z_dim]
    if no_dec:
        return z                                          # == z.squeeze()

    # --- decoder convT stack (Pallas bf16 matmul + bf16 col2im) ---
    h = hdec[:n].reshape(n, 4, 4, 64)
    for li in range(2, 6):
        _, cin, cout, k, s, p, relu = dec_cfg[li]
        layer = params["dec"][li]
        out_dtype = jnp.float32 if li == 5 else jnp.bfloat16
        h = conv_transpose2d_s2(h, layer["w"], layer["b"], relu, out_dtype=out_dtype)

    x_recon = jnp.transpose(h, (0, 3, 1, 2))              # (N, 3, 64, 64) f32
    return (x_recon, mu.reshape(n, z_dim, 1, 1),
            logvar.reshape(n, z_dim, 1, 1), z)


# ----------------------------------------------------------------------------
if __name__ == "__main__":
    z_dim = 10
    key = jax.random.PRNGKey(0)
    kx, keps, kw = jax.random.split(key, 3)
    # 64x64 input is required by the architecture (4 stride-2 convs + 4x4 valid -> 1x1)
    x = jax.random.normal(kx, (2, 3, 64, 64), jnp.float32)
    params = init_params(kw, z_dim=z_dim)

    fwd = jax.jit(functools.partial(factor_vae2_forward, z_dim=z_dim, no_dec=False))
    x_recon, mu, logvar, z = fwd(params, x, keps)
    jax.block_until_ready((x_recon, mu, logvar, z))

    assert x_recon.shape == (2, 3, 64, 64)
    assert mu.shape == (2, z_dim, 1, 1)
    assert logvar.shape == (2, z_dim, 1, 1)
    assert z.shape == (2, z_dim)
    assert bool(jnp.all(jnp.isfinite(x_recon)))
    assert bool(jnp.all(jnp.isfinite(z)))
    print("KERNEL_OK")
</pallas_src>

<mosaic_0001>
module attributes {stable_mosaic.version = 11 : i64} {
  func.func @_matmul_bias_act_kernel(%arg0: i32, %arg1: memref<512x48xbf16, #tpu.memory_space<vmem>>, %arg2: memref<48x128xbf16, #tpu.memory_space<vmem>>, %arg3: memref<1x128xf32, #tpu.memory_space<vmem>>, %arg4: memref<512x128xbf16, #tpu.memory_space<vmem>>) attributes {dimension_semantics = [#tpu.dimension_semantics<parallel>], iteration_bounds = array<i64: 4>, scalar_prefetch = 0 : i64, scratch_operands = 0 : i64, tpu.core_type = #tpu.core_type<tc>, window_params = [{transform_indices = @transform_0, window_bounds = array<i64: 512, 48>}, {pipeline_mode = #tpu.pipeline_mode<synchronous>, transform_indices = @transform_1, window_bounds = array<i64: 48, 128>}, {pipeline_mode = #tpu.pipeline_mode<synchronous>, transform_indices = @transform_2, window_bounds = array<i64: 1, 128>}, {transform_indices = @transform_3, window_bounds = array<i64: 512, 128>}]} {
    %c0 = arith.constant 0 : index
    %c0_0 = arith.constant 0 : index
    %0 = vector.load %arg1[%c0, %c0_0] : memref<512x48xbf16, #tpu.memory_space<vmem>>, vector<512x48xbf16>
    %c0_1 = arith.constant 0 : index
    %c0_2 = arith.constant 0 : index
    %1 = vector.load %arg2[%c0_1, %c0_2] : memref<48x128xbf16, #tpu.memory_space<vmem>>, vector<48x128xbf16>
    %cst = arith.constant dense<0.000000e+00> : vector<512x128xf32>
    %2 = tpu.matmul %0, %1, %cst {dimension_numbers = #tpu.dot_dimension_numbers<[1], [0], [0], [1], [0, 0, 1, 1], [], []>} : vector<512x48xbf16>, vector<48x128xbf16>, vector<512x128xf32> -> vector<512x128xf32>
    %c0_3 = arith.constant 0 : index
    %c0_4 = arith.constant 0 : index
    %3 = vector.load %arg3[%c0_3, %c0_4] : memref<1x128xf32, #tpu.memory_space<vmem>>, vector<1x128xf32>
    %4 = vector.broadcast %3 : vector<1x128xf32> to vector<512x128xf32>
    %5 = arith.addf %2, %4 : vector<512x128xf32>
    %cst_5 = arith.constant 0.000000e+00 : f32
    %6 = vector.broadcast %cst_5 : f32 to vector<512x128xf32>
    %7 = arith.maximumf %5, %6 : vector<512x128xf32>
    %8 = arith.truncf %7 : vector<512x128xf32> to vector<512x128xbf16>
    %c0_6 = arith.constant 0 : index
    %c0_7 = arith.constant 0 : index
    %9 = vector.load %arg4[%c0_6, %c0_7] : memref<512x128xbf16, #tpu.memory_space<vmem>>, vector<512x128xbf16>
    tpu.vector_store %arg4[%c0_6, %c0_7], %8 {strides = array<i32>} : memref<512x128xbf16, #tpu.memory_space<vmem>>, vector<512x128xbf16>,
    return
  }
  func.func @transform_0(%arg0: i32) -> (i32, i32) {
    %c0_i32 = arith.constant 0 : i32
    %c0_i32_0 = arith.constant 0 : i32
    return %arg0, %c0_i32 : i32, i32
  }
  func.func @transform_1(%arg0: i32) -> (i32, i32) {
    %c0_i32 = arith.constant 0 : i32
    %c0_i32_0 = arith.constant 0 : i32
    %c0_i32_1 = arith.constant 0 : i32
    return %c0_i32, %c0_i32_0 : i32, i32
  }
  func.func @transform_2(%arg0: i32) -> (i32, i32) {
    %c0_i32 = arith.constant 0 : i32
    %c0_i32_0 = arith.constant 0 : i32
    %c0_i32_1 = arith.constant 0 : i32
    return %c0_i32, %c0_i32_0 : i32, i32
  }
  func.func @transform_3(%arg0: i32) -> (i32, i32) {
    %c0_i32 = arith.constant 0 : i32
    %c0_i32_0 = arith.constant 0 : i32
    return %arg0, %c0_i32 : i32, i32
  }
}

module attributes {stable_mosaic.version = 11 : i64} {
  func.func @_matmul_bias_act_kernel(%arg0: i32, %arg1: memref<128x512xbf16, #tpu.memory_space<vmem>>, %arg2: memref<512x128xbf16, #tpu.memory_space<vmem>>, %arg3: memref<1x128xf32, #tpu.memory_space<vmem>>, %arg4: memref<128x128xbf16, #tpu.memory_space<vmem>>) attributes {dimension_semantics = [#tpu.dimension_semantics<parallel>], iteration_bounds = array<i64: 4>, scalar_prefetch = 0 : i64, scratch_operands = 0 : i64, tpu.core_type = #tpu.core_type<tc>, window_params = [{transform_indices = @transform_0, window_bounds = array<i64: 128, 512>}, {pipeline_mode = #tpu.pipeline_mode<synchronous>, transform_indices = @transform_1, window_bounds = array<i64: 512, 128>}, {pipeline_mode = #tpu.pipeline_mode<synchronous>, transform_indices = @transform_2, window_bounds = array<i64: 1, 128>}, {transform_indices = @transform_3, window_bounds = array<i64: 128, 128>}]} {
    %c0 = arith.constant 0 : index
    %c0_0 = arith.constant 0 : index
    %0 = vector.load %arg1[%c0, %c0_0] : memref<128x512xbf16, #tpu.memory_space<vmem>>, vector<128x512xbf16>
    %c0_1 = arith.constant 0 : index
    %c0_2 = arith.constant 0 : index
    %1 = vector.load %arg2[%c0_1, %c0_2] : memref<512x128xbf16, #tpu.memory_space<vmem>>, vector<512x128xbf16>
    %cst = arith.constant dense<0.000000e+00> : vector<128x128xf32>
    %2 = tpu.matmul %0, %1, %cst {dimension_numbers = #tpu.dot_dimension_numbers<[1], [0], [0], [1], [0, 0, 1, 1], [], []>} : vector<128x512xbf16>, vector<512x128xbf16>, vector<128x128xf32> -> vector<128x128xf32>
    %c0_3 = arith.constant 0 : index
    %c0_4 = arith.constant 0 : index
    %3 = vector.load %arg3[%c0_3, %c0_4] : memref<1x128xf32, #tpu.memory_space<vmem>>, vector<1x128xf32>
    %4 = vector.broadcast %3 : vector<1x128xf32> to vector<128x128xf32>
    %5 = arith.addf %2, %4 : vector<128x128xf32>
    %cst_5 = arith.constant 0.000000e+00 : f32
    %6 = vector.broadcast %cst_5 : f32 to vector<128x128xf32>
    %7 = arith.maximumf %5, %6 : vector<128x128xf32>
    %8 = arith.truncf %7 : vector<128x128xf32> to vector<128x128xbf16>
    %c0_6 = arith.constant 0 : index
    %c0_7 = arith.constant 0 : index
    %9 = vector.load %arg4[%c0_6, %c0_7] : memref<128x128xbf16, #tpu.memory_space<vmem>>, vector<128x128xbf16>
    tpu.vector_store %arg4[%c0_6, %c0_7], %8 {strides = array<i32>} : memref<128x128xbf16, #tpu.memory_space<vmem>>, vector<128x128xbf16>,
    return
  }
  func.func @transform_0(%arg0: i32) -> (i32, i32) {
    %c0_i32 = arith.constant 0 : i32
    %c0_i32_0 = arith.constant 0 : i32
    return %arg0, %c0_i32 : i32, i32
  }
  func.func @transform_1(%arg0: i32) -> (i32, i32) {
    %c0_i32 = arith.constant 0 : i32
    %c0_i32_0 = arith.constant 0 : i32
    %c0_i32_1 = arith.constant 0 : i32
    return %c0_i32, %c0_i32_0 : i32, i32
  }
  func.func @transform_2(%arg0: i32) -> (i32, i32) {
    %c0_i32 = arith.constant 0 : i32
    %c0_i32_0 = arith.constant 0 : i32
    %c0_i32_1 = arith.constant 0 : i32
    return %c0_i32, %c0_i32_0 : i32, i32
  }
  func.func @transform_3(%arg0: i32) -> (i32, i32) {
    %c0_i32 = arith.constant 0 : i32
    %c0_i32_0 = arith.constant 0 : i32
    return %arg0, %c0_i32 : i32, i32
  }
}

module attributes {stable_mosaic.version = 11 : i64} {
  func.func @_matmul_bias_act_kernel(%arg0: i32, %arg1: memref<128x512xbf16, #tpu.memory_space<vmem>>, %arg2: memref<512x128xbf16, #tpu.memory_space<vmem>>, %arg3: memref<1x128xf32, #tpu.memory_space<vmem>>, %arg4: memref<128x128xbf16, #tpu.memory_space<vmem>>) attributes {dimension_semantics = [#tpu.dimension_semantics<parallel>], iteration_bounds = array<i64: 1>, scalar_prefetch = 0 : i64, scratch_operands = 0 : i64, tpu.core_type = #tpu.core_type<tc>, window_params = [{transform_indices = @transform_0, window_bounds = array<i64: 128, 512>}, {pipeline_mode = #tpu.pipeline_mode<synchronous>, transform_indices = @transform_1, window_bounds = array<i64: 512, 128>}, {pipeline_mode = #tpu.pipeline_mode<synchronous>, transform_indices = @transform_2, window_bounds = array<i64: 1, 128>}, {transform_indices = @transform_3, window_bounds = array<i64: 128, 128>}]} {
    %c0 = arith.constant 0 : index
    %c0_0 = arith.constant 0 : index
    %0 = vector.load %arg1[%c0, %c0_0] : memref<128x512xbf16, #tpu.memory_space<vmem>>, vector<128x512xbf16>
    %c0_1 = arith.constant 0 : index
    %c0_2 = arith.constant 0 : index
    %1 = vector.load %arg2[%c0_1, %c0_2] : memref<512x128xbf16, #tpu.memory_space<vmem>>, vector<512x128xbf16>
    %cst = arith.constant dense<0.000000e+00> : vector<128x128xf32>
    %2 = tpu.matmul %0, %1, %cst {dimension_numbers = #tpu.dot_dimension_numbers<[1], [0], [0], [1], [0, 0, 1, 1], [], []>} : vector<128x512xbf16>, vector<512x128xbf16>, vector<128x128xf32> -> vector<128x128xf32>
    %c0_3 = arith.constant 0 : index
    %c0_4 = arith.constant 0 : index
    %3 = vector.load %arg3[%c0_3, %c0_4] : memref<1x128xf32, #tpu.memory_space<vmem>>, vector<1x128xf32>
    %4 = vector.broadcast %3 : vector<1x128xf32> to vector<128x128xf32>
    %5 = arith.addf %2, %4 : vector<128x128xf32>
    %cst_5 = arith.constant 0.000000e+00 : f32
    %6 = vector.broadcast %cst_5 : f32 to vector<128x128xf32>
    %7 = arith.maximumf %5, %6 : vector<128x128xf32>
    %8 = arith.truncf %7 : vector<128x128xf32> to vector<128x128xbf16>
    %c0_6 = arith.constant 0 : index
    %c0_7 = arith.constant 0 : index
    %9 = vector.load %arg4[%c0_6, %c0_7] : memref<128x128xbf16, #tpu.memory_space<vmem>>, vector<128x128xbf16>
    tpu.vector_store %arg4[%c0_6, %c0_7], %8 {strides = array<i32>} : memref<128x128xbf16, #tpu.memory_space<vmem>>, vector<128x128xbf16>,
    return
  }
  func.func @transform_0(%arg0: i32) -> (i32, i32) {
    %c0_i32 = arith.constant 0 : i32
    %c0_i32_0 = arith.constant 0 : i32
    return %arg0, %c0_i32 : i32, i32
  }
  func.func @transform_1(%arg0: i32) -> (i32, i32) {
    %c0_i32 = arith.constant 0 : i32
    %c0_i32_0 = arith.constant 0 : i32
    %c0_i32_1 = arith.constant 0 : i32
    return %c0_i32, %c0_i32_0 : i32, i32
  }
  func.func @transform_2(%arg0: i32) -> (i32, i32) {
    %c0_i32 = arith.constant 0 : i32
    %c0_i32_0 = arith.constant 0 : i32
    %c0_i32_1 = arith.constant 0 : i32
    return %c0_i32, %c0_i32_0 : i32, i32
  }
  func.func @transform_3(%arg0: i32) -> (i32, i32) {
    %c0_i32 = arith.constant 0 : i32
    %c0_i32_0 = arith.constant 0 : i32
    return %arg0, %c0_i32 : i32, i32
  }
}

module attributes {stable_mosaic.version = 11 : i64} {
  func.func @_matmul_bias_act_kernel(%arg0: i32, %arg1: memref<32x1024xbf16, #tpu.memory_space<vmem>>, %arg2: memref<1024x128xbf16, #tpu.memory_space<vmem>>, %arg3: memref<1x128xf32, #tpu.memory_space<vmem>>, %arg4: memref<32x128xbf16, #tpu.memory_space<vmem>>) attributes {dimension_semantics = [#tpu.dimension_semantics<parallel>], iteration_bounds = array<i64: 1>, scalar_prefetch = 0 : i64, scratch_operands = 0 : i64, tpu.core_type = #tpu.core_type<tc>, window_params = [{transform_indices = @transform_0, window_bounds = array<i64: 32, 1024>}, {pipeline_mode = #tpu.pipeline_mode<synchronous>, transform_indices = @transform_1, window_bounds = array<i64: 1024, 128>}, {pipeline_mode = #tpu.pipeline_mode<synchronous>, transform_indices = @transform_2, window_bounds = array<i64: 1, 128>}, {transform_indices = @transform_3, window_bounds = array<i64: 32, 128>}]} {
    %c0 = arith.constant 0 : index
    %c0_0 = arith.constant 0 : index
    %0 = vector.load %arg1[%c0, %c0_0] : memref<32x1024xbf16, #tpu.memory_space<vmem>>, vector<32x1024xbf16>
    %c0_1 = arith.constant 0 : index
    %c0_2 = arith.constant 0 : index
    %1 = vector.load %arg2[%c0_1, %c0_2] : memref<1024x128xbf16, #tpu.memory_space<vmem>>, vector<1024x128xbf16>
    %cst = arith.constant dense<0.000000e+00> : vector<32x128xf32>
    %2 = tpu.matmul %0, %1, %cst {dimension_numbers = #tpu.dot_dimension_numbers<[1], [0], [0], [1], [0, 0, 1, 1], [], []>} : vector<32x1024xbf16>, vector<1024x128xbf16>, vector<32x128xf32> -> vector<32x128xf32>
    %c0_3 = arith.constant 0 : index
    %c0_4 = arith.constant 0 : index
    %3 = vector.load %arg3[%c0_3, %c0_4] : memref<1x128xf32, #tpu.memory_space<vmem>>, vector<1x128xf32>
    %4 = vector.broadcast %3 : vector<1x128xf32> to vector<32x128xf32>
    %5 = arith.addf %2, %4 : vector<32x128xf32>
    %cst_5 = arith.constant 0.000000e+00 : f32
    %6 = vector.broadcast %cst_5 : f32 to vector<32x128xf32>
    %7 = arith.maximumf %5, %6 : vector<32x128xf32>
    %8 = arith.truncf %7 : vector<32x128xf32> to vector<32x128xbf16>
    %c0_6 = arith.constant 0 : index
    %c0_7 = arith.constant 0 : index
    %9 = vector.load %arg4[%c0_6, %c0_7] : memref<32x128xbf16, #tpu.memory_space<vmem>>, vector<32x128xbf16>
    tpu.vector_store %arg4[%c0_6, %c0_7], %8 {strides = array<i32>} : memref<32x128xbf16, #tpu.memory_space<vmem>>, vector<32x128xbf16>,
    return
  }
  func.func @transform_0(%arg0: i32) -> (i32, i32) {
    %c0_i32 = arith.constant 0 : i32
    %c0_i32_0 = arith.constant 0 : i32
    return %arg0, %c0_i32 : i32, i32
  }
  func.func @transform_1(%arg0: i32) -> (i32, i32) {
    %c0_i32 = arith.constant 0 : i32
    %c0_i32_0 = arith.constant 0 : i32
    %c0_i32_1 = arith.constant 0 : i32
    return %c0_i32, %c0_i32_0 : i32, i32
  }
  func.func @transform_2(%arg0: i32) -> (i32, i32) {
    %c0_i32 = arith.constant 0 : i32
    %c0_i32_0 = arith.constant 0 : i32
    %c0_i32_1 = arith.constant 0 : i32
    return %c0_i32, %c0_i32_0 : i32, i32
  }
  func.func @transform_3(%arg0: i32) -> (i32, i32) {
    %c0_i32 = arith.constant 0 : i32
    %c0_i32_0 = arith.constant 0 : i32
    return %arg0, %c0_i32 : i32, i32
  }
}

module attributes {stable_mosaic.version = 11 : i64} {
  func.func @_bottleneck_kernel(%arg0: i32, %arg1: memref<16x1024xbf16, #tpu.memory_space<vmem>>, %arg2: memref<1024x256xbf16, #tpu.memory_space<vmem>>, %arg3: memref<1x256xf32, #tpu.memory_space<vmem>>, %arg4: memref<256x128xf32, #tpu.memory_space<vmem>>, %arg5: memref<1x128xf32, #tpu.memory_space<vmem>>, %arg6: memref<256x128xf32, #tpu.memory_space<vmem>>, %arg7: memref<1x128xf32, #tpu.memory_space<vmem>>, %arg8: memref<16x128xf32, #tpu.memory_space<vmem>>, %arg9: memref<128x256xf32, #tpu.memory_space<vmem>>, %arg10: memref<1x256xf32, #tpu.memory_space<vmem>>, %arg11: memref<256x1024xbf16, #tpu.memory_space<vmem>>, %arg12: memref<1x1024xf32, #tpu.memory_space<vmem>>, %arg13: memref<16x128xf32, #tpu.memory_space<vmem>>, %arg14: memref<16x128xf32, #tpu.memory_space<vmem>>, %arg15: memref<16x128xf32, #tpu.memory_space<vmem>>, %arg16: memref<16x1024xbf16, #tpu.memory_space<vmem>>) attributes {dimension_semantics = [#tpu.dimension_semantics<arbitrary>], iteration_bounds = array<i64: 1>, scalar_prefetch = 0 : i64, scratch_operands = 0 : i64, tpu.core_type = #tpu.core_type<tc>, window_params = [{pipeline_mode = #tpu.pipeline_mode<synchronous>, transform_indices = @transform_0, window_bounds = array<i64: 16, 1024>}, {pipeline_mode = #tpu.pipeline_mode<synchronous>, transform_indices = @transform_1, window_bounds = array<i64: 1024, 256>}, {pipeline_mode = #tpu.pipeline_mode<synchronous>, transform_indices = @transform_2, window_bounds = array<i64: 1, 256>}, {pipeline_mode = #tpu.pipeline_mode<synchronous>, transform_indices = @transform_3, window_bounds = array<i64: 256, 128>}, {pipeline_mode = #tpu.pipeline_mode<synchronous>, transform_indices = @transform_4, window_bounds = array<i64: 1, 128>}, {pipeline_mode = #tpu.pipeline_mode<synchronous>, transform_indices = @transform_5, window_bounds = array<i64: 256, 128>}, {pipeline_mode = #tpu.pipeline_mode<synchronous>, transform_indices = @transform_6, window_bounds = array<i64: 1, 128>}, {pipeline_mode = #tpu.pipeline_mode<synchronous>, transform_indices = @transform_7, window_bounds = array<i64: 16, 128>}, {pipeline_mode = #tpu.pipeline_mode<synchronous>, transform_indices = @transform_8, window_bounds = array<i64: 128, 256>}, {pipeline_mode = #tpu.pipeline_mode<synchronous>, transform_indices = @transform_9, window_bounds = array<i64: 1, 256>}, {pipeline_mode = #tpu.pipeline_mode<synchronous>, transform_indices = @transform_10, window_bounds = array<i64: 256, 1024>}, {pipeline_mode = #tpu.pipeline_mode<synchronous>, transform_indices = @transform_11, window_bounds = array<i64: 1, 1024>}, {pipeline_mode = #tpu.pipeline_mode<synchronous>, transform_indices = @transform_12, window_bounds = array<i64: 16, 128>}, {pipeline_mode = #tpu.pipeline_mode<synchronous>, transform_indices = @transform_13, window_bounds = array<i64: 16, 128>}, {pipeline_mode = #tpu.pipeline_mode<synchronous>, transform_indices = @transform_14, window_bounds = array<i64: 16, 128>}, {pipeline_mode = #tpu.pipeline_mode<synchronous>, transform_indices = @transform_15, window_bounds = array<i64: 16, 1024>}]} {
    %c0 = arith.constant 0 : index
    %c0_0 = arith.constant 0 : index
    %0 = vector.load %arg1[%c0, %c0_0] : memref<16x1024xbf16, #tpu.memory_space<vmem>>, vector<16x1024xbf16>
    %c0_1 = arith.constant 0 : index
    %c0_2 = arith.constant 0 : index
    %1 = vector.load %arg2[%c0_1, %c0_2] : memref<1024x256xbf16, #tpu.memory_space<vmem>>, vector<1024x256xbf16>
    %cst = arith.constant dense<0.000000e+00> : vector<16x256xf32>
    %2 = tpu.matmul %0, %1, %cst {dimension_numbers = #tpu.dot_dimension_numbers<[1], [0], [0], [1], [0, 0, 1, 1], [], []>} : vector<16x1024xbf16>, vector<1024x256xbf16>, vector<16x256xf32> -> vector<16x256xf32>
    %c0_3 = arith.constant 0 : index
    %c0_4 = arith.constant 0 : index
    %3 = vector.load %arg3[%c0_3, %c0_4] : memref<1x256xf32, #tpu.memory_space<vmem>>, vector<1x256xf32>
    %4 = vector.broadcast %3 : vector<1x256xf32> to vector<16x256xf32>
    %5 = arith.addf %2, %4 : vector<16x256xf32>
    %cst_5 = arith.constant 0.000000e+00 : f32
    %6 = vector.broadcast %cst_5 : f32 to vector<16x256xf32>
    %7 = arith.maximumf %5, %6 : vector<16x256xf32>
    %c0_6 = arith.constant 0 : index
    %c0_7 = arith.constant 0 : index
    %8 = vector.load %arg4[%c0_6, %c0_7] : memref<256x128xf32, #tpu.memory_space<vmem>>, vector<256x128xf32>
    %cst_8 = arith.constant dense<0.000000e+00> : vector<16x128xf32>
    %9 = tpu.matmul %7, %8, %cst_8 {dimension_numbers = #tpu.dot_dimension_numbers<[1], [0], [0], [1], [0, 0, 1, 1], [], []>} : vector<16x256xf32>, vector<256x128xf32>, vector<16x128xf32> -> vector<16x128xf32>
    %c0_9 = arith.constant 0 : index
    %c0_10 = arith.constant 0 : index
    %10 = vector.load %arg5[%c0_9, %c0_10] : memref<1x128xf32, #tpu.memory_space<vmem>>, vector<1x128xf32>
    %11 = vector.broadcast %10 : vector<1x128xf32> to vector<16x128xf32>
    %12 = arith.addf %9, %11 : vector<16x128xf32>
    %c0_11 = arith.constant 0 : index
    %c0_12 = arith.constant 0 : index
    %13 = vector.load %arg6[%c0_11, %c0_12] : memref<256x128xf32, #tpu.memory_space<vmem>>, vector<256x128xf32>
    %cst_13 = arith.constant dense<0.000000e+00> : vector<16x128xf32>
    %14 = tpu.matmul %7, %13, %cst_13 {dimension_numbers = #tpu.dot_dimension_numbers<[1], [0], [0], [1], [0, 0, 1, 1], [], []>} : vector<16x256xf32>, vector<256x128xf32>, vector<16x128xf32> -> vector<16x128xf32>
    %c0_14 = arith.constant 0 : index
    %c0_15 = arith.constant 0 : index
    %15 = vector.load %arg7[%c0_14, %c0_15] : memref<1x128xf32, #tpu.memory_space<vmem>>, vector<1x128xf32>
    %16 = vector.broadcast %15 : vector<1x128xf32> to vector<16x128xf32>
    %17 = arith.addf %14, %16 : vector<16x128xf32>
    %c0_16 = arith.constant 0 : index
    %c0_17 = arith.constant 0 : index
    %18 = vector.load %arg8[%c0_16, %c0_17] : memref<16x128xf32, #tpu.memory_space<vmem>>, vector<16x128xf32>
    %cst_18 = arith.constant 5.000000e-01 : f32
    %19 = vector.broadcast %cst_18 : f32 to vector<16x128xf32>
    %20 = arith.mulf %19, %17 : vector<16x128xf32>
    %21 = math.exp %20 : vector<16x128xf32>
    %22 = arith.mulf %18, %21 : vector<16x128xf32>
    %23 = arith.addf %12, %22 : vector<16x128xf32>
    %c0_19 = arith.constant 0 : index
    %c0_20 = arith.constant 0 : index
    %24 = vector.load %arg9[%c0_19, %c0_20] : memref<128x256xf32, #tpu.memory_space<vmem>>, vector<128x256xf32>
    %cst_21 = arith.constant dense<0.000000e+00> : vector<16x256xf32>
    %25 = tpu.matmul %23, %24, %cst_21 {dimension_numbers = #tpu.dot_dimension_numbers<[1], [0], [0], [1], [0, 0, 1, 1], [], []>} : vector<16x128xf32>, vector<128x256xf32>, vector<16x256xf32> -> vector<16x256xf32>
    %c0_22 = arith.constant 0 : index
    %c0_23 = arith.constant 0 : index
    %26 = vector.load %arg10[%c0_22, %c0_23] : memref<1x256xf32, #tpu.memory_space<vmem>>, vector<1x256xf32>
    %27 = vector.broadcast %26 : vector<1x256xf32> to vector<16x256xf32>
    %28 = arith.addf %25, %27 : vector<16x256xf32>
    %cst_24 = arith.constant 0.000000e+00 : f32
    %29 = vector.broadcast %cst_24 : f32 to vector<16x256xf32>
    %30 = arith.maximumf %28, %29 : vector<16x256xf32>
    %31 = arith.truncf %30 : vector<16x256xf32> to vector<16x256xbf16>
    %c0_25 = arith.constant 0 : index
    %c0_26 = arith.constant 0 : index
    %32 = vector.load %arg11[%c0_25, %c0_26] : memref<256x1024xbf16, #tpu.memory_space<vmem>>, vector<256x1024xbf16>
    %cst_27 = arith.constant dense<0.000000e+00> : vector<16x1024xf32>
    %33 = tpu.matmul %31, %32, %cst_27 {dimension_numbers = #tpu.dot_dimension_numbers<[1], [0], [0], [1], [0, 0, 1, 1], [], []>} : vector<16x256xbf16>, vector<256x1024xbf16>, vector<16x1024xf32> -> vector<16x1024xf32>
    %c0_28 = arith.constant 0 : index
    %c0_29 = arith.constant 0 : index
    %34 = vector.load %arg12[%c0_28, %c0_29] : memref<1x1024xf32, #tpu.memory_space<vmem>>, vector<1x1024xf32>
    %35 = vector.broadcast %34 : vector<1x1024xf32> to vector<16x1024xf32>
    %36 = arith.addf %33, %35 : vector<16x1024xf32>
    %cst_30 = arith.constant 0.000000e+00 : f32
    %37 = vector.broadcast %cst_30 : f32 to vector<16x1024xf32>
    %38 = arith.maximumf %36, %37 : vector<16x1024xf32>
    %c0_31 = arith.constant 0 : index
    %c0_32 = arith.constant 0 : index
    %39 = vector.load %arg13[%c0_31, %c0_32] : memref<16x128xf32, #tpu.memory_space<vmem>>, vector<16x128xf32>
    tpu.vector_store %arg13[%c0_31, %c0_32], %12 {strides = array<i32>} : memref<16x128xf32, #tpu.memory_space<vmem>>, vector<16x128xf32>,
    %c0_33 = arith.constant 0 : index
    %c0_34 = arith.constant 0 : index
    %40 = vector.load %arg14[%c0_33, %c0_34] : memref<16x128xf32, #tpu.memory_space<vmem>>, vector<16x128xf32>
    tpu.vector_store %arg14[%c0_33, %c0_34], %17 {strides = array<i32>} : memref<16x128xf32, #tpu.memory_space<vmem>>, vector<16x128xf32>,
    %c0_35 = arith.constant 0 : index
    %c0_36 = arith.constant 0 : index
    %41 = vector.load %arg15[%c0_35, %c0_36] : memref<16x128xf32, #tpu.memory_space<vmem>>, vector<16x128xf32>
    tpu.vector_store %arg15[%c0_35, %c0_36], %23 {strides = array<i32>} : memref<16x128xf32, #tpu.memory_space<vmem>>, vector<16x128xf32>,
    %42 = arith.truncf %38 : vector<16x1024xf32> to vector<16x1024xbf16>
    %c0_37 = arith.constant 0 : index
    %c0_38 = arith.constant 0 : index
    %43 = vector.load %arg16[%c0_37, %c0_38] : memref<16x1024xbf16, #tpu.memory_space<vmem>>, vector<16x1024xbf16>
    tpu.vector_store %arg16[%c0_37, %c0_38], %42 {strides = array<i32>} : memref<16x1024xbf16, #tpu.memory_space<vmem>>, vector<16x1024xbf16>,
    return
  }
  func.func @transform_0(%arg0: i32) -> (i32, i32) {
    %c0_i32 = arith.constant 0 : i32
    %c0_i32_0 = arith.constant 0 : i32
    %c0_i32_1 = arith.constant 0 : i32
    return %c0_i32, %c0_i32_0 : i32, i32
  }
  func.func @transform_1(%arg0: i32) -> (i32, i32) {
    %c0_i32 = arith.constant 0 : i32
    %c0_i32_0 = arith.constant 0 : i32
    %c0_i32_1 = arith.constant 0 : i32
    return %c0_i32, %c0_i32_0 : i32, i32
  }
  func.func @transform_2(%arg0: i32) -> (i32, i32) {
    %c0_i32 = arith.constant 0 : i32
    %c0_i32_0 = arith.constant 0 : i32
    %c0_i32_1 = arith.constant 0 : i32
    return %c0_i32, %c0_i32_0 : i32, i32
  }
  func.func @transform_3(%arg0: i32) -> (i32, i32) {
    %c0_i32 = arith.constant 0 : i32
    %c0_i32_0 = arith.constant 0 : i32
    %c0_i32_1 = arith.constant 0 : i32
    return %c0_i32, %c0_i32_0 : i32, i32
  }
  func.func @transform_4(%arg0: i32) -> (i32, i32) {
    %c0_i32 = arith.constant 0 : i32
    %c0_i32_0 = arith.constant 0 : i32
    %c0_i32_1 = arith.constant 0 : i32
    return %c0_i32, %c0_i32_0 : i32, i32
  }
  func.func @transform_5(%arg0: i32) -> (i32, i32) {
    %c0_i32 = arith.constant 0 : i32
    %c0_i32_0 = arith.constant 0 : i32
    %c0_i32_1 = arith.constant 0 : i32
    return %c0_i32, %c0_i32_0 : i32, i32
  }
  func.func @transform_6(%arg0: i32) -> (i32, i32) {
    %c0_i32 = arith.constant 0 : i32
    %c0_i32_0 = arith.constant 0 : i32
    %c0_i32_1 = arith.constant 0 : i32
    return %c0_i32, %c0_i32_0 : i32, i32
  }
  func.func @transform_7(%arg0: i32) -> (i32, i32) {
    %c0_i32 = arith.constant 0 : i32
    %c0_i32_0 = arith.constant 0 : i32
    %c0_i32_1 = arith.constant 0 : i32
    return %c0_i32, %c0_i32_0 : i32, i32
  }
  func.func @transform_8(%arg0: i32) -> (i32, i32) {
    %c0_i32 = arith.constant 0 : i32
    %c0_i32_0 = arith.constant 0 : i32
    %c0_i32_1 = arith.constant 0 : i32
    return %c0_i32, %c0_i32_0 : i32, i32
  }
  func.func @transform_9(%arg0: i32) -> (i32, i32) {
    %c0_i32 = arith.constant 0 : i32
    %c0_i32_0 = arith.constant 0 : i32
    %c0_i32_1 = arith.constant 0 : i32
    return %c0_i32, %c0_i32_0 : i32, i32
  }
  func.func @transform_10(%arg0: i32) -> (i32, i32) {
    %c0_i32 = arith.constant 0 : i32
    %c0_i32_0 = arith.constant 0 : i32
    %c0_i32_1 = arith.constant 0 : i32
    return %c0_i32, %c0_i32_0 : i32, i32
  }
  func.func @transform_11(%arg0: i32) -> (i32, i32) {
    %c0_i32 = arith.constant 0 : i32
    %c0_i32_0 = arith.constant 0 : i32
    %c0_i32_1 = arith.constant 0 : i32
    return %c0_i32, %c0_i32_0 : i32, i32
  }
  func.func @transform_12(%arg0: i32) -> (i32, i32) {
    %c0_i32 = arith.constant 0 : i32
    %c0_i32_0 = arith.constant 0 : i32
    %c0_i32_1 = arith.constant 0 : i32
    return %c0_i32, %c0_i32_0 : i32, i32
  }
  func.func @transform_13(%arg0: i32) -> (i32, i32) {
    %c0_i32 = arith.constant 0 : i32
    %c0_i32_0 = arith.constant 0 : i32
    %c0_i32_1 = arith.constant 0 : i32
    return %c0_i32, %c0_i32_0 : i32, i32
  }
  func.func @transform_14(%arg0: i32) -> (i32, i32) {
    %c0_i32 = arith.constant 0 : i32
    %c0_i32_0 = arith.constant 0 : i32
    %c0_i32_1 = arith.constant 0 : i32
    return %c0_i32, %c0_i32_0 : i32, i32
  }
  func.func @transform_15(%arg0: i32) -> (i32, i32) {
    %c0_i32 = arith.constant 0 : i32
    %c0_i32_0 = arith.constant 0 : i32
    %c0_i32_1 = arith.constant 0 : i32
    return %c0_i32, %c0_i32_0 : i32, i32
  }
}

module attributes {stable_mosaic.version = 11 : i64} {
  func.func @_matmul_bias_act_kernel(%arg0: i32, %arg1: memref<32x64xbf16, #tpu.memory_space<vmem>>, %arg2: memref<64x1024xbf16, #tpu.memory_space<vmem>>, %arg3: memref<32x1024xbf16, #tpu.memory_space<vmem>>) attributes {dimension_semantics = [#tpu.dimension_semantics<parallel>], iteration_bounds = array<i64: 1>, scalar_prefetch = 0 : i64, scratch_operands = 0 : i64, tpu.core_type = #tpu.core_type<tc>, window_params = [{transform_indices = @transform_0, window_bounds = array<i64: 32, 64>}, {pipeline_mode = #tpu.pipeline_mode<synchronous>, transform_indices = @transform_1, window_bounds = array<i64: 64, 1024>}, {transform_indices = @transform_2, window_bounds = array<i64: 32, 1024>}]} {
    %c0 = arith.constant 0 : index
    %c0_0 = arith.constant 0 : index
    %0 = vector.load %arg1[%c0, %c0_0] : memref<32x64xbf16, #tpu.memory_space<vmem>>, vector<32x64xbf16>
    %c0_1 = arith.constant 0 : index
    %c0_2 = arith.constant 0 : index
    %1 = vector.load %arg2[%c0_1, %c0_2] : memref<64x1024xbf16, #tpu.memory_space<vmem>>, vector<64x1024xbf16>
    %cst = arith.constant dense<0.000000e+00> : vector<32x1024xf32>
    %2 = tpu.matmul %0, %1, %cst {dimension_numbers = #tpu.dot_dimension_numbers<[1], [0], [0], [1], [0, 0, 1, 1], [], []>} : vector<32x64xbf16>, vector<64x1024xbf16>, vector<32x1024xf32> -> vector<32x1024xf32>
    %3 = arith.truncf %2 : vector<32x1024xf32> to vector<32x1024xbf16>
    %c0_3 = arith.constant 0 : index
    %c0_4 = arith.constant 0 : index
    %4 = vector.load %arg3[%c0_3, %c0_4] : memref<32x1024xbf16, #tpu.memory_space<vmem>>, vector<32x1024xbf16>
    tpu.vector_store %arg3[%c0_3, %c0_4], %3 {strides = array<i32>} : memref<32x1024xbf16, #tpu.memory_space<vmem>>, vector<32x1024xbf16>,
    return
  }
  func.func @transform_0(%arg0: i32) -> (i32, i32) {
    %c0_i32 = arith.constant 0 : i32
    %c0_i32_0 = arith.constant 0 : i32
    return %arg0, %c0_i32 : i32, i32
  }
  func.func @transform_1(%arg0: i32) -> (i32, i32) {
    %c0_i32 = arith.constant 0 : i32
    %c0_i32_0 = arith.constant 0 : i32
    %c0_i32_1 = arith.constant 0 : i32
    return %c0_i32, %c0_i32_0 : i32, i32
  }
  func.func @transform_2(%arg0: i32) -> (i32, i32) {
    %c0_i32 = arith.constant 0 : i32
    %c0_i32_0 = arith.constant 0 : i32
    return %arg0, %c0_i32 : i32, i32
  }
}

module attributes {stable_mosaic.version = 11 : i64} {
  func.func @_matmul_bias_act_kernel(%arg0: i32, %arg1: memref<128x64xbf16, #tpu.memory_space<vmem>>, %arg2: memref<64x512xbf16, #tpu.memory_space<vmem>>, %arg3: memref<128x512xbf16, #tpu.memory_space<vmem>>) attributes {dimension_semantics = [#tpu.dimension_semantics<parallel>], iteration_bounds = array<i64: 1>, scalar_prefetch = 0 : i64, scratch_operands = 0 : i64, tpu.core_type = #tpu.core_type<tc>, window_params = [{transform_indices = @transform_0, window_bounds = array<i64: 128, 64>}, {pipeline_mode = #tpu.pipeline_mode<synchronous>, transform_indices = @transform_1, window_bounds = array<i64: 64, 512>}, {transform_indices = @transform_2, window_bounds = array<i64: 128, 512>}]} {
    %c0 = arith.constant 0 : index
    %c0_0 = arith.constant 0 : index
    %0 = vector.load %arg1[%c0, %c0_0] : memref<128x64xbf16, #tpu.memory_space<vmem>>, vector<128x64xbf16>
    %c0_1 = arith.constant 0 : index
    %c0_2 = arith.constant 0 : index
    %1 = vector.load %arg2[%c0_1, %c0_2] : memref<64x512xbf16, #tpu.memory_space<vmem>>, vector<64x512xbf16>
    %cst = arith.constant dense<0.000000e+00> : vector<128x512xf32>
    %2 = tpu.matmul %0, %1, %cst {dimension_numbers = #tpu.dot_dimension_numbers<[1], [0], [0], [1], [0, 0, 1, 1], [], []>} : vector<128x64xbf16>, vector<64x512xbf16>, vector<128x512xf32> -> vector<128x512xf32>
    %3 = arith.truncf %2 : vector<128x512xf32> to vector<128x512xbf16>
    %c0_3 = arith.constant 0 : index
    %c0_4 = arith.constant 0 : index
    %4 = vector.load %arg3[%c0_3, %c0_4] : memref<128x512xbf16, #tpu.memory_space<vmem>>, vector<128x512xbf16>
    tpu.vector_store %arg3[%c0_3, %c0_4], %3 {strides = array<i32>} : memref<128x512xbf16, #tpu.memory_space<vmem>>, vector<128x512xbf16>,
    return
  }
  func.func @transform_0(%arg0: i32) -> (i32, i32) {
    %c0_i32 = arith.constant 0 : i32
    %c0_i32_0 = arith.constant 0 : i32
    return %arg0, %c0_i32 : i32, i32
  }
  func.func @transform_1(%arg0: i32) -> (i32, i32) {
    %c0_i32 = arith.constant 0 : i32
    %c0_i32_0 = arith.constant 0 : i32
    %c0_i32_1 = arith.constant 0 : i32
    return %c0_i32, %c0_i32_0 : i32, i32
  }
  func.func @transform_2(%arg0: i32) -> (i32, i32) {
    %c0_i32 = arith.constant 0 : i32
    %c0_i32_0 = arith.constant 0 : i32
    return %arg0, %c0_i32 : i32, i32
  }
}

module attributes {stable_mosaic.version = 11 : i64} {
  func.func @_matmul_bias_act_kernel(%arg0: i32, %arg1: memref<128x32xbf16, #tpu.memory_space<vmem>>, %arg2: memref<32x512xbf16, #tpu.memory_space<vmem>>, %arg3: memref<128x512xbf16, #tpu.memory_space<vmem>>) attributes {dimension_semantics = [#tpu.dimension_semantics<parallel>], iteration_bounds = array<i64: 4>, scalar_prefetch = 0 : i64, scratch_operands = 0 : i64, tpu.core_type = #tpu.core_type<tc>, window_params = [{transform_indices = @transform_0, window_bounds = array<i64: 128, 32>}, {pipeline_mode = #tpu.pipeline_mode<synchronous>, transform_indices = @transform_1, window_bounds = array<i64: 32, 512>}, {transform_indices = @transform_2, window_bounds = array<i64: 128, 512>}]} {
    %c0 = arith.constant 0 : index
    %c0_0 = arith.constant 0 : index
    %0 = vector.load %arg1[%c0, %c0_0] : memref<128x32xbf16, #tpu.memory_space<vmem>>, vector<128x32xbf16>
    %c0_1 = arith.constant 0 : index
    %c0_2 = arith.constant 0 : index
    %1 = vector.load %arg2[%c0_1, %c0_2] : memref<32x512xbf16, #tpu.memory_space<vmem>>, vector<32x512xbf16>
    %cst = arith.constant dense<0.000000e+00> : vector<128x512xf32>
    %2 = tpu.matmul %0, %1, %cst {dimension_numbers = #tpu.dot_dimension_numbers<[1], [0], [0], [1], [0, 0, 1, 1], [], []>} : vector<128x32xbf16>, vector<32x512xbf16>, vector<128x512xf32> -> vector<128x512xf32>
    %3 = arith.truncf %2 : vector<128x512xf32> to vector<128x512xbf16>
    %c0_3 = arith.constant 0 : index
    %c0_4 = arith.constant 0 : index
    %4 = vector.load %arg3[%c0_3, %c0_4] : memref<128x512xbf16, #tpu.memory_space<vmem>>, vector<128x512xbf16>
    tpu.vector_store %arg3[%c0_3, %c0_4], %3 {strides = array<i32>} : memref<128x512xbf16, #tpu.memory_space<vmem>>, vector<128x512xbf16>,
    return
  }
  func.func @transform_0(%arg0: i32) -> (i32, i32) {
    %c0_i32 = arith.constant 0 : i32
    %c0_i32_0 = arith.constant 0 : i32
    return %arg0, %c0_i32 : i32, i32
  }
  func.func @transform_1(%arg0: i32) -> (i32, i32) {
    %c0_i32 = arith.constant 0 : i32
    %c0_i32_0 = arith.constant 0 : i32
    %c0_i32_1 = arith.constant 0 : i32
    return %c0_i32, %c0_i32_0 : i32, i32
  }
  func.func @transform_2(%arg0: i32) -> (i32, i32) {
    %c0_i32 = arith.constant 0 : i32
    %c0_i32_0 = arith.constant 0 : i32
    return %arg0, %c0_i32 : i32, i32
  }
}

module attributes {stable_mosaic.version = 11 : i64} {
  func.func @_matmul_bias_act_kernel(%arg0: i32, %arg1: memref<512x32xbf16, #tpu.memory_space<vmem>>, %arg2: memref<32x128xbf16, #tpu.memory_space<vmem>>, %arg3: memref<512x128xbf16, #tpu.memory_space<vmem>>) attributes {dimension_semantics = [#tpu.dimension_semantics<parallel>], iteration_bounds = array<i64: 4>, scalar_prefetch = 0 : i64, scratch_operands = 0 : i64, tpu.core_type = #tpu.core_type<tc>, window_params = [{transform_indices = @transform_0, window_bounds = array<i64: 512, 32>}, {pipeline_mode = #tpu.pipeline_mode<synchronous>, transform_indices = @transform_1, window_bounds = array<i64: 32, 128>}, {transform_indices = @transform_2, window_bounds = array<i64: 512, 128>}]} {
    %c0 = arith.constant 0 : index
    %c0_0 = arith.constant 0 : index
    %0 = vector.load %arg1[%c0, %c0_0] : memref<512x32xbf16, #tpu.memory_space<vmem>>, vector<512x32xbf16>
    %c0_1 = arith.constant 0 : index
    %c0_2 = arith.constant 0 : index
    %1 = vector.load %arg2[%c0_1, %c0_2] : memref<32x128xbf16, #tpu.memory_space<vmem>>, vector<32x128xbf16>
    %cst = arith.constant dense<0.000000e+00> : vector<512x128xf32>
    %2 = tpu.matmul %0, %1, %cst {dimension_numbers = #tpu.dot_dimension_numbers<[1], [0], [0], [1], [0, 0, 1, 1], [], []>} : vector<512x32xbf16>, vector<32x128xbf16>, vector<512x128xf32> -> vector<512x128xf32>
    %3 = arith.truncf %2 : vector<512x128xf32> to vector<512x128xbf16>
    %c0_3 = arith.constant 0 : index
    %c0_4 = arith.constant 0 : index
    %4 = vector.load %arg3[%c0_3, %c0_4] : memref<512x128xbf16, #tpu.memory_space<vmem>>, vector<512x128xbf16>
    tpu.vector_store %arg3[%c0_3, %c0_4], %3 {strides = array<i32>} : memref<512x128xbf16, #tpu.memory_space<vmem>>, vector<512x128xbf16>,
    return
  }
  func.func @transform_0(%arg0: i32) -> (i32, i32) {
    %c0_i32 = arith.constant 0 : i32
    %c0_i32_0 = arith.constant 0 : i32
    return %arg0, %c0_i32 : i32, i32
  }
  func.func @transform_1(%arg0: i32) -> (i32, i32) {
    %c0_i32 = arith.constant 0 : i32
    %c0_i32_0 = arith.constant 0 : i32
    %c0_i32_1 = arith.constant 0 : i32
    return %c0_i32, %c0_i32_0 : i32, i32
  }
  func.func @transform_2(%arg0: i32) -> (i32, i32) {
    %c0_i32 = arith.constant 0 : i32
    %c0_i32_0 = arith.constant 0 : i32
    return %arg0, %c0_i32 : i32, i32
  }
}

</mosaic_0001>

<bundles_post_ra>
// kernel: factor_vae2_forward.9
= control target key start
LH: loop header
LB: loop body
LE: loop exit
PB: predicated region body
PF: predicated region fallthrough
CT: control target
= control target key end

     0   :  { %s1836_s12 = smov 0   ;;  %s2038_s0 = inlined_call_operand.vmem [shape: bf16[2048,48], index: 0, kind: input, shape index: {}]   ;;  %s2039_s1 = inlined_call_operand.vmem [shape: bf16[48,128], index: 1, kind: input, shape index: {}]   ;;  %s2040_s2 = inlined_call_operand.vmem [shape: f32[1,128], index: 2, kind: input, shape index: {}]   ;;  %s2041_s3 = inlined_call_operand.vmem [shape: bf16[2048,128], index: 3, kind: output, shape index: {}]  }
   0x1 LB: > { %s1256_s13 = sadd.s32 4294967295, %s1814_s12   ;;  %p1260_p0 = scmp.ge.s32.totalorder %s1814_s12, 1  ;;  %s1814_s12 = sphi %s1836_s12, %s13_s12  }
   0x2   : > { %p138_p1 = scmp.lt.s32.totalorder %s1814_s12, 5 }
   0x4   : > { %p139_p2 = pnand %p1260_p0, %p138_p1 }
   0x5   : > { %v1773_v0 = vld [vmem:[%s2039_s1] sm:$0xff] (!%p139_p2)   ;;  %s1261_s16 = sshll.u32 (!%p139_p2), %s1256_s13, 6  ;;  %v1774_v1 = vld [vmem:[%s2039_s1 + $0x8] sm:$0xff] (!%p139_p2)   ;;  %v1775_v2 = vld [vmem:[%s2039_s1 + $0x10] sm:$0xff] (!%p139_p2)   ;;  %vm430_vm0 = vcmask (!%p139_p2), 392192  }
   0x6   : > { %142 = sbr.rel (%p139_p2) target bundleno = 297 (0x129), region = 32  ;;  %p163_p3 = scmp.lt.s32.totalorder (!%p139_p2), %s1261_s16, 255  ;;  %1689 = vmatprep.subr.bf16.mxu0 (!%p139_p2), %v1773_v0  ;;  %1759 = vmatprep.subr.bf16.mxu1 (!%p139_p2), %v1773_v0  ;;  %v1930_v35 = vld [vmem:[%s2040_s2] ss:$0 sm:$0xff] (!%p139_p2) }
   0x7   : > { %1690 = vmatpush3.bf16.msra.mxu0 (!%p139_p2), %v1773_v0  ;;  %1762 = vmatpush3.bf16.msra.mxu1 (!%p139_p2), %v1773_v0 }
   0x8   : > { %1691 = vmatprep.subr.bf16.mxu0 (!%p139_p2), %v1774_v1  ;;  %1760 = vmatprep.subr.bf16.mxu1 (!%p139_p2), %v1774_v1 }
   0xb   : > { %1692 = vmatpush3.bf16.msra.mxu0 (!%p139_p2), %v1774_v1  ;;  %1763 = vmatpush3.bf16.msra.mxu1 (!%p139_p2), %v1774_v1 }
   0xc   : > { %1693 = vmatprep.subr.bf16.mxu0 (!%p139_p2), %v1775_v2  ;;  %1761 = vmatprep.subr.bf16.mxu1 (!%p139_p2), %v1775_v2 }
   0xd   : > { %s2043_s16 = smov (!%p163_p3, %s1261_s16), 255 }
   0xe   : > { %s1262_s21 = sshll.u32 %s2043_s16, 2 }
   0xf   : > { %s1861_s24 = scalar_lea.vmem %s2038_s0, %s1262_s21  ;;  %1694 = vmatpush3.bf16.msra.mxu0 %v1775_v2  ;;  %1764 = vmatpush3.bf16.msra.mxu1 %v1775_v2  ;;  %s1945_s29 = scalar_lea.vmem %s2041_s3, %s1262_s21 }
  0x10   : > { %v1776_v3 = vld [vmem:[%s1861_s24] sm:$0xff]   ;;  %v1778_v5 = vld [vmem:[%s1861_s24 + $0x8] sm:$0xff]   ;;  %v1780_v7 = vld [vmem:[%s1861_s24 + $0x10] sm:$0xff]  }
  0x11   : > { %v1777_v4 = vld [vmem:[%s1861_s24 + $0x80] sm:$0xff]   ;;  %1695 = vmatprep.mubr.msk.bf16.mxu0 %vm430_vm0, %v1776_v3  ;;  %v1779_v6 = vld [vmem:[%s1861_s24 + $0x88] sm:$0xff]   ;;  %v1781_v8 = vld [vmem:[%s1861_s24 + $0x90] sm:$0xff]  }
  0x12   : > { %1727 = vmatprep.mubr.msk.bf16.mxu1 %vm430_vm0, %v1777_v4  ;;  %1696 = vmatmul.mubr.msk.bf16.vlgmr.msra.gmra.mrb[0].mxu0 %vm430_vm0, %v1778_v5  ;;  %v1782_v9 = vld [vmem:[%s1861_s24 + $0x18] sm:$0xff]   ;;  %v1784_v11 = vld [vmem:[%s1861_s24 + $0x20] sm:$0xff]   ;;  %v1786_v13 = vld [vmem:[%s1861_s24 + $0x28] sm:$0xff]  }
  0x13   : > { %1728 = vmatmul.mubr.msk.bf16.vlgmr.msra.gmra.mrb[0].mxu1 %vm430_vm0, %v1779_v6  ;;  %1699 = vmatprep.mubr.msk.bf16.mxu0 %vm430_vm0, %v1780_v7  ;;  %v1783_v10 = vld [vmem:[%s1861_s24 + $0x98] sm:$0xff]   ;;  %v1785_v12 = vld [vmem:[%s1861_s24 + $0xa0] sm:$0xff]   ;;  %v1787_v14 = vld [vmem:[%s1861_s24 + $0xa8] sm:$0xff]  }
  0x14   : > { %1731 = vmatprep.mubr.msk.bf16.mxu1 %vm430_vm0, %v1781_v8  ;;  %v1788_v15 = vld [vmem:[%s1861_s24 + $0x30] sm:$0xff]   ;;  %v1790_v17 = vld [vmem:[%s1861_s24 + $0x38] sm:$0xff]   ;;  %v1792_v19 = vld [vmem:[%s1861_s24 + $0x40] sm:$0xff]  }
  0x15   : > { %v1789_v16 = vld [vmem:[%s1861_s24 + $0xb0] sm:$0xff]   ;;  %v1791_v18 = vld [vmem:[%s1861_s24 + $0xb8] sm:$0xff]   ;;  %v1793_v20 = vld [vmem:[%s1861_s24 + $0xc0] sm:$0xff]  }
  0x16   : > { %v1794_v21 = vld [vmem:[%s1861_s24 + $0x48] sm:$0xff]   ;;  %v1796_v23 = vld [vmem:[%s1861_s24 + $0x50] sm:$0xff]   ;;  %v1798_v25 = vld [vmem:[%s1861_s24 + $0x58] sm:$0xff]  }
  0x17   : > { %v1795_v22 = vld [vmem:[%s1861_s24 + $0xc8] sm:$0xff]   ;;  %v1797_v24 = vld [vmem:[%s1861_s24 + $0xd0] sm:$0xff]   ;;  %v1799_v26 = vld [vmem:[%s1861_s24 + $0xd8] sm:$0xff]  }
  0x18   : > { %v1800_v27 = vld [vmem:[%s1861_s24 + $0x60] sm:$0xff]   ;;  %v1802_v29 = vld [vmem:[%s1861_s24 + $0x68] sm:$0xff]   ;;  %v1804_v31 = vld [vmem:[%s1861_s24 + $0x70] sm:$0xff]  }
  0x19   : > { %v1801_v28 = vld [vmem:[%s1861_s24 + $0xe0] sm:$0xff]   ;;  %v1803_v30 = vld [vmem:[%s1861_s24 + $0xe8] sm:$0xff]   ;;  %v1805_v32 = vld [vmem:[%s1861_s24 + $0xf0] sm:$0xff]  }
  0x1a   : > { %1700 = vmatmul.mubr.msk.bf16.gmra.mrb[4].mxu0 %vm430_vm0, %v1782_v9  ;;  %v1806_v33 = vld [vmem:[%s1861_s24 + $0x78] sm:$0xff]  }
  0x1b   : > { %1732 = vmatmul.mubr.msk.bf16.gmra.mrb[4].mxu1 %vm430_vm0, %v1783_v10  ;;  %1703 = vmatprep.mubr.msk.bf16.mxu0 %vm430_vm0, %v1784_v11  ;;  %v1807_v34 = vld [vmem:[%s1861_s24 + $0xf8] sm:$0xff]  }
  0x1c   : > { %1735 = vmatprep.mubr.msk.bf16.mxu1 %vm430_vm0, %v1785_v12 }
  0x22   : > { %1704 = vmatmul.mubr.msk.bf16.gmra.mrb[8].mxu0 %vm430_vm0, %v1786_v13 }
  0x23   : > { %1736 = vmatmul.mubr.msk.bf16.gmra.mrb[8].mxu1 %vm430_vm0, %v1787_v14  ;;  %1707 = vmatprep.mubr.msk.bf16.mxu0 %vm430_vm0, %v1788_v15 }
  0x24   : > { %1739 = vmatprep.mubr.msk.bf16.mxu1 %vm430_vm0, %v1789_v16 }
  0x2a   : > { %1708 = vmatmul.mubr.msk.bf16.gmra.mrb[12].mxu0 %vm430_vm0, %v1790_v17 }
  0x2b   : > { %1740 = vmatmul.mubr.msk.bf16.gmra.mrb[12].mxu1 %vm430_vm0, %v1791_v18  ;;  %1711 = vmatprep.mubr.msk.bf16.mxu0 %vm430_vm0, %v1792_v19 }
  0x2c   : > { %1743 = vmatprep.mubr.msk.bf16.mxu1 %vm430_vm0, %v1793_v20 }
  0x32   : > { %1712 = vmatmul.mubr.msk.bf16.gmra.mrb[16].mxu0 %vm430_vm0, %v1794_v21 }
  0x33   : > { %1744 = vmatmul.mubr.msk.bf16.gmra.mrb[16].mxu1 %vm430_vm0, %v1795_v22  ;;  %1715 = vmatprep.mubr.msk.bf16.mxu0 %vm430_vm0, %v1796_v23 }
  0x34   : > { %1747 = vmatprep.mubr.msk.bf16.mxu1 %vm430_vm0, %v1797_v24 }
  0x3a   : > { %1716 = vmatmul.mubr.msk.bf16.gmra.mrb[20].mxu0 %vm430_vm0, %v1798_v25 }
  0x3b   : > { %1748 = vmatmul.mubr.msk.bf16.gmra.mrb[20].mxu1 %vm430_vm0, %v1799_v26  ;;  %1719 = vmatprep.mubr.msk.bf16.mxu0 %vm430_vm0, %v1800_v27 }
  0x3c   : > { %1751 = vmatprep.mubr.msk.bf16.mxu1 %vm430_vm0, %v1801_v28 }
  0x42   : > { %1720 = vmatmul.mubr.msk.bf16.gmra.mrb[24].mxu0 %vm430_vm0, %v1802_v29 }
  0x43   : > { %1752 = vmatmul.mubr.msk.bf16.gmra.mrb[24].mxu1 %vm430_vm0, %v1803_v30  ;;  %1723 = vmatprep.mubr.msk.bf16.mxu0 %vm430_vm0, %v1804_v31 }
  0x44   : > { %1755 = vmatprep.mubr.msk.bf16.mxu1 %vm430_vm0, %v1805_v32 }
  0x4a   : > { %1724 = vmatmul.mubr.msk.bf16.gmra.mrb[28].mxu0 %vm430_vm0, %v1806_v33 }
  0x4b   : > { %1756 = vmatmul.mubr.msk.bf16.gmra.mrb[28].mxu1 %vm430_vm0, %v1807_v34 }
  0xe5   : > { %v1697_v36 = vpop.f32.mrb[0].mxu0 }
  0xe6   : > { %v1729_v37 = vpop.f32.mrb[0].mxu1  ;;  %v570_v38 = vadd.f32 %v1697_v36, %v1930_v35  ;;  %v561_v40 = vpop.f32.mrb[1].mxu0 }
  0xe7   : > { %v698_v39 = vadd.f32 %v1729_v37, %v1930_v35  ;;  %v689_v41 = vpop.f32.mrb[1].mxu1  ;;  %v562_v42 = vadd.f32 %v1930_v35, %v561_v40  ;;  %v1698_v44 = vpop.f32.mrb[2].mxu0 }
  0xe8   : > { %v690_v43 = vadd.f32 %v1930_v35, %v689_v41  ;;  %v1730_v45 = vpop.f32.mrb[2].mxu1  ;;  %v573_v46 = vadd.f32 %v1698_v44, %v1930_v35  ;;  %v564_v48 = vpop.f32.mrb[3].mxu0  ;;  %v818_v52 = vmax.f32 %v570_v38, 0.0 }
  0xe9   : > { %v701_v47 = vadd.f32 %v1730_v45, %v1930_v35  ;;  %v692_v49 = vpop.f32.mrb[3].mxu1  ;;  %v565_v50 = vadd.f32 %v1930_v35, %v564_v48  ;;  %v850_v53 = vmax.f32 %v698_v39, 0.0  ;;  %v816_v56 = vmax.f32 %v562_v42, 0.0 }
  0xea   : > { %v693_v51 = vadd.f32 %v1930_v35, %v692_v49  ;;  %v819_v54 = vmax.f32 %v573_v46, 0.0  ;;  %v848_v57 = vmax.f32 %v690_v43, 0.0 }
  0xeb   : > { %v851_v55 = vmax.f32 %v701_v47, 0.0  ;;  %v817_v58 = vmax.f32 %v565_v50, 0.0 }
  0xec   : > { %v849_v59 = vmax.f32 %v693_v51, 0.0  ;;  %v1471_v60 = vpack.c.bf16 %v819_v54, %v818_v52 }
  0xed   : > { %v1551_v61 = vpack.c.bf16 %v851_v55, %v850_v53  ;;  %v1466_v62 = vpack.c.bf16 %v817_v58, %v816_v56  ;;  %v1701_v0 = vpop.f32.mrb[4].mxu0 }
  0xee   : > { %v1546_v63 = vpack.c.bf16 %v849_v59, %v848_v57  ;;  %v1733_v1 = vpop.f32.mrb[4].mxu1  ;;  %1623 = vst [vmem:[%s1945_s29 + $0x8] sm:$0xff] %v1471_v60   ;;  %v586_v2 = vadd.f32 %v1701_v0, %v1930_v35  ;;  %v577_v4 = vpop.f32.mrb[5].mxu0 }
  0xef   : > { %1639 = vst [vmem:[%s1945_s29 + $0x88] sm:$0xff] %v1551_v61   ;;  %v714_v3 = vadd.f32 %v1733_v1, %v1930_v35  ;;  %v705_v5 = vpop.f32.mrb[5].mxu1  ;;  %1467 = vst [vmem:[%s1945_s29] sm:$0xff] %v1466_v62   ;;  %v578_v6 = vadd.f32 %v1930_v35, %v577_v4  ;;  %v1702_v8 = vpop.f32.mrb[6].mxu0 }
  0xf0   : > { %1638 = vst [vmem:[%s1945_s29 + $0x80] sm:$0xff] %v1546_v63   ;;  %v706_v7 = vadd.f32 %v1930_v35, %v705_v5  ;;  %v1734_v9 = vpop.f32.mrb[6].mxu1  ;;  %v589_v10 = vadd.f32 %v1702_v8, %v1930_v35  ;;  %v580_v12 = vpop.f32.mrb[7].mxu0  ;;  %v822_v16 = vmax.f32 %v586_v2, 0.0 }
  0xf1   : > { %v717_v11 = vadd.f32 %v1734_v9, %v1930_v35  ;;  %v708_v13 = vpop.f32.mrb[7].mxu1  ;;  %v581_v14 = vadd.f32 %v1930_v35, %v580_v12  ;;  %v854_v17 = vmax.f32 %v714_v3, 0.0  ;;  %v820_v20 = vmax.f32 %v578_v6, 0.0 }
  0xf2   : > { %v709_v15 = vadd.f32 %v1930_v35, %v708_v13  ;;  %v823_v18 = vmax.f32 %v589_v10, 0.0  ;;  %v852_v21 = vmax.f32 %v706_v7, 0.0 }
  0xf3   : > { %v855_v19 = vmax.f32 %v717_v11, 0.0  ;;  %v821_v22 = vmax.f32 %v581_v14, 0.0 }
  0xf4   : > { %v853_v23 = vmax.f32 %v709_v15, 0.0  ;;  %v1481_v24 = vpack.c.bf16 %v823_v18, %v822_v16 }
  0xf5   : > { %v1561_v25 = vpack.c.bf16 %v855_v19, %v854_v17  ;;  %v1476_v26 = vpack.c.bf16 %v821_v22, %v820_v20  ;;  %v1705_v28 = vpop.f32.mrb[8].mxu0 }
  0xf6   : > { %v1556_v27 = vpack.c.bf16 %v853_v23, %v852_v21  ;;  %v1737_v29 = vpop.f32.mrb[8].mxu1  ;;  %1625 = vst [vmem:[%s1945_s29 + $0x18] sm:$0xff] %v1481_v24   ;;  %v602_v30 = vadd.f32 %v1705_v28, %v1930_v35  ;;  %v593_v32 = vpop.f32.mrb[9].mxu0 }
  0xf7   : > { %1641 = vst [vmem:[%s1945_s29 + $0x98] sm:$0xff] %v1561_v25   ;;  %v730_v31 = vadd.f32 %v1737_v29, %v1930_v35  ;;  %v721_v33 = vpop.f32.mrb[9].mxu1  ;;  %1624 = vst [vmem:[%s1945_s29 + $0x10] sm:$0xff] %v1476_v26   ;;  %v594_v34 = vadd.f32 %v1930_v35, %v593_v32  ;;  %v1706_v37 = vpop.f32.mrb[10].mxu0 }
  0xf8   : > { %1640 = vst [vmem:[%s1945_s29 + $0x90] sm:$0xff] %v1556_v27   ;;  %v722_v36 = vadd.f32 %v1930_v35, %v721_v33  ;;  %v1738_v38 = vpop.f32.mrb[10].mxu1  ;;  %v605_v39 = vadd.f32 %v1706_v37, %v1930_v35  ;;  %v596_v41 = vpop.f32.mrb[11].mxu0  ;;  %v826_v45 = vmax.f32 %v602_v30, 0.0 }
  0xf9   : > { %v733_v40 = vadd.f32 %v1738_v38, %v1930_v35  ;;  %v724_v42 = vpop.f32.mrb[11].mxu1  ;;  %v597_v43 = vadd.f32 %v1930_v35, %v596_v41  ;;  %v858_v46 = vmax.f32 %v730_v31, 0.0  ;;  %v824_v49 = vmax.f32 %v594_v34, 0.0 }
  0xfa   : > { %v725_v44 = vadd.f32 %v1930_v35, %v724_v42  ;;  %v827_v47 = vmax.f32 %v605_v39, 0.0  ;;  %v856_v50 = vmax.f32 %v722_v36, 0.0 }
  0xfb   : > { %v859_v48 = vmax.f32 %v733_v40, 0.0  ;;  %v825_v51 = vmax.f32 %v597_v43, 0.0 }
  0xfc   : > { %v857_v52 = vmax.f32 %v725_v44, 0.0  ;;  %v1491_v53 = vpack.c.bf16 %v827_v47, %v826_v45 }
  0xfd   : > { %v1571_v54 = vpack.c.bf16 %v859_v48, %v858_v46  ;;  %v1486_v55 = vpack.c.bf16 %v825_v51, %v824_v49  ;;  %v1709_v57 = vpop.f32.mrb[12].mxu0 }
  0xfe   : > { %v1566_v56 = vpack.c.bf16 %v857_v52, %v856_v50  ;;  %v1741_v58 = vpop.f32.mrb[12].mxu1  ;;  %1627 = vst [vmem:[%s1945_s29 + $0x28] sm:$0xff] %v1491_v53   ;;  %v618_v59 = vadd.f32 %v1709_v57, %v1930_v35  ;;  %v609_v61 = vpop.f32.mrb[13].mxu0 }
  0xff   : > { %1643 = vst [vmem:[%s1945_s29 + $0xa8] sm:$0xff] %v1571_v54   ;;  %v746_v60 = vadd.f32 %v1741_v58, %v1930_v35  ;;  %v737_v62 = vpop.f32.mrb[13].mxu1  ;;  %1626 = vst [vmem:[%s1945_s29 + $0x20] sm:$0xff] %v1486_v55   ;;  %v610_v63 = vadd.f32 %v1930_v35, %v609_v61  ;;  %v1710_v1 = vpop.f32.mrb[14].mxu0 }
 0x100   : > { %1642 = vst [vmem:[%s1945_s29 + $0xa0] sm:$0xff] %v1566_v56   ;;  %v738_v0 = vadd.f32 %v1930_v35, %v737_v62  ;;  %v1742_v2 = vpop.f32.mrb[14].mxu1  ;;  %v621_v3 = vadd.f32 %v1710_v1, %v1930_v35  ;;  %v612_v5 = vpop.f32.mrb[15].mxu0  ;;  %v830_v9 = vmax.f32 %v618_v59, 0.0 }
 0x101   : > { %v749_v4 = vadd.f32 %v1742_v2, %v1930_v35  ;;  %v740_v6 = vpop.f32.mrb[15].mxu1  ;;  %v613_v7 = vadd.f32 %v1930_v35, %v612_v5  ;;  %v862_v10 = vmax.f32 %v746_v60, 0.0  ;;  %v828_v13 = vmax.f32 %v610_v63, 0.0 }
 0x102   : > { %v741_v8 = vadd.f32 %v1930_v35, %v740_v6  ;;  %v831_v11 = vmax.f32 %v621_v3, 0.0  ;;  %v860_v14 = vmax.f32 %v738_v0, 0.0 }
 0x103   : > { %v863_v12 = vmax.f32 %v749_v4, 0.0  ;;  %v829_v15 = vmax.f32 %v613_v7, 0.0 }
 0x104   : > { %v861_v16 = vmax.f32 %v741_v8, 0.0  ;;  %v1501_v17 = vpack.c.bf16 %v831_v11, %v830_v9 }
 0x105   : > { %v1581_v18 = vpack.c.bf16 %v863_v12, %v862_v10  ;;  %v1496_v19 = vpack.c.bf16 %v829_v15, %v828_v13  ;;  %v1713_v21 = vpop.f32.mrb[16].mxu0 }
 0x106   : > { %v1576_v20 = vpack.c.bf16 %v861_v16, %v860_v14  ;;  %v1745_v22 = vpop.f32.mrb[16].mxu1  ;;  %1629 = vst [vmem:[%s1945_s29 + $0x38] sm:$0xff] %v1501_v17   ;;  %v634_v23 = vadd.f32 %v1713_v21, %v1930_v35  ;;  %v625_v25 = vpop.f32.mrb[17].mxu0 }
 0x107   : > { %1645 = vst [vmem:[%s1945_s29 + $0xb8] sm:$0xff] %v1581_v18   ;;  %v762_v24 = vadd.f32 %v1745_v22, %v1930_v35  ;;  %v753_v26 = vpop.f32.mrb[17].mxu1  ;;  %1628 = vst [vmem:[%s1945_s29 + $0x30] sm:$0xff] %v1496_v19   ;;  %v626_v27 = vadd.f32 %v1930_v35, %v625_v25  ;;  %v1714_v29 = vpop.f32.mrb[18].mxu0 }
 0x108   : > { %1644 = vst [vmem:[%s1945_s29 + $0xb0] sm:$0xff] %v1576_v20   ;;  %v754_v28 = vadd.f32 %v1930_v35, %v753_v26  ;;  %v1746_v30 = vpop.f32.mrb[18].mxu1  ;;  %v637_v31 = vadd.f32 %v1714_v29, %v1930_v35  ;;  %v628_v33 = vpop.f32.mrb[19].mxu0  ;;  %v834_v38 = vmax.f32 %v634_v23, 0.0 }
 0x109   : > { %v765_v32 = vadd.f32 %v1746_v30, %v1930_v35  ;;  %v756_v34 = vpop.f32.mrb[19].mxu1  ;;  %v629_v36 = vadd.f32 %v1930_v35, %v628_v33  ;;  %v866_v39 = vmax.f32 %v762_v24, 0.0  ;;  %v832_v42 = vmax.f32 %v626_v27, 0.0 }
 0x10a   : > { %v757_v37 = vadd.f32 %v1930_v35, %v756_v34  ;;  %v835_v40 = vmax.f32 %v637_v31, 0.0  ;;  %v864_v43 = vmax.f32 %v754_v28, 0.0 }
 0x10b   : > { %v867_v41 = vmax.f32 %v765_v32, 0.0  ;;  %v833_v44 = vmax.f32 %v629_v36, 0.0 }
 0x10c   : > { %v865_v45 = vmax.f32 %v757_v37, 0.0  ;;  %v1511_v46 = vpack.c.bf16 %v835_v40, %v834_v38 }
 0x10d   : > { %v1591_v47 = vpack.c.bf16 %v867_v41, %v866_v39  ;;  %v1506_v48 = vpack.c.bf16 %v833_v44, %v832_v42  ;;  %v1717_v50 = vpop.f32.mrb[20].mxu0 }
 0x10e   : > { %v1586_v49 = vpack.c.bf16 %v865_v45, %v864_v43  ;;  %v1749_v51 = vpop.f32.mrb[20].mxu1  ;;  %1631 = vst [vmem:[%s1945_s29 + $0x48] sm:$0xff] %v1511_v46   ;;  %v650_v52 = vadd.f32 %v1717_v50, %v1930_v35  ;;  %v641_v54 = vpop.f32.mrb[21].mxu0 }
 0x10f   : > { %1647 = vst [vmem:[%s1945_s29 + $0xc8] sm:$0xff] %v1591_v47   ;;  %v778_v53 = vadd.f32 %v1749_v51, %v1930_v35  ;;  %v769_v55 = vpop.f32.mrb[21].mxu1  ;;  %1630 = vst [vmem:[%s1945_s29 + $0x40] sm:$0xff] %v1506_v48   ;;  %v642_v56 = vadd.f32 %v1930_v35, %v641_v54  ;;  %v1718_v58 = vpop.f32.mrb[22].mxu0 }
 0x110   : > { %1646 = vst [vmem:[%s1945_s29 + $0xc0] sm:$0xff] %v1586_v49   ;;  %v770_v57 = vadd.f32 %v1930_v35, %v769_v55  ;;  %v1750_v59 = vpop.f32.mrb[22].mxu1  ;;  %v653_v60 = vadd.f32 %v1718_v58, %v1930_v35  ;;  %v644_v62 = vpop.f32.mrb[23].mxu0  ;;  %v838_v2 = vmax.f32 %v650_v52, 0.0 }
 0x111   : > { %v781_v61 = vadd.f32 %v1750_v59, %v1930_v35  ;;  %v772_v63 = vpop.f32.mrb[23].mxu1  ;;  %v645_v0 = vadd.f32 %v1930_v35, %v644_v62  ;;  %v870_v3 = vmax.f32 %v778_v53, 0.0  ;;  %v836_v6 = vmax.f32 %v642_v56, 0.0 }
 0x112   : > { %v773_v1 = vadd.f32 %v1930_v35, %v772_v63  ;;  %v839_v4 = vmax.f32 %v653_v60, 0.0  ;;  %v868_v7 = vmax.f32 %v770_v57, 0.0 }
 0x113   : > { %v871_v5 = vmax.f32 %v781_v61, 0.0  ;;  %v837_v8 = vmax.f32 %v645_v0, 0.0 }
 0x114   : > { %v869_v9 = vmax.f32 %v773_v1, 0.0  ;;  %v1521_v10 = vpack.c.bf16 %v839_v4, %v838_v2 }
 0x115   : > { %v1601_v11 = vpack.c.bf16 %v871_v5, %v870_v3  ;;  %v1516_v12 = vpack.c.bf16 %v837_v8, %v836_v6  ;;  %v1721_v14 = vpop.f32.mrb[24].mxu0 }
 0x116   : > { %v1596_v13 = vpack.c.bf16 %v869_v9, %v868_v7  ;;  %v1753_v15 = vpop.f32.mrb[24].mxu1  ;;  %1633 = vst [vmem:[%s1945_s29 + $0x58] sm:$0xff] %v1521_v10   ;;  %v666_v16 = vadd.f32 %v1721_v14, %v1930_v35  ;;  %v657_v18 = vpop.f32.mrb[25].mxu0 }
 0x117   : > { %1649 = vst [vmem:[%s1945_s29 + $0xd8] sm:$0xff] %v1601_v11   ;;  %v794_v17 = vadd.f32 %v1753_v15, %v1930_v35  ;;  %v785_v19 = vpop.f32.mrb[25].mxu1  ;;  %1632 = vst [vmem:[%s1945_s29 + $0x50] sm:$0xff] %v1516_v12   ;;  %v658_v20 = vadd.f32 %v1930_v35, %v657_v18  ;;  %v1722_v22 = vpop.f32.mrb[26].mxu0 }
 0x118   : > { %1648 = vst [vmem:[%s1945_s29 + $0xd0] sm:$0xff] %v1596_v13   ;;  %v786_v21 = vadd.f32 %v1930_v35, %v785_v19  ;;  %v1754_v23 = vpop.f32.mrb[26].mxu1  ;;  %v669_v24 = vadd.f32 %v1722_v22, %v1930_v35  ;;  %v660_v26 = vpop.f32.mrb[27].mxu0  ;;  %v842_v30 = vmax.f32 %v666_v16, 0.0 }
 0x119   : > { %v797_v25 = vadd.f32 %v1754_v23, %v1930_v35  ;;  %v788_v27 = vpop.f32.mrb[27].mxu1  ;;  %v661_v28 = vadd.f32 %v1930_v35, %v660_v26  ;;  %v874_v31 = vmax.f32 %v794_v17, 0.0  ;;  %v840_v34 = vmax.f32 %v658_v20, 0.0 }
 0x11a   : > { %v789_v29 = vadd.f32 %v1930_v35, %v788_v27  ;;  %v843_v32 = vmax.f32 %v669_v24, 0.0  ;;  %v872_v36 = vmax.f32 %v786_v21, 0.0 }
 0x11b   : > { %v875_v33 = vmax.f32 %v797_v25, 0.0  ;;  %v841_v37 = vmax.f32 %v661_v28, 0.0 }
 0x11c   : > { %v873_v38 = vmax.f32 %v789_v29, 0.0  ;;  %v1531_v39 = vpack.c.bf16 %v843_v32, %v842_v30 }
 0x11d   : > { %v1611_v40 = vpack.c.bf16 %v875_v33, %v874_v31  ;;  %v1526_v41 = vpack.c.bf16 %v841_v37, %v840_v34  ;;  %v1725_v43 = vpop.f32.mrb[28].mxu0 }
 0x11e   : > { %v1606_v42 = vpack.c.bf16 %v873_v38, %v872_v36  ;;  %v1757_v44 = vpop.f32.mrb[28].mxu1  ;;  %1635 = vst [vmem:[%s1945_s29 + $0x68] sm:$0xff] %v1531_v39   ;;  %v682_v45 = vadd.f32 %v1725_v43, %v1930_v35  ;;  %v673_v47 = vpop.f32.mrb[29].mxu0 }
 0x11f   : > { %1651 = vst [vmem:[%s1945_s29 + $0xe8] sm:$0xff] %v1611_v40   ;;  %v810_v46 = vadd.f32 %v1757_v44, %v1930_v35  ;;  %v801_v48 = vpop.f32.mrb[29].mxu1  ;;  %1634 = vst [vmem:[%s1945_s29 + $0x60] sm:$0xff] %v1526_v41   ;;  %v674_v49 = vadd.f32 %v1930_v35, %v673_v47  ;;  %v1726_v51 = vpop.f32.mrb[30].mxu0 }
 0x120   : > { %1650 = vst [vmem:[%s1945_s29 + $0xe0] sm:$0xff] %v1606_v42   ;;  %v802_v50 = vadd.f32 %v1930_v35, %v801_v48  ;;  %v1758_v52 = vpop.f32.mrb[30].mxu1  ;;  %v685_v53 = vadd.f32 %v1726_v51, %v1930_v35  ;;  %v676_v55 = vpop.f32.mrb[31].mxu0  ;;  %v846_v59 = vmax.f32 %v682_v45, 0.0 }
 0x121   : > { %v813_v54 = vadd.f32 %v1758_v52, %v1930_v35  ;;  %v804_v56 = vpop.f32.mrb[31].mxu1  ;;  %v677_v57 = vadd.f32 %v1930_v35, %v676_v55  ;;  %v878_v60 = vmax.f32 %v810_v46, 0.0  ;;  %v844_v63 = vmax.f32 %v674_v49, 0.0 }
 0x122   : > { %v805_v58 = vadd.f32 %v1930_v35, %v804_v56  ;;  %v847_v61 = vmax.f32 %v685_v53, 0.0  ;;  %v876_v0 = vmax.f32 %v802_v50, 0.0 }
 0x123   : > { %v879_v62 = vmax.f32 %v813_v54, 0.0  ;;  %v845_v1 = vmax.f32 %v677_v57, 0.0 }
 0x124   : > { %v877_v2 = vmax.f32 %v805_v58, 0.0  ;;  %v1541_v3 = vpack.c.bf16 %v847_v61, %v846_v59 }
 0x125   : > { %v1621_v4 = vpack.c.bf16 %v879_v62, %v878_v60  ;;  %v1536_v5 = vpack.c.bf16 %v845_v1, %v844_v63 }
 0x126   : > { %v1616_v6 = vpack.c.bf16 %v877_v2, %v876_v0  ;;  %1637 = vst [vmem:[%s1945_s29 + $0x78] sm:$0xff] %v1541_v3  }
 0x127   : > { %1653 = vst [vmem:[%s1945_s29 + $0xf8] sm:$0xff] %v1621_v4   ;;  %1636 = vst [vmem:[%s1945_s29 + $0x70] sm:$0xff] %v1536_v5  }
 0x128   : > { %1652 = vst [vmem:[%s1945_s29 + $0xf0] sm:$0xff] %v1616_v6  }
 0x129 PF: > { %s13_s12 = sadd.s32 1, %s1814_s12  }
 0x12a   : > { %p10_p4 = scmp.ge.s32.totalorder %s13_s12, 6  }
 0x12c   :  { %12 = sbr.rel (!%p10_p4) target bundleno = 1 (0x1), region = 62 }

// kernel: factor_vae2_forward.10
= control target key start
LH: loop header
LB: loop body
LE: loop exit
PB: predicated region body
PF: predicated region fallthrough
CT: control target
= control target key end

     0   :  { %s1380_s12 = smov 0   ;;  %s1564_s0 = inlined_call_operand.vmem [shape: bf16[512,512], index: 0, kind: input, shape index: {}]   ;;  %s1565_s1 = inlined_call_operand.vmem [shape: bf16[512,128], index: 1, kind: input, shape index: {}]   ;;  %s1566_s2 = inlined_call_operand.vmem [shape: f32[1,128], index: 2, kind: input, shape index: {}]   ;;  %s1567_s3 = inlined_call_operand.vmem [shape: bf16[512,128], index: 3, kind: output, shape index: {}]  }
   0x1 LB: > { %s979_s13 = sadd.s32 4294967295, %s1358_s12   ;;  %p983_p0 = scmp.ge.s32.totalorder %s1358_s12, 1  ;;  %s1358_s12 = sphi %s1380_s12, %s13_s12  }
   0x2   : > { %p139_p1 = scmp.lt.s32.totalorder %s1358_s12, 5 }
   0x4   : > { %p140_p2 = pnand %p983_p0, %p139_p1 }
   0x5   : > { %v1272_v0 = vld [vmem:[%s1565_s1 + $0x40] sm:$0xff] (!%p140_p2)   ;;  %v1276_v4 = vld [vmem:[%s1565_s1 + $0x48] sm:$0xff] (!%p140_p2)   ;;  %v1280_v8 = vld [vmem:[%s1565_s1 + $0x50] sm:$0xff] (!%p140_p2)   ;;  %s984_s21 = sshll.u32 (!%p140_p2), %s979_s13, 4 }
   0x6   : > { %143 = sbr.rel (%p140_p2) target bundleno = 321 (0x141), region = 32  ;;  %v1273_v1 = vld [vmem:[%s1565_s1 + $0xc0] sm:$0xff] (!%p140_p2)   ;;  %1136 = vmatprep.subr.bf16.mxu0 (!%p140_p2), %v1272_v0  ;;  %v1277_v5 = vld [vmem:[%s1565_s1 + $0xc8] sm:$0xff] (!%p140_p2)   ;;  %v1281_v9 = vld [vmem:[%s1565_s1 + $0xd0] sm:$0xff] (!%p140_p2)   ;;  %p165_p3 = scmp.lt.s32.totalorder (!%p140_p2), %s984_s21, 63 }
   0x7   : > { %v1274_v2 = vld [vmem:[%s1565_s1] sm:$0xff] (!%p140_p2)   ;;  %1200 = vmatprep.subr.bf16.mxu1 (!%p140_p2), %v1273_v1  ;;  %v1278_v6 = vld [vmem:[%s1565_s1 + $0x8] sm:$0xff] (!%p140_p2)   ;;  %v1282_v10 = vld [vmem:[%s1565_s1 + $0x10] sm:$0xff] (!%p140_p2)  }
   0x8   : > { %v1275_v3 = vld [vmem:[%s1565_s1 + $0x80] sm:$0xff] (!%p140_p2)   ;;  %1137 = vmatpush3.bf16.msra.mxu0 (!%p140_p2), %v1274_v2  ;;  %v1279_v7 = vld [vmem:[%s1565_s1 + $0x88] sm:$0xff] (!%p140_p2)   ;;  %v1283_v11 = vld [vmem:[%s1565_s1 + $0x90] sm:$0xff] (!%p140_p2)  }
   0x9   : > { %1201 = vmatpush3.bf16.msra.mxu1 (!%p140_p2), %v1275_v3  ;;  %1138 = vmatprep.subr.bf16.mxu0 (!%p140_p2), %v1276_v4  ;;  %v1284_v12 = vld [vmem:[%s1565_s1 + $0x58] sm:$0xff] (!%p140_p2)   ;;  %v1288_v16 = vld [vmem:[%s1565_s1 + $0x60] sm:$0xff] (!%p140_p2)   ;;  %v1292_v20 = vld [vmem:[%s1565_s1 + $0x68] sm:$0xff] (!%p140_p2)  }
   0xa   : > { %1202 = vmatprep.subr.bf16.mxu1 (!%p140_p2), %v1277_v5  ;;  %v1285_v13 = vld [vmem:[%s1565_s1 + $0xd8] sm:$0xff] (!%p140_p2)   ;;  %v1289_v17 = vld [vmem:[%s1565_s1 + $0xe0] sm:$0xff] (!%p140_p2)   ;;  %v1293_v21 = vld [vmem:[%s1565_s1 + $0xe8] sm:$0xff] (!%p140_p2)  }
   0xb   : > { %v1286_v14 = vld [vmem:[%s1565_s1 + $0x18] sm:$0xff] (!%p140_p2)   ;;  %v1290_v18 = vld [vmem:[%s1565_s1 + $0x20] sm:$0xff] (!%p140_p2)   ;;  %v1294_v22 = vld [vmem:[%s1565_s1 + $0x28] sm:$0xff] (!%p140_p2)  }
   0xc   : > { %1139 = vmatpush3.bf16.msra.mxu0 (!%p140_p2), %v1278_v6  ;;  %v1287_v15 = vld [vmem:[%s1565_s1 + $0x98] sm:$0xff] (!%p140_p2)   ;;  %v1291_v19 = vld [vmem:[%s1565_s1 + $0xa0] sm:$0xff] (!%p140_p2)   ;;  %v1295_v23 = vld [vmem:[%s1565_s1 + $0xa8] sm:$0xff] (!%p140_p2)  }
   0xd   : > { %1203 = vmatpush3.bf16.msra.mxu1 %v1279_v7  ;;  %1140 = vmatprep.subr.bf16.mxu0 %v1280_v8  ;;  %s1569_s21 = smov (!%p165_p3, %s984_s21), 63  ;;  %v1296_v24 = vld [vmem:[%s1565_s1 + $0x70] sm:$0xff]   ;;  %v1300_v28 = vld [vmem:[%s1565_s1 + $0x78] sm:$0xff]   ;;  %v1529_v2 = vld [vmem:[%s1566_s2] ss:$0 sm:$0xff] }
   0xe   : > { %1204 = vmatprep.subr.bf16.mxu1 %v1281_v9  ;;  %v1297_v25 = vld [vmem:[%s1565_s1 + $0xf0] sm:$0xff]   ;;  %s1072_s18 = sshll.u32 %s1569_s21, 4  ;;  %v1301_v29 = vld [vmem:[%s1565_s1 + $0xf8] sm:$0xff]   ;;  %s988_s7 = sshll.u32 %s1569_s21, 2 }
   0xf   : > { %v1298_v26 = vld [vmem:[%s1565_s1 + $0x30] sm:$0xff]   ;;  %s1486_s28 = scalar_lea.vmem %s1564_s0, %s1072_s18  ;;  %v1302_v30 = vld [vmem:[%s1565_s1 + $0x38] sm:$0xff]   ;;  %s1537_s10 = scalar_lea.vmem %s1567_s3, %s988_s7 }
  0x10   : > { %1141 = vmatpush3.bf16.msra.mxu0 %v1282_v10  ;;  %v1299_v27 = vld [vmem:[%s1565_s1 + $0xb0] sm:$0xff]   ;;  %v1303_v31 = vld [vmem:[%s1565_s1 + $0xb8] sm:$0xff]  }
  0x11   : > { %1205 = vmatpush3.bf16.msra.mxu1 %v1283_v11  ;;  %1142 = vmatprep.subr.bf16.mxu0 %v1284_v12  ;;  %v1304_v32 = vld [vmem:[%s1486_s28] ss:$16 sps:$4 sm:$0xff]   ;;  %v1306_v33 = vld [vmem:[%s1486_s28 + $0x4] ss:$16 sps:$4 sm:$0xff]   ;;  %v1307_v34 = vld [vmem:[%s1486_s28 + $0x8] ss:$16 sps:$4 sm:$0xff]  }
  0x12   : > { %1206 = vmatprep.subr.bf16.mxu1 %v1285_v13  ;;  %v1309_v35 = vld [vmem:[%s1486_s28 + $0xc] ss:$16 sps:$4 sm:$0xff]   ;;  %665 = vmatprep.mubr.bf16.mxu0 %v1306_v33  ;;  %v1310_v36 = vld [vmem:[%s1486_s28 + $0x24] ss:$16 sps:$4 sm:$0xff]   ;;  %v1314_v38 = vld [vmem:[%s1486_s28 + $0x20] ss:$16 sps:$4 sm:$0xff]  }
  0x13   : > { %762 = vmatprep.mubr.bf16.mxu1 %v1309_v35  ;;  %v1312_v37 = vld [vmem:[%s1486_s28 + $0x2c] ss:$16 sps:$4 sm:$0xff]   ;;  %v1315_v39 = vld [vmem:[%s1486_s28 + $0x28] ss:$16 sps:$4 sm:$0xff]   ;;  %v1316_v40 = vld [vmem:[%s1486_s28 + $0x44] ss:$16 sps:$4 sm:$0xff]  }
  0x14   : > { %1143 = vmatpush3.bf16.msra.mxu0 %v1286_v14  ;;  %v1318_v41 = vld [vmem:[%s1486_s28 + $0x4c] ss:$16 sps:$4 sm:$0xff]   ;;  %v1320_v42 = vld [vmem:[%s1486_s28 + $0x40] ss:$16 sps:$4 sm:$0xff]   ;;  %v1321_v43 = vld [vmem:[%s1486_s28 + $0x48] ss:$16 sps:$4 sm:$0xff]  }
  0x15   : > { %1207 = vmatpush3.bf16.msra.mxu1 %v1287_v15  ;;  %1144 = vmatprep.subr.bf16.mxu0 %v1288_v16  ;;  %v1322_v44 = vld [vmem:[%s1486_s28 + $0x64] ss:$16 sps:$4 sm:$0xff]   ;;  %v1324_v45 = vld [vmem:[%s1486_s28 + $0x6c] ss:$16 sps:$4 sm:$0xff]   ;;  %v1326_v46 = vld [vmem:[%s1486_s28 + $0x60] ss:$16 sps:$4 sm:$0xff]  }
  0x16   : > { %1208 = vmatprep.subr.bf16.mxu1 %v1289_v17  ;;  %v1327_v47 = vld [vmem:[%s1486_s28 + $0x68] ss:$16 sps:$4 sm:$0xff]   ;;  %v1328_v48 = vld [vmem:[%s1486_s28 + $0x84] ss:$16 sps:$4 sm:$0xff]   ;;  %v1330_v49 = vld [vmem:[%s1486_s28 + $0x8c] ss:$16 sps:$4 sm:$0xff]  }
  0x17   : > { %v1332_v50 = vld [vmem:[%s1486_s28 + $0x80] ss:$16 sps:$4 sm:$0xff]   ;;  %v1333_v51 = vld [vmem:[%s1486_s28 + $0x88] ss:$16 sps:$4 sm:$0xff]   ;;  %v1334_v52 = vld [vmem:[%s1486_s28 + $0xa4] ss:$16 sps:$4 sm:$0xff]  }
  0x18   : > { %1145 = vmatpush3.bf16.msra.mxu0 %v1290_v18  ;;  %v1336_v53 = vld [vmem:[%s1486_s28 + $0xac] ss:$16 sps:$4 sm:$0xff]   ;;  %v1338_v54 = vld [vmem:[%s1486_s28 + $0xa0] ss:$16 sps:$4 sm:$0xff]   ;;  %v1339_v55 = vld [vmem:[%s1486_s28 + $0xa8] ss:$16 sps:$4 sm:$0xff]  }
  0x19   : > { %1209 = vmatpush3.bf16.msra.mxu1 %v1291_v19  ;;  %1146 = vmatprep.subr.bf16.mxu0 %v1292_v20  ;;  %v1340_v56 = vld [vmem:[%s1486_s28 + $0xc4] ss:$16 sps:$4 sm:$0xff]   ;;  %v1342_v57 = vld [vmem:[%s1486_s28 + $0xcc] ss:$16 sps:$4 sm:$0xff]   ;;  %v1344_v58 = vld [vmem:[%s1486_s28 + $0xc0] ss:$16 sps:$4 sm:$0xff]  }
  0x1a   : > { %1210 = vmatprep.subr.bf16.mxu1 %v1293_v21  ;;  %v1345_v59 = vld [vmem:[%s1486_s28 + $0xc8] ss:$16 sps:$4 sm:$0xff]   ;;  %v1346_v60 = vld [vmem:[%s1486_s28 + $0xe4] ss:$16 sps:$4 sm:$0xff]   ;;  %v1348_v61 = vld [vmem:[%s1486_s28 + $0xec] ss:$16 sps:$4 sm:$0xff]  }
  0x1b   : > { %v1350_v62 = vld [vmem:[%s1486_s28 + $0xe0] ss:$16 sps:$4 sm:$0xff]   ;;  %v1351_v63 = vld [vmem:[%s1486_s28 + $0xe8] ss:$16 sps:$4 sm:$0xff]  }
  0x1c   : > { %1147 = vmatpush3.bf16.msra.mxu0 %v1294_v22 }
  0x1d   : > { %1211 = vmatpush3.bf16.msra.mxu1 %v1295_v23  ;;  %1148 = vmatprep.subr.bf16.mxu0 %v1296_v24 }
  0x1e   : > { %1212 = vmatprep.subr.bf16.mxu1 %v1297_v25 }
  0x20   : > { %1149 = vmatpush3.bf16.msra.mxu0 %v1298_v26 }
  0x21   : > { %1213 = vmatpush3.bf16.msra.mxu1 %v1299_v27  ;;  %1150 = vmatprep.subr.bf16.mxu0 %v1300_v28 }
  0x22   : > { %1214 = vmatprep.subr.bf16.mxu1 %v1301_v29 }
  0x24   : > { %1151 = vmatpush3.bf16.msra.mxu0 %v1302_v30 }
  0x25   : > { %1215 = vmatpush3.bf16.msra.mxu1 %v1303_v31 }
  0x27   : > { %666 = vmatmul.mubr.bf16.vlgmr.msra.gmra.mrb[0].mxu0 %v1304_v32 }
  0x28   : > { %763 = vmatmul.mubr.bf16.vlgmr.msra.gmra.mrb[0].mxu1 %v1307_v34  ;;  %673 = vmatprep.mubr.bf16.mxu0 %v1310_v36 }
  0x29   : > { %770 = vmatprep.mubr.bf16.mxu1 %v1312_v37 }
  0x2f   : > { %674 = vmatmul.mubr.bf16.gmra.mrb[4].mxu0 %v1314_v38 }
  0x30   : > { %771 = vmatmul.mubr.bf16.gmra.mrb[4].mxu1 %v1315_v39  ;;  %681 = vmatprep.mubr.bf16.mxu0 %v1316_v40 }
  0x31   : > { %778 = vmatprep.mubr.bf16.mxu1 %v1318_v41 }
  0x37   : > { %682 = vmatmul.mubr.bf16.gmra.mrb[8].mxu0 %v1320_v42 }
  0x38   : > { %779 = vmatmul.mubr.bf16.gmra.mrb[8].mxu1 %v1321_v43  ;;  %689 = vmatprep.mubr.bf16.mxu0 %v1322_v44 }
  0x39   : > { %786 = vmatprep.mubr.bf16.mxu1 %v1324_v45 }
  0x3f   : > { %690 = vmatmul.mubr.bf16.gmra.mrb[12].mxu0 %v1326_v46 }
  0x40   : > { %787 = vmatmul.mubr.bf16.gmra.mrb[12].mxu1 %v1327_v47  ;;  %697 = vmatprep.mubr.bf16.mxu0 %v1328_v48 }
  0x41   : > { %794 = vmatprep.mubr.bf16.mxu1 %v1330_v49 }
  0x47   : > { %698 = vmatmul.mubr.bf16.gmra.mrb[16].mxu0 %v1332_v50 }
  0x48   : > { %795 = vmatmul.mubr.bf16.gmra.mrb[16].mxu1 %v1333_v51  ;;  %705 = vmatprep.mubr.bf16.mxu0 %v1334_v52 }
  0x49   : > { %802 = vmatprep.mubr.bf16.mxu1 %v1336_v53 }
  0x4f   : > { %706 = vmatmul.mubr.bf16.gmra.mrb[20].mxu0 %v1338_v54 }
  0x50   : > { %803 = vmatmul.mubr.bf16.gmra.mrb[20].mxu1 %v1339_v55  ;;  %713 = vmatprep.mubr.bf16.mxu0 %v1340_v56 }
  0x51   : > { %810 = vmatprep.mubr.bf16.mxu1 %v1342_v57 }
  0x57   : > { %714 = vmatmul.mubr.bf16.gmra.mrb[24].mxu0 %v1344_v58 }
  0x58   : > { %811 = vmatmul.mubr.bf16.gmra.mrb[24].mxu1 %v1345_v59  ;;  %721 = vmatprep.mubr.bf16.mxu0 %v1346_v60 }
  0x59   : > { %818 = vmatprep.mubr.bf16.mxu1 %v1348_v61 }
  0x5f   : > { %722 = vmatmul.mubr.bf16.gmra.mrb[28].mxu0 %v1350_v62 }
  0x60   : > { %819 = vmatmul.mubr.bf16.gmra.mrb[28].mxu1 %v1351_v63 }
  0xfa   : > { %v1152_v0 = vpop.f32.mrb[0].mxu0 }
  0xfb   : > { %v1216_v1 = vpop.f32.mrb[0].mxu1  ;;  %v1153_v3 = vpop.f32.mrb[1].mxu0 }
  0xfc   : > { %v1154_v4 = vadd.f32 %v1153_v3, %v1152_v0  ;;  %v1217_v5 = vpop.f32.mrb[1].mxu1  ;;  %v1155_v6 = vpop.f32.mrb[2].mxu0 }
  0xfd   : > { %v1218_v7 = vadd.f32 %v1217_v5, %v1216_v1  ;;  %v1219_v8 = vpop.f32.mrb[2].mxu1  ;;  %v1156_v9 = vpop.f32.mrb[3].mxu0 }
  0xfe   : > { %v668_v10 = vadd.f32 %v1154_v4, %v1529_v2  ;;  %v1157_v11 = vadd.f32 %v1156_v9, %v1155_v6  ;;  %v1220_v12 = vpop.f32.mrb[3].mxu1 }
  0xff   : > { %v1221_v13 = vadd.f32 %v1220_v12, %v1219_v8 }
 0x100   : > { %v765_v14 = vadd.f32 %v1218_v7, %v668_v10  ;;  %v671_v15 = vadd.f32 %v1157_v11, %v1529_v2 }
 0x102   : > { %v768_v16 = vadd.f32 %v1221_v13, %v671_v15  ;;  %v1158_v17 = vpop.f32.mrb[4].mxu0  ;;  %v827_v20 = vmax.f32 %v765_v14, 0.0 }
 0x103   : > { %v1222_v18 = vpop.f32.mrb[4].mxu1  ;;  %v1159_v19 = vpop.f32.mrb[5].mxu0 }
 0x104   : > { %v828_v21 = vmax.f32 %v768_v16, 0.0  ;;  %v1160_v22 = vadd.f32 %v1159_v19, %v1158_v17  ;;  %v1223_v23 = vpop.f32.mrb[5].mxu1  ;;  %v1161_v24 = vpop.f32.mrb[6].mxu0 }
 0x105   : > { %v1224_v25 = vadd.f32 %v1223_v23, %v1222_v18  ;;  %v1225_v26 = vpop.f32.mrb[6].mxu1  ;;  %v1162_v27 = vpop.f32.mrb[7].mxu0 }
 0x106   : > { %v1092_v28 = vpack.c.bf16 %v828_v21, %v827_v20  ;;  %v676_v29 = vadd.f32 %v1160_v22, %v1529_v2  ;;  %v1163_v30 = vadd.f32 %v1162_v27, %v1161_v24  ;;  %v1226_v31 = vpop.f32.mrb[7].mxu1 }
 0x107   : > { %v1227_v32 = vadd.f32 %v1226_v31, %v1225_v26 }
 0x108   : > { %1093 = vst [vmem:[%s1537_s10] sm:$0xff] %v1092_v28   ;;  %v773_v33 = vadd.f32 %v1224_v25, %v676_v29  ;;  %v679_v34 = vadd.f32 %v1163_v30, %v1529_v2 }
 0x10a   : > { %v776_v35 = vadd.f32 %v1227_v32, %v679_v34  ;;  %v1164_v36 = vpop.f32.mrb[8].mxu0  ;;  %v829_v39 = vmax.f32 %v773_v33, 0.0 }
 0x10b   : > { %v1228_v37 = vpop.f32.mrb[8].mxu1  ;;  %v1165_v38 = vpop.f32.mrb[9].mxu0 }
 0x10c   : > { %v830_v40 = vmax.f32 %v776_v35, 0.0  ;;  %v1166_v41 = vadd.f32 %v1165_v38, %v1164_v36  ;;  %v1229_v42 = vpop.f32.mrb[9].mxu1  ;;  %v1167_v43 = vpop.f32.mrb[10].mxu0 }
 0x10d   : > { %v1230_v44 = vadd.f32 %v1229_v42, %v1228_v37  ;;  %v1231_v45 = vpop.f32.mrb[10].mxu1  ;;  %v1168_v46 = vpop.f32.mrb[11].mxu0 }
 0x10e   : > { %v1097_v47 = vpack.c.bf16 %v830_v40, %v829_v39  ;;  %v684_v48 = vadd.f32 %v1166_v41, %v1529_v2  ;;  %v1169_v49 = vadd.f32 %v1168_v46, %v1167_v43  ;;  %v1232_v50 = vpop.f32.mrb[11].mxu1 }
 0x10f   : > { %v1233_v51 = vadd.f32 %v1232_v50, %v1231_v45 }
 0x110   : > { %1129 = vst [vmem:[%s1537_s10 + $0x8] sm:$0xff] %v1097_v47   ;;  %v781_v52 = vadd.f32 %v1230_v44, %v684_v48  ;;  %v687_v53 = vadd.f32 %v1169_v49, %v1529_v2 }
 0x112   : > { %v784_v54 = vadd.f32 %v1233_v51, %v687_v53  ;;  %v1170_v55 = vpop.f32.mrb[12].mxu0  ;;  %v831_v58 = vmax.f32 %v781_v52, 0.0 }
 0x113   : > { %v1234_v56 = vpop.f32.mrb[12].mxu1  ;;  %v1171_v57 = vpop.f32.mrb[13].mxu0 }
 0x114   : > { %v832_v59 = vmax.f32 %v784_v54, 0.0  ;;  %v1172_v60 = vadd.f32 %v1171_v57, %v1170_v55  ;;  %v1235_v61 = vpop.f32.mrb[13].mxu1  ;;  %v1173_v62 = vpop.f32.mrb[14].mxu0 }
 0x115   : > { %v1236_v63 = vadd.f32 %v1235_v61, %v1234_v56  ;;  %v1237_v0 = vpop.f32.mrb[14].mxu1  ;;  %v1174_v1 = vpop.f32.mrb[15].mxu0 }
 0x116   : > { %v1102_v3 = vpack.c.bf16 %v832_v59, %v831_v58  ;;  %v692_v4 = vadd.f32 %v1172_v60, %v1529_v2  ;;  %v1175_v5 = vadd.f32 %v1174_v1, %v1173_v62  ;;  %v1238_v6 = vpop.f32.mrb[15].mxu1 }
 0x117   : > { %v1239_v7 = vadd.f32 %v1238_v6, %v1237_v0 }
 0x118   : > { %1130 = vst [vmem:[%s1537_s10 + $0x10] sm:$0xff] %v1102_v3   ;;  %v789_v8 = vadd.f32 %v1236_v63, %v692_v4  ;;  %v695_v9 = vadd.f32 %v1175_v5, %v1529_v2 }
 0x11a   : > { %v792_v10 = vadd.f32 %v1239_v7, %v695_v9  ;;  %v1176_v11 = vpop.f32.mrb[16].mxu0  ;;  %v833_v14 = vmax.f32 %v789_v8, 0.0 }
 0x11b   : > { %v1240_v12 = vpop.f32.mrb[16].mxu1  ;;  %v1177_v13 = vpop.f32.mrb[17].mxu0 }
 0x11c   : > { %v834_v15 = vmax.f32 %v792_v10, 0.0  ;;  %v1178_v16 = vadd.f32 %v1177_v13, %v1176_v11  ;;  %v1241_v17 = vpop.f32.mrb[17].mxu1  ;;  %v1179_v18 = vpop.f32.mrb[18].mxu0 }
 0x11d   : > { %v1242_v19 = vadd.f32 %v1241_v17, %v1240_v12  ;;  %v1243_v20 = vpop.f32.mrb[18].mxu1  ;;  %v1180_v21 = vpop.f32.mrb[19].mxu0 }
 0x11e   : > { %v1107_v22 = vpack.c.bf16 %v834_v15, %v833_v14  ;;  %v700_v23 = vadd.f32 %v1178_v16, %v1529_v2  ;;  %v1181_v24 = vadd.f32 %v1180_v21, %v1179_v18  ;;  %v1244_v25 = vpop.f32.mrb[19].mxu1 }
 0x11f   : > { %v1245_v26 = vadd.f32 %v1244_v25, %v1243_v20 }
 0x120   : > { %1131 = vst [vmem:[%s1537_s10 + $0x18] sm:$0xff] %v1107_v22   ;;  %v797_v27 = vadd.f32 %v1242_v19, %v700_v23  ;;  %v703_v28 = vadd.f32 %v1181_v24, %v1529_v2 }
 0x122   : > { %v800_v29 = vadd.f32 %v1245_v26, %v703_v28  ;;  %v1182_v30 = vpop.f32.mrb[20].mxu0  ;;  %v835_v33 = vmax.f32 %v797_v27, 0.0 }
 0x123   : > { %v1246_v31 = vpop.f32.mrb[20].mxu1  ;;  %v1183_v32 = vpop.f32.mrb[21].mxu0 }
 0x124   : > { %v836_v34 = vmax.f32 %v800_v29, 0.0  ;;  %v1184_v35 = vadd.f32 %v1183_v32, %v1182_v30  ;;  %v1247_v36 = vpop.f32.mrb[21].mxu1  ;;  %v1185_v37 = vpop.f32.mrb[22].mxu0 }
 0x125   : > { %v1248_v38 = vadd.f32 %v1247_v36, %v1246_v31  ;;  %v1249_v39 = vpop.f32.mrb[22].mxu1  ;;  %v1186_v40 = vpop.f32.mrb[23].mxu0 }
 0x126   : > { %v1112_v41 = vpack.c.bf16 %v836_v34, %v835_v33  ;;  %v708_v42 = vadd.f32 %v1184_v35, %v1529_v2  ;;  %v1187_v43 = vadd.f32 %v1186_v40, %v1185_v37  ;;  %v1250_v44 = vpop.f32.mrb[23].mxu1 }
 0x127   : > { %v1251_v45 = vadd.f32 %v1250_v44, %v1249_v39 }
 0x128   : > { %1132 = vst [vmem:[%s1537_s10 + $0x20] sm:$0xff] %v1112_v41   ;;  %v805_v46 = vadd.f32 %v1248_v38, %v708_v42  ;;  %v711_v47 = vadd.f32 %v1187_v43, %v1529_v2 }
 0x12a   : > { %v808_v48 = vadd.f32 %v1251_v45, %v711_v47  ;;  %v1188_v49 = vpop.f32.mrb[24].mxu0  ;;  %v837_v52 = vmax.f32 %v805_v46, 0.0 }
 0x12b   : > { %v1252_v50 = vpop.f32.mrb[24].mxu1  ;;  %v1189_v51 = vpop.f32.mrb[25].mxu0 }
 0x12c   : > { %v838_v53 = vmax.f32 %v808_v48, 0.0  ;;  %v1190_v54 = vadd.f32 %v1189_v51, %v1188_v49  ;;  %v1253_v55 = vpop.f32.mrb[25].mxu1  ;;  %v1191_v56 = vpop.f32.mrb[26].mxu0 }
 0x12d   : > { %v1254_v57 = vadd.f32 %v1253_v55, %v1252_v50  ;;  %v1255_v58 = vpop.f32.mrb[26].mxu1  ;;  %v1192_v59 = vpop.f32.mrb[27].mxu0 }
 0x12e   : > { %v1117_v60 = vpack.c.bf16 %v838_v53, %v837_v52  ;;  %v716_v61 = vadd.f32 %v1190_v54, %v1529_v2  ;;  %v1193_v62 = vadd.f32 %v1192_v59, %v1191_v56  ;;  %v1256_v63 = vpop.f32.mrb[27].mxu1 }
 0x12f   : > { %v1257_v0 = vadd.f32 %v1256_v63, %v1255_v58 }
 0x130   : > { %1133 = vst [vmem:[%s1537_s10 + $0x28] sm:$0xff] %v1117_v60   ;;  %v813_v1 = vadd.f32 %v1254_v57, %v716_v61  ;;  %v719_v3 = vadd.f32 %v1193_v62, %v1529_v2 }
 0x132   : > { %v816_v4 = vadd.f32 %v1257_v0, %v719_v3  ;;  %v1194_v5 = vpop.f32.mrb[28].mxu0  ;;  %v839_v8 = vmax.f32 %v813_v1, 0.0 }
 0x133   : > { %v1258_v6 = vpop.f32.mrb[28].mxu1  ;;  %v1195_v7 = vpop.f32.mrb[29].mxu0 }
 0x134   : > { %v840_v9 = vmax.f32 %v816_v4, 0.0  ;;  %v1196_v10 = vadd.f32 %v1195_v7, %v1194_v5  ;;  %v1259_v11 = vpop.f32.mrb[29].mxu1  ;;  %v1197_v12 = vpop.f32.mrb[30].mxu0 }
 0x135   : > { %v1260_v13 = vadd.f32 %v1259_v11, %v1258_v6  ;;  %v1261_v14 = vpop.f32.mrb[30].mxu1  ;;  %v1198_v15 = vpop.f32.mrb[31].mxu0 }
 0x136   : > { %v1122_v16 = vpack.c.bf16 %v840_v9, %v839_v8  ;;  %v724_v17 = vadd.f32 %v1196_v10, %v1529_v2  ;;  %v1199_v18 = vadd.f32 %v1198_v15, %v1197_v12  ;;  %v1262_v19 = vpop.f32.mrb[31].mxu1 }
 0x137   : > { %v1263_v20 = vadd.f32 %v1262_v19, %v1261_v14 }
 0x138   : > { %1134 = vst [vmem:[%s1537_s10 + $0x30] sm:$0xff] %v1122_v16   ;;  %v821_v21 = vadd.f32 %v1260_v13, %v724_v17  ;;  %v727_v22 = vadd.f32 %v1199_v18, %v1529_v2 }
 0x13a   : > { %v824_v23 = vadd.f32 %v1263_v20, %v727_v22  ;;  %v841_v24 = vmax.f32 %v821_v21, 0.0 }
 0x13c   : > { %v842_v25 = vmax.f32 %v824_v23, 0.0 }
 0x13e   : > { %v1127_v26 = vpack.c.bf16 %v842_v25, %v841_v24 }
 0x140   : > { %1135 = vst [vmem:[%s1537_s10 + $0x38] sm:$0xff] %v1127_v26  }
 0x141 PF: > { %s13_s12 = sadd.s32 1, %s1358_s12  }
 0x142   : > { %p10_p4 = scmp.ge.s32.totalorder %s13_s12, 6  }
 0x144   :  { %12 = sbr.rel (!%p10_p4) target bundleno = 1 (0x1), region = 62 }

// kernel: factor_vae2_forward.11
= control target key start
LH: loop header
LB: loop body
LE: loop exit
PB: predicated region body
PF: predicated region fallthrough
CT: control target
= control target key end

     0   :  { %s1373_s1 = inlined_call_operand.vmem [shape: bf16[512,128], index: 1, kind: input, shape index: {}]   ;;  %s1374_s0 = inlined_call_operand.vmem [shape: bf16[128,512], index: 0, kind: input, shape index: {}]   ;;  %s1375_s2 = inlined_call_operand.vmem [shape: f32[1,128], index: 2, kind: input, shape index: {}]   ;;  %s1376_s3 = inlined_call_operand.vmem [shape: bf16[128,128], index: 3, kind: output, shape index: {}]  }
   0x1   :  { %v1036_v0 = vld [vmem:[%s1373_s1 + $0x40] sm:$0xff]   ;;  %v1040_v4 = vld [vmem:[%s1373_s1 + $0x48] sm:$0xff]   ;;  %v1044_v8 = vld [vmem:[%s1373_s1 + $0x50] sm:$0xff]  }
   0x2   :  { %v1037_v1 = vld [vmem:[%s1373_s1 + $0xc0] sm:$0xff]   ;;  %908 = vmatprep.subr.bf16.mxu0 %v1036_v0  ;;  %v1041_v5 = vld [vmem:[%s1373_s1 + $0xc8] sm:$0xff]   ;;  %v1045_v9 = vld [vmem:[%s1373_s1 + $0xd0] sm:$0xff]  }
   0x3   :  { %v1038_v2 = vld [vmem:[%s1373_s1] sm:$0xff]   ;;  %972 = vmatprep.subr.bf16.mxu1 %v1037_v1  ;;  %v1042_v6 = vld [vmem:[%s1373_s1 + $0x8] sm:$0xff]   ;;  %v1046_v10 = vld [vmem:[%s1373_s1 + $0x10] sm:$0xff]  }
   0x4   :  { %v1039_v3 = vld [vmem:[%s1373_s1 + $0x80] sm:$0xff]   ;;  %909 = vmatpush3.bf16.msra.mxu0 %v1038_v2  ;;  %v1043_v7 = vld [vmem:[%s1373_s1 + $0x88] sm:$0xff]   ;;  %v1047_v11 = vld [vmem:[%s1373_s1 + $0x90] sm:$0xff]  }
   0x5   :  { %973 = vmatpush3.bf16.msra.mxu1 %v1039_v3  ;;  %910 = vmatprep.subr.bf16.mxu0 %v1040_v4  ;;  %v1048_v12 = vld [vmem:[%s1373_s1 + $0x58] sm:$0xff]   ;;  %v1052_v16 = vld [vmem:[%s1373_s1 + $0x60] sm:$0xff]   ;;  %v1056_v20 = vld [vmem:[%s1373_s1 + $0x68] sm:$0xff]  }
   0x6   :  { %974 = vmatprep.subr.bf16.mxu1 %v1041_v5  ;;  %v1049_v13 = vld [vmem:[%s1373_s1 + $0xd8] sm:$0xff]   ;;  %v1053_v17 = vld [vmem:[%s1373_s1 + $0xe0] sm:$0xff]   ;;  %v1057_v21 = vld [vmem:[%s1373_s1 + $0xe8] sm:$0xff]  }
   0x7   :  { %v1050_v14 = vld [vmem:[%s1373_s1 + $0x18] sm:$0xff]   ;;  %v1054_v18 = vld [vmem:[%s1373_s1 + $0x20] sm:$0xff]   ;;  %v1058_v22 = vld [vmem:[%s1373_s1 + $0x28] sm:$0xff]  }
   0x8   :  { %911 = vmatpush3.bf16.msra.mxu0 %v1042_v6  ;;  %v1051_v15 = vld [vmem:[%s1373_s1 + $0x98] sm:$0xff]   ;;  %v1055_v19 = vld [vmem:[%s1373_s1 + $0xa0] sm:$0xff]   ;;  %v1059_v23 = vld [vmem:[%s1373_s1 + $0xa8] sm:$0xff]  }
   0x9   :  { %975 = vmatpush3.bf16.msra.mxu1 %v1043_v7  ;;  %912 = vmatprep.subr.bf16.mxu0 %v1044_v8  ;;  %v1060_v24 = vld [vmem:[%s1373_s1 + $0x70] sm:$0xff]   ;;  %v1064_v28 = vld [vmem:[%s1373_s1 + $0x78] sm:$0xff]   ;;  %v1331_v2 = vld [vmem:[%s1375_s2] ss:$0 sm:$0xff] }
   0xa   :  { %976 = vmatprep.subr.bf16.mxu1 %v1045_v9  ;;  %v1061_v25 = vld [vmem:[%s1373_s1 + $0xf0] sm:$0xff]   ;;  %v1065_v29 = vld [vmem:[%s1373_s1 + $0xf8] sm:$0xff]  }
   0xb   :  { %v1062_v26 = vld [vmem:[%s1373_s1 + $0x30] sm:$0xff]   ;;  %v1066_v30 = vld [vmem:[%s1373_s1 + $0x38] sm:$0xff]  }
   0xc   :  { %913 = vmatpush3.bf16.msra.mxu0 %v1046_v10  ;;  %v1063_v27 = vld [vmem:[%s1373_s1 + $0xb0] sm:$0xff]   ;;  %v1067_v31 = vld [vmem:[%s1373_s1 + $0xb8] sm:$0xff]  }
   0xd   :  { %977 = vmatpush3.bf16.msra.mxu1 %v1047_v11  ;;  %914 = vmatprep.subr.bf16.mxu0 %v1048_v12  ;;  %v1068_v32 = vld [vmem:[%s1374_s0] ss:$16 sps:$4 sm:$0xff]   ;;  %v1070_v33 = vld [vmem:[%s1374_s0 + $0x4] ss:$16 sps:$4 sm:$0xff]   ;;  %v1071_v34 = vld [vmem:[%s1374_s0 + $0x8] ss:$16 sps:$4 sm:$0xff]  }
   0xe   :  { %978 = vmatprep.subr.bf16.mxu1 %v1049_v13  ;;  %v1073_v35 = vld [vmem:[%s1374_s0 + $0xc] ss:$16 sps:$4 sm:$0xff]   ;;  %502 = vmatprep.mubr.bf16.mxu0 %v1070_v33  ;;  %v1074_v36 = vld [vmem:[%s1374_s0 + $0x24] ss:$16 sps:$4 sm:$0xff]   ;;  %v1078_v38 = vld [vmem:[%s1374_s0 + $0x20] ss:$16 sps:$4 sm:$0xff]  }
   0xf   :  { %599 = vmatprep.mubr.bf16.mxu1 %v1073_v35  ;;  %v1076_v37 = vld [vmem:[%s1374_s0 + $0x2c] ss:$16 sps:$4 sm:$0xff]   ;;  %v1079_v39 = vld [vmem:[%s1374_s0 + $0x28] ss:$16 sps:$4 sm:$0xff]   ;;  %v1080_v40 = vld [vmem:[%s1374_s0 + $0x44] ss:$16 sps:$4 sm:$0xff]  }
  0x10   :  { %915 = vmatpush3.bf16.msra.mxu0 %v1050_v14  ;;  %v1082_v41 = vld [vmem:[%s1374_s0 + $0x4c] ss:$16 sps:$4 sm:$0xff]   ;;  %v1084_v42 = vld [vmem:[%s1374_s0 + $0x40] ss:$16 sps:$4 sm:$0xff]   ;;  %v1085_v43 = vld [vmem:[%s1374_s0 + $0x48] ss:$16 sps:$4 sm:$0xff]  }
  0x11   :  { %979 = vmatpush3.bf16.msra.mxu1 %v1051_v15  ;;  %916 = vmatprep.subr.bf16.mxu0 %v1052_v16  ;;  %v1086_v44 = vld [vmem:[%s1374_s0 + $0x64] ss:$16 sps:$4 sm:$0xff]   ;;  %v1088_v45 = vld [vmem:[%s1374_s0 + $0x6c] ss:$16 sps:$4 sm:$0xff]   ;;  %v1090_v46 = vld [vmem:[%s1374_s0 + $0x60] ss:$16 sps:$4 sm:$0xff]  }
  0x12   :  { %980 = vmatprep.subr.bf16.mxu1 %v1053_v17  ;;  %v1091_v47 = vld [vmem:[%s1374_s0 + $0x68] ss:$16 sps:$4 sm:$0xff]   ;;  %v1092_v48 = vld [vmem:[%s1374_s0 + $0x84] ss:$16 sps:$4 sm:$0xff]   ;;  %v1094_v49 = vld [vmem:[%s1374_s0 + $0x8c] ss:$16 sps:$4 sm:$0xff]  }
  0x13   :  { %v1096_v50 = vld [vmem:[%s1374_s0 + $0x80] ss:$16 sps:$4 sm:$0xff]   ;;  %v1097_v51 = vld [vmem:[%s1374_s0 + $0x88] ss:$16 sps:$4 sm:$0xff]   ;;  %v1098_v52 = vld [vmem:[%s1374_s0 + $0xa4] ss:$16 sps:$4 sm:$0xff]  }
  0x14   :  { %917 = vmatpush3.bf16.msra.mxu0 %v1054_v18  ;;  %v1100_v53 = vld [vmem:[%s1374_s0 + $0xac] ss:$16 sps:$4 sm:$0xff]   ;;  %v1102_v54 = vld [vmem:[%s1374_s0 + $0xa0] ss:$16 sps:$4 sm:$0xff]   ;;  %v1103_v55 = vld [vmem:[%s1374_s0 + $0xa8] ss:$16 sps:$4 sm:$0xff]  }
  0x15   :  { %981 = vmatpush3.bf16.msra.mxu1 %v1055_v19  ;;  %918 = vmatprep.subr.bf16.mxu0 %v1056_v20  ;;  %v1104_v56 = vld [vmem:[%s1374_s0 + $0xc4] ss:$16 sps:$4 sm:$0xff]   ;;  %v1106_v57 = vld [vmem:[%s1374_s0 + $0xcc] ss:$16 sps:$4 sm:$0xff]   ;;  %v1108_v58 = vld [vmem:[%s1374_s0 + $0xc0] ss:$16 sps:$4 sm:$0xff]  }
  0x16   :  { %982 = vmatprep.subr.bf16.mxu1 %v1057_v21  ;;  %v1109_v59 = vld [vmem:[%s1374_s0 + $0xc8] ss:$16 sps:$4 sm:$0xff]   ;;  %v1110_v60 = vld [vmem:[%s1374_s0 + $0xe4] ss:$16 sps:$4 sm:$0xff]   ;;  %v1112_v61 = vld [vmem:[%s1374_s0 + $0xec] ss:$16 sps:$4 sm:$0xff]  }
  0x17   :  { %v1114_v62 = vld [vmem:[%s1374_s0 + $0xe0] ss:$16 sps:$4 sm:$0xff]   ;;  %v1115_v63 = vld [vmem:[%s1374_s0 + $0xe8] ss:$16 sps:$4 sm:$0xff]  }
  0x18   :  { %919 = vmatpush3.bf16.msra.mxu0 %v1058_v22 }
  0x19   :  { %983 = vmatpush3.bf16.msra.mxu1 %v1059_v23  ;;  %920 = vmatprep.subr.bf16.mxu0 %v1060_v24 }
  0x1a   :  { %984 = vmatprep.subr.bf16.mxu1 %v1061_v25 }
  0x1c   :  { %921 = vmatpush3.bf16.msra.mxu0 %v1062_v26 }
  0x1d   :  { %985 = vmatpush3.bf16.msra.mxu1 %v1063_v27  ;;  %922 = vmatprep.subr.bf16.mxu0 %v1064_v28 }
  0x1e   :  { %986 = vmatprep.subr.bf16.mxu1 %v1065_v29 }
  0x20   :  { %923 = vmatpush3.bf16.msra.mxu0 %v1066_v30 }
  0x21   :  { %987 = vmatpush3.bf16.msra.mxu1 %v1067_v31 }
  0x23   :  { %503 = vmatmul.mubr.bf16.vlgmr.msra.gmra.mrb[0].mxu0 %v1068_v32 }
  0x24   :  { %600 = vmatmul.mubr.bf16.vlgmr.msra.gmra.mrb[0].mxu1 %v1071_v34  ;;  %510 = vmatprep.mubr.bf16.mxu0 %v1074_v36 }
  0x25   :  { %607 = vmatprep.mubr.bf16.mxu1 %v1076_v37 }
  0x2b   :  { %511 = vmatmul.mubr.bf16.gmra.mrb[4].mxu0 %v1078_v38 }
  0x2c   :  { %608 = vmatmul.mubr.bf16.gmra.mrb[4].mxu1 %v1079_v39  ;;  %518 = vmatprep.mubr.bf16.mxu0 %v1080_v40 }
  0x2d   :  { %615 = vmatprep.mubr.bf16.mxu1 %v1082_v41 }
  0x33   :  { %519 = vmatmul.mubr.bf16.gmra.mrb[8].mxu0 %v1084_v42 }
  0x34   :  { %616 = vmatmul.mubr.bf16.gmra.mrb[8].mxu1 %v1085_v43  ;;  %526 = vmatprep.mubr.bf16.mxu0 %v1086_v44 }
  0x35   :  { %623 = vmatprep.mubr.bf16.mxu1 %v1088_v45 }
  0x3b   :  { %527 = vmatmul.mubr.bf16.gmra.mrb[12].mxu0 %v1090_v46 }
  0x3c   :  { %624 = vmatmul.mubr.bf16.gmra.mrb[12].mxu1 %v1091_v47  ;;  %534 = vmatprep.mubr.bf16.mxu0 %v1092_v48 }
  0x3d   :  { %631 = vmatprep.mubr.bf16.mxu1 %v1094_v49 }
  0x43   :  { %535 = vmatmul.mubr.bf16.gmra.mrb[16].mxu0 %v1096_v50 }
  0x44   :  { %632 = vmatmul.mubr.bf16.gmra.mrb[16].mxu1 %v1097_v51  ;;  %542 = vmatprep.mubr.bf16.mxu0 %v1098_v52 }
  0x45   :  { %639 = vmatprep.mubr.bf16.mxu1 %v1100_v53 }
  0x4b   :  { %543 = vmatmul.mubr.bf16.gmra.mrb[20].mxu0 %v1102_v54 }
  0x4c   :  { %640 = vmatmul.mubr.bf16.gmra.mrb[20].mxu1 %v1103_v55  ;;  %550 = vmatprep.mubr.bf16.mxu0 %v1104_v56 }
  0x4d   :  { %647 = vmatprep.mubr.bf16.mxu1 %v1106_v57 }
  0x53   :  { %551 = vmatmul.mubr.bf16.gmra.mrb[24].mxu0 %v1108_v58 }
  0x54   :  { %648 = vmatmul.mubr.bf16.gmra.mrb[24].mxu1 %v1109_v59  ;;  %558 = vmatprep.mubr.bf16.mxu0 %v1110_v60 }
  0x55   :  { %655 = vmatprep.mubr.bf16.mxu1 %v1112_v61 }
  0x5b   :  { %559 = vmatmul.mubr.bf16.gmra.mrb[28].mxu0 %v1114_v62 }
  0x5c   :  { %656 = vmatmul.mubr.bf16.gmra.mrb[28].mxu1 %v1115_v63 }
  0xf6   :  { %v924_v0 = vpop.f32.mrb[0].mxu0 }
  0xf7   :  { %v988_v1 = vpop.f32.mrb[0].mxu1  ;;  %v925_v3 = vpop.f32.mrb[1].mxu0 }
  0xf8   :  { %v926_v4 = vadd.f32 %v925_v3, %v924_v0  ;;  %v989_v5 = vpop.f32.mrb[1].mxu1  ;;  %v927_v6 = vpop.f32.mrb[2].mxu0 }
  0xf9   :  { %v990_v7 = vadd.f32 %v989_v5, %v988_v1  ;;  %v991_v8 = vpop.f32.mrb[2].mxu1  ;;  %v928_v9 = vpop.f32.mrb[3].mxu0 }
  0xfa   :  { %v505_v10 = vadd.f32 %v926_v4, %v1331_v2  ;;  %v929_v11 = vadd.f32 %v928_v9, %v927_v6  ;;  %v992_v12 = vpop.f32.mrb[3].mxu1 }
  0xfb   :  { %v993_v13 = vadd.f32 %v992_v12, %v991_v8 }
  0xfc   :  { %v602_v14 = vadd.f32 %v990_v7, %v505_v10  ;;  %v508_v15 = vadd.f32 %v929_v11, %v1331_v2 }
  0xfe   :  { %v605_v16 = vadd.f32 %v993_v13, %v508_v15  ;;  %v930_v17 = vpop.f32.mrb[4].mxu0  ;;  %v664_v20 = vmax.f32 %v602_v14, 0.0 }
  0xff   :  { %v994_v18 = vpop.f32.mrb[4].mxu1  ;;  %v931_v19 = vpop.f32.mrb[5].mxu0 }
 0x100   :  { %v665_v21 = vmax.f32 %v605_v16, 0.0  ;;  %v932_v22 = vadd.f32 %v931_v19, %v930_v17  ;;  %v995_v23 = vpop.f32.mrb[5].mxu1  ;;  %v933_v24 = vpop.f32.mrb[6].mxu0 }
 0x101   :  { %v996_v25 = vadd.f32 %v995_v23, %v994_v18  ;;  %v997_v26 = vpop.f32.mrb[6].mxu1  ;;  %v934_v27 = vpop.f32.mrb[7].mxu0 }
 0x102   :  { %v864_v28 = vpack.c.bf16 %v665_v21, %v664_v20  ;;  %v513_v29 = vadd.f32 %v932_v22, %v1331_v2  ;;  %v935_v30 = vadd.f32 %v934_v27, %v933_v24  ;;  %v998_v31 = vpop.f32.mrb[7].mxu1 }
 0x103   :  { %v999_v32 = vadd.f32 %v998_v31, %v997_v26 }
 0x104   :  { %865 = vst [vmem:[%s1376_s3] sm:$0xff] %v864_v28   ;;  %v610_v33 = vadd.f32 %v996_v25, %v513_v29  ;;  %v516_v34 = vadd.f32 %v935_v30, %v1331_v2 }
 0x106   :  { %v613_v35 = vadd.f32 %v999_v32, %v516_v34  ;;  %v936_v36 = vpop.f32.mrb[8].mxu0  ;;  %v666_v39 = vmax.f32 %v610_v33, 0.0 }
 0x107   :  { %v1000_v37 = vpop.f32.mrb[8].mxu1  ;;  %v937_v38 = vpop.f32.mrb[9].mxu0 }
 0x108   :  { %v667_v40 = vmax.f32 %v613_v35, 0.0  ;;  %v938_v41 = vadd.f32 %v937_v38, %v936_v36  ;;  %v1001_v42 = vpop.f32.mrb[9].mxu1  ;;  %v939_v43 = vpop.f32.mrb[10].mxu0 }
 0x109   :  { %v1002_v44 = vadd.f32 %v1001_v42, %v1000_v37  ;;  %v1003_v45 = vpop.f32.mrb[10].mxu1  ;;  %v940_v46 = vpop.f32.mrb[11].mxu0 }
 0x10a   :  { %v869_v47 = vpack.c.bf16 %v667_v40, %v666_v39  ;;  %v521_v48 = vadd.f32 %v938_v41, %v1331_v2  ;;  %v941_v49 = vadd.f32 %v940_v46, %v939_v43  ;;  %v1004_v50 = vpop.f32.mrb[11].mxu1 }
 0x10b   :  { %v1005_v51 = vadd.f32 %v1004_v50, %v1003_v45 }
 0x10c   :  { %901 = vst [vmem:[%s1376_s3 + $0x8] sm:$0xff] %v869_v47   ;;  %v618_v52 = vadd.f32 %v1002_v44, %v521_v48  ;;  %v524_v53 = vadd.f32 %v941_v49, %v1331_v2 }
 0x10e   :  { %v621_v54 = vadd.f32 %v1005_v51, %v524_v53  ;;  %v942_v55 = vpop.f32.mrb[12].mxu0  ;;  %v668_v58 = vmax.f32 %v618_v52, 0.0 }
 0x10f   :  { %v1006_v56 = vpop.f32.mrb[12].mxu1  ;;  %v943_v57 = vpop.f32.mrb[13].mxu0 }
 0x110   :  { %v669_v59 = vmax.f32 %v621_v54, 0.0  ;;  %v944_v60 = vadd.f32 %v943_v57, %v942_v55  ;;  %v1007_v61 = vpop.f32.mrb[13].mxu1  ;;  %v945_v62 = vpop.f32.mrb[14].mxu0 }
 0x111   :  { %v1008_v63 = vadd.f32 %v1007_v61, %v1006_v56  ;;  %v1009_v0 = vpop.f32.mrb[14].mxu1  ;;  %v946_v1 = vpop.f32.mrb[15].mxu0 }
 0x112   :  { %v874_v3 = vpack.c.bf16 %v669_v59, %v668_v58  ;;  %v529_v4 = vadd.f32 %v944_v60, %v1331_v2  ;;  %v947_v5 = vadd.f32 %v946_v1, %v945_v62  ;;  %v1010_v6 = vpop.f32.mrb[15].mxu1 }
 0x113   :  { %v1011_v7 = vadd.f32 %v1010_v6, %v1009_v0 }
 0x114   :  { %902 = vst [vmem:[%s1376_s3 + $0x10] sm:$0xff] %v874_v3   ;;  %v626_v8 = vadd.f32 %v1008_v63, %v529_v4  ;;  %v532_v9 = vadd.f32 %v947_v5, %v1331_v2 }
 0x116   :  { %v629_v10 = vadd.f32 %v1011_v7, %v532_v9  ;;  %v948_v11 = vpop.f32.mrb[16].mxu0  ;;  %v670_v14 = vmax.f32 %v626_v8, 0.0 }
 0x117   :  { %v1012_v12 = vpop.f32.mrb[16].mxu1  ;;  %v949_v13 = vpop.f32.mrb[17].mxu0 }
 0x118   :  { %v671_v15 = vmax.f32 %v629_v10, 0.0  ;;  %v950_v16 = vadd.f32 %v949_v13, %v948_v11  ;;  %v1013_v17 = vpop.f32.mrb[17].mxu1  ;;  %v951_v18 = vpop.f32.mrb[18].mxu0 }
 0x119   :  { %v1014_v19 = vadd.f32 %v1013_v17, %v1012_v12  ;;  %v1015_v20 = vpop.f32.mrb[18].mxu1  ;;  %v952_v21 = vpop.f32.mrb[19].mxu0 }
 0x11a   :  { %v879_v22 = vpack.c.bf16 %v671_v15, %v670_v14  ;;  %v537_v23 = vadd.f32 %v950_v16, %v1331_v2  ;;  %v953_v24 = vadd.f32 %v952_v21, %v951_v18  ;;  %v1016_v25 = vpop.f32.mrb[19].mxu1 }
 0x11b   :  { %v1017_v26 = vadd.f32 %v1016_v25, %v1015_v20 }
 0x11c   :  { %903 = vst [vmem:[%s1376_s3 + $0x18] sm:$0xff] %v879_v22   ;;  %v634_v27 = vadd.f32 %v1014_v19, %v537_v23  ;;  %v540_v28 = vadd.f32 %v953_v24, %v1331_v2 }
 0x11e   :  { %v637_v29 = vadd.f32 %v1017_v26, %v540_v28  ;;  %v954_v30 = vpop.f32.mrb[20].mxu0  ;;  %v672_v33 = vmax.f32 %v634_v27, 0.0 }
 0x11f   :  { %v1018_v31 = vpop.f32.mrb[20].mxu1  ;;  %v955_v32 = vpop.f32.mrb[21].mxu0 }
 0x120   :  { %v673_v34 = vmax.f32 %v637_v29, 0.0  ;;  %v956_v35 = vadd.f32 %v955_v32, %v954_v30  ;;  %v1019_v36 = vpop.f32.mrb[21].mxu1  ;;  %v957_v37 = vpop.f32.mrb[22].mxu0 }
 0x121   :  { %v1020_v38 = vadd.f32 %v1019_v36, %v1018_v31  ;;  %v1021_v39 = vpop.f32.mrb[22].mxu1  ;;  %v958_v40 = vpop.f32.mrb[23].mxu0 }
 0x122   :  { %v884_v41 = vpack.c.bf16 %v673_v34, %v672_v33  ;;  %v545_v42 = vadd.f32 %v956_v35, %v1331_v2  ;;  %v959_v43 = vadd.f32 %v958_v40, %v957_v37  ;;  %v1022_v44 = vpop.f32.mrb[23].mxu1 }
 0x123   :  { %v1023_v45 = vadd.f32 %v1022_v44, %v1021_v39 }
 0x124   :  { %904 = vst [vmem:[%s1376_s3 + $0x20] sm:$0xff] %v884_v41   ;;  %v642_v46 = vadd.f32 %v1020_v38, %v545_v42  ;;  %v548_v47 = vadd.f32 %v959_v43, %v1331_v2 }
 0x126   :  { %v645_v48 = vadd.f32 %v1023_v45, %v548_v47  ;;  %v960_v49 = vpop.f32.mrb[24].mxu0  ;;  %v674_v52 = vmax.f32 %v642_v46, 0.0 }
 0x127   :  { %v1024_v50 = vpop.f32.mrb[24].mxu1  ;;  %v961_v51 = vpop.f32.mrb[25].mxu0 }
 0x128   :  { %v675_v53 = vmax.f32 %v645_v48, 0.0  ;;  %v962_v54 = vadd.f32 %v961_v51, %v960_v49  ;;  %v1025_v55 = vpop.f32.mrb[25].mxu1  ;;  %v963_v56 = vpop.f32.mrb[26].mxu0 }
 0x129   :  { %v1026_v57 = vadd.f32 %v1025_v55, %v1024_v50  ;;  %v1027_v58 = vpop.f32.mrb[26].mxu1  ;;  %v964_v59 = vpop.f32.mrb[27].mxu0 }
 0x12a   :  { %v889_v60 = vpack.c.bf16 %v675_v53, %v674_v52  ;;  %v553_v61 = vadd.f32 %v962_v54, %v1331_v2  ;;  %v965_v62 = vadd.f32 %v964_v59, %v963_v56  ;;  %v1028_v63 = vpop.f32.mrb[27].mxu1 }
 0x12b   :  { %v1029_v0 = vadd.f32 %v1028_v63, %v1027_v58 }
 0x12c   :  { %905 = vst [vmem:[%s1376_s3 + $0x28] sm:$0xff] %v889_v60   ;;  %v650_v1 = vadd.f32 %v1026_v57, %v553_v61  ;;  %v556_v3 = vadd.f32 %v965_v62, %v1331_v2 }
 0x12e   :  { %v653_v4 = vadd.f32 %v1029_v0, %v556_v3  ;;  %v966_v5 = vpop.f32.mrb[28].mxu0  ;;  %v676_v8 = vmax.f32 %v650_v1, 0.0 }
 0x12f   :  { %v1030_v6 = vpop.f32.mrb[28].mxu1  ;;  %v967_v7 = vpop.f32.mrb[29].mxu0 }
 0x130   :  { %v677_v9 = vmax.f32 %v653_v4, 0.0  ;;  %v968_v10 = vadd.f32 %v967_v7, %v966_v5  ;;  %v1031_v11 = vpop.f32.mrb[29].mxu1  ;;  %v969_v12 = vpop.f32.mrb[30].mxu0 }
 0x131   :  { %v1032_v13 = vadd.f32 %v1031_v11, %v1030_v6  ;;  %v1033_v14 = vpop.f32.mrb[30].mxu1  ;;  %v970_v15 = vpop.f32.mrb[31].mxu0 }
 0x132   :  { %v894_v16 = vpack.c.bf16 %v677_v9, %v676_v8  ;;  %v561_v17 = vadd.f32 %v968_v10, %v1331_v2  ;;  %v971_v18 = vadd.f32 %v970_v15, %v969_v12  ;;  %v1034_v19 = vpop.f32.mrb[31].mxu1 }
 0x133   :  { %v1035_v20 = vadd.f32 %v1034_v19, %v1033_v14 }
 0x134   :  { %906 = vst [vmem:[%s1376_s3 + $0x30] sm:$0xff] %v894_v16   ;;  %v658_v21 = vadd.f32 %v1032_v13, %v561_v17  ;;  %v564_v22 = vadd.f32 %v971_v18, %v1331_v2 }
 0x136   :  { %v661_v23 = vadd.f32 %v1035_v20, %v564_v22  ;;  %v678_v24 = vmax.f32 %v658_v21, 0.0 }
 0x138   :  { %v679_v25 = vmax.f32 %v661_v23, 0.0 }
 0x13a   :  { %v899_v26 = vpack.c.bf16 %v679_v25, %v678_v24 }
 0x13c   :  { %907 = vst [vmem:[%s1376_s3 + $0x38] sm:$0xff] %v899_v26  }

// kernel: factor_vae2_forward.12
= control target key start
LH: loop header
LB: loop body
LE: loop exit
PB: predicated region body
PF: predicated region fallthrough
CT: control target
= control target key end

     0   :  { %s1399_s1 = inlined_call_operand.vmem [shape: bf16[1024,128], index: 1, kind: input, shape index: {}]   ;;  %s1400_s0 = inlined_call_operand.vmem [shape: bf16[32,1024], index: 0, kind: input, shape index: {}]   ;;  %s1401_s2 = inlined_call_operand.vmem [shape: f32[1,128], index: 2, kind: input, shape index: {}]   ;;  %s1402_s3 = inlined_call_operand.vmem [shape: bf16[32,128], index: 3, kind: output, shape index: {}]  }
   0x1   :  { %v1066_v0 = vld [vmem:[%s1399_s1 + $0x40] sm:$0xff]   ;;  %v1070_v4 = vld [vmem:[%s1399_s1 + $0x48] sm:$0xff]   ;;  %v1074_v8 = vld [vmem:[%s1399_s1 + $0x50] sm:$0xff]  }
   0x2   :  { %v1067_v1 = vld [vmem:[%s1399_s1 + $0xc0] sm:$0xff]   ;;  %954 = vmatprep.subr.bf16.mxu0 %v1066_v0  ;;  %v1071_v5 = vld [vmem:[%s1399_s1 + $0xc8] sm:$0xff]   ;;  %v1075_v9 = vld [vmem:[%s1399_s1 + $0xd0] sm:$0xff]  }
   0x3   :  { %v1068_v2 = vld [vmem:[%s1399_s1] sm:$0xff]   ;;  %982 = vmatprep.subr.bf16.mxu1 %v1067_v1  ;;  %v1072_v6 = vld [vmem:[%s1399_s1 + $0x8] sm:$0xff]   ;;  %v1076_v10 = vld [vmem:[%s1399_s1 + $0x10] sm:$0xff]  }
   0x4   :  { %v1069_v3 = vld [vmem:[%s1399_s1 + $0x80] sm:$0xff]   ;;  %955 = vmatpush3.bf16.msra.mxu0 %v1068_v2  ;;  %v1073_v7 = vld [vmem:[%s1399_s1 + $0x88] sm:$0xff]   ;;  %v1077_v11 = vld [vmem:[%s1399_s1 + $0x90] sm:$0xff]  }
   0x5   :  { %983 = vmatpush3.bf16.msra.mxu1 %v1069_v3  ;;  %956 = vmatprep.subr.bf16.mxu0 %v1070_v4  ;;  %v1078_v12 = vld [vmem:[%s1399_s1 + $0x58] sm:$0xff]   ;;  %v1082_v16 = vld [vmem:[%s1399_s1 + $0x60] sm:$0xff]   ;;  %v1086_v20 = vld [vmem:[%s1399_s1 + $0x68] sm:$0xff]  }
   0x6   :  { %984 = vmatprep.subr.bf16.mxu1 %v1071_v5  ;;  %v1079_v13 = vld [vmem:[%s1399_s1 + $0xd8] sm:$0xff]   ;;  %v1083_v17 = vld [vmem:[%s1399_s1 + $0xe0] sm:$0xff]   ;;  %v1087_v21 = vld [vmem:[%s1399_s1 + $0xe8] sm:$0xff]  }
   0x7   :  { %v1080_v14 = vld [vmem:[%s1399_s1 + $0x18] sm:$0xff]   ;;  %v1084_v18 = vld [vmem:[%s1399_s1 + $0x20] sm:$0xff]   ;;  %v1088_v22 = vld [vmem:[%s1399_s1 + $0x28] sm:$0xff]  }
   0x8   :  { %957 = vmatpush3.bf16.msra.mxu0 %v1072_v6  ;;  %v1081_v15 = vld [vmem:[%s1399_s1 + $0x98] sm:$0xff]   ;;  %v1085_v19 = vld [vmem:[%s1399_s1 + $0xa0] sm:$0xff]   ;;  %v1089_v23 = vld [vmem:[%s1399_s1 + $0xa8] sm:$0xff]  }
   0x9   :  { %985 = vmatpush3.bf16.msra.mxu1 %v1073_v7  ;;  %958 = vmatprep.subr.bf16.mxu0 %v1074_v8  ;;  %v1090_v24 = vld [vmem:[%s1399_s1 + $0x70] sm:$0xff]   ;;  %v1094_v28 = vld [vmem:[%s1399_s1 + $0x78] sm:$0xff]   ;;  %v15_v32 = vld [vmem:[%s1400_s0] sm:$0xff] }
   0xa   :  { %986 = vmatprep.subr.bf16.mxu1 %v1075_v9  ;;  %v1091_v25 = vld [vmem:[%s1399_s1 + $0xf0] sm:$0xff]   ;;  %v1095_v29 = vld [vmem:[%s1399_s1 + $0xf8] sm:$0xff]   ;;  %v19_v33 = vld [vmem:[%s1400_s0 + $0x20] sm:$0xff] }
   0xb   :  { %v1092_v26 = vld [vmem:[%s1399_s1 + $0x30] sm:$0xff]   ;;  %v1096_v30 = vld [vmem:[%s1399_s1 + $0x38] sm:$0xff]   ;;  %v16_v34 = vld [vmem:[%s1400_s0 + $0x8] sm:$0xff]  ;;  %v855_v35 = vcombine.low %v15_v32, %v19_v33  ;;  %v856_v36 = vcombine.high %v15_v32, %v19_v33 }
   0xc   :  { %959 = vmatpush3.bf16.msra.mxu0 %v1076_v10  ;;  %v1093_v27 = vld [vmem:[%s1399_s1 + $0xb0] sm:$0xff]   ;;  %v1097_v31 = vld [vmem:[%s1399_s1 + $0xb8] sm:$0xff]   ;;  %v20_v37 = vld [vmem:[%s1400_s0 + $0x28] sm:$0xff] }
   0xd   :  { %987 = vmatpush3.bf16.msra.mxu1 %v1077_v11  ;;  %960 = vmatprep.subr.bf16.mxu0 %v1078_v12  ;;  %v857_v38 = vcombine.low %v16_v34, %v20_v37  ;;  %v858_v39 = vcombine.high %v16_v34, %v20_v37  ;;  %v1098_v40 = vld [vmem:[%s1399_s1 + $0x140] sm:$0xff]   ;;  %v1102_v44 = vld [vmem:[%s1399_s1 + $0x148] sm:$0xff]   ;;  %v1106_v48 = vld [vmem:[%s1399_s1 + $0x150] sm:$0xff]  }
   0xe   :  { %988 = vmatprep.subr.bf16.mxu1 %v1079_v13  ;;  %662 = vmatprep.mubr.bf16.mxu0 %v856_v36  ;;  %v1099_v41 = vld [vmem:[%s1399_s1 + $0x1c0] sm:$0xff]   ;;  %v1103_v45 = vld [vmem:[%s1399_s1 + $0x1c8] sm:$0xff]   ;;  %v1107_v49 = vld [vmem:[%s1399_s1 + $0x1d0] sm:$0xff]  }
   0xf   :  { %711 = vmatprep.mubr.bf16.mxu1 %v858_v39  ;;  %v1100_v42 = vld [vmem:[%s1399_s1 + $0x100] sm:$0xff]   ;;  %v1104_v46 = vld [vmem:[%s1399_s1 + $0x108] sm:$0xff]   ;;  %v1108_v50 = vld [vmem:[%s1399_s1 + $0x110] sm:$0xff]  }
  0x10   :  { %961 = vmatpush3.bf16.msra.mxu0 %v1080_v14  ;;  %v1101_v43 = vld [vmem:[%s1399_s1 + $0x180] sm:$0xff]   ;;  %v1105_v47 = vld [vmem:[%s1399_s1 + $0x188] sm:$0xff]   ;;  %v1109_v51 = vld [vmem:[%s1399_s1 + $0x190] sm:$0xff]  }
  0x11   :  { %989 = vmatpush3.bf16.msra.mxu1 %v1081_v15  ;;  %962 = vmatprep.subr.bf16.mxu0 %v1082_v16  ;;  %v1110_v52 = vld [vmem:[%s1399_s1 + $0x158] sm:$0xff]   ;;  %v1114_v56 = vld [vmem:[%s1399_s1 + $0x160] sm:$0xff]   ;;  %v1118_v63 = vld [vmem:[%s1399_s1 + $0x168] sm:$0xff]  }
  0x12   :  { %990 = vmatprep.subr.bf16.mxu1 %v1083_v17  ;;  %v1111_v53 = vld [vmem:[%s1399_s1 + $0x1d8] sm:$0xff]   ;;  %v1115_v57 = vld [vmem:[%s1399_s1 + $0x1e0] sm:$0xff]   ;;  %v1119_v1 = vld [vmem:[%s1399_s1 + $0x1e8] sm:$0xff]  }
  0x13   :  { %v1112_v54 = vld [vmem:[%s1399_s1 + $0x118] sm:$0xff]   ;;  %v1116_v58 = vld [vmem:[%s1399_s1 + $0x120] sm:$0xff]   ;;  %v1120_v2 = vld [vmem:[%s1399_s1 + $0x128] sm:$0xff]  }
  0x14   :  { %963 = vmatpush3.bf16.msra.mxu0 %v1084_v18  ;;  %v1113_v55 = vld [vmem:[%s1399_s1 + $0x198] sm:$0xff]   ;;  %v1117_v59 = vld [vmem:[%s1399_s1 + $0x1a0] sm:$0xff]   ;;  %v1121_v3 = vld [vmem:[%s1399_s1 + $0x1a8] sm:$0xff]  }
  0x15   :  { %991 = vmatpush3.bf16.msra.mxu1 %v1085_v19  ;;  %964 = vmatprep.subr.bf16.mxu0 %v1086_v20  ;;  %v23_v60 = vld [vmem:[%s1400_s0 + $0x40] sm:$0xff]  ;;  %v24_v4 = vld [vmem:[%s1400_s0 + $0x48] sm:$0xff]  ;;  %v1122_v8 = vld [vmem:[%s1399_s1 + $0x170] sm:$0xff]  }
  0x16   :  { %992 = vmatprep.subr.bf16.mxu1 %v1087_v21  ;;  %v27_v61 = vld [vmem:[%s1400_s0 + $0x60] sm:$0xff]  ;;  %v28_v5 = vld [vmem:[%s1400_s0 + $0x68] sm:$0xff]  ;;  %v1123_v9 = vld [vmem:[%s1399_s1 + $0x1f0] sm:$0xff]  }
  0x17   :  { %v864_v62 = vcombine.high %v23_v60, %v27_v61  ;;  %v863_v0 = vcombine.low %v23_v60, %v27_v61  ;;  %v866_v6 = vcombine.high %v24_v4, %v28_v5  ;;  %v865_v7 = vcombine.low %v24_v4, %v28_v5  ;;  %v1124_v10 = vld [vmem:[%s1399_s1 + $0x130] sm:$0xff]   ;;  %v1126_v12 = vld [vmem:[%s1399_s1 + $0x178] sm:$0xff]   ;;  %v854_v34 = vld [vmem:[%s1401_s2] ss:$0 sm:$0xff] }
  0x18   :  { %965 = vmatpush3.bf16.msra.mxu0 %v1088_v22  ;;  %v1125_v11 = vld [vmem:[%s1399_s1 + $0x1b0] sm:$0xff]   ;;  %v1127_v13 = vld [vmem:[%s1399_s1 + $0x1f8] sm:$0xff]  }
  0x19   :  { %993 = vmatpush3.bf16.msra.mxu1 %v1089_v23  ;;  %966 = vmatprep.subr.bf16.mxu0 %v1090_v24  ;;  %v1128_v14 = vld [vmem:[%s1399_s1 + $0x138] sm:$0xff]   ;;  %v17_v16 = vld [vmem:[%s1400_s0 + $0x10] sm:$0xff] }
  0x1a   :  { %994 = vmatprep.subr.bf16.mxu1 %v1091_v25  ;;  %v1129_v15 = vld [vmem:[%s1399_s1 + $0x1b8] sm:$0xff]   ;;  %v21_v17 = vld [vmem:[%s1400_s0 + $0x30] sm:$0xff] }
  0x1b   :  { %v18_v18 = vld [vmem:[%s1400_s0 + $0x18] sm:$0xff]  ;;  %v859_v20 = vcombine.low %v17_v16, %v21_v17  ;;  %v860_v21 = vcombine.high %v17_v16, %v21_v17  ;;  %v25_v24 = vld [vmem:[%s1400_s0 + $0x50] sm:$0xff] }
  0x1c   :  { %967 = vmatpush3.bf16.msra.mxu0 %v1092_v26  ;;  %v22_v19 = vld [vmem:[%s1400_s0 + $0x38] sm:$0xff]  ;;  %v29_v25 = vld [vmem:[%s1400_s0 + $0x70] sm:$0xff] }
  0x1d   :  { %995 = vmatpush3.bf16.msra.mxu1 %v1093_v27  ;;  %968 = vmatprep.subr.bf16.mxu0 %v1094_v28  ;;  %v861_v22 = vcombine.low %v18_v18, %v22_v19  ;;  %v862_v23 = vcombine.high %v18_v18, %v22_v19  ;;  %v26_v26 = vld [vmem:[%s1400_s0 + $0x58] sm:$0xff]  ;;  %v868_v27 = vcombine.high %v25_v24, %v29_v25 }
  0x1e   :  { %996 = vmatprep.subr.bf16.mxu1 %v1095_v29  ;;  %v30_v28 = vld [vmem:[%s1400_s0 + $0x78] sm:$0xff] }
  0x1f   :  { %v870_v29 = vcombine.high %v26_v26, %v30_v28 }
  0x20   :  { %969 = vmatpush3.bf16.msra.mxu0 %v1096_v30  ;;  %v867_v30 = vcombine.low %v25_v24, %v29_v25 }
  0x21   :  { %997 = vmatpush3.bf16.msra.mxu1 %v1097_v31  ;;  %1010 = vmatprep.subr.bf16.mxu0 %v1098_v40  ;;  %v869_v31 = vcombine.low %v26_v26, %v30_v28 }
  0x22   :  { %1038 = vmatprep.subr.bf16.mxu1 %v1099_v41 }
  0x23   :  { %663 = vmatmul.mubr.bf16.vlgmr.msra.gmra.mrb[0].mxu0 %v855_v35 }
  0x24   :  { %712 = vmatmul.mubr.bf16.vlgmr.msra.gmra.mrb[0].mxu1 %v857_v38  ;;  %1011 = vmatpush3.bf16.msra.mxu0 %v1100_v42 }
  0x25   :  { %1039 = vmatpush3.bf16.msra.mxu1 %v1101_v43  ;;  %1012 = vmatprep.subr.bf16.mxu0 %v1102_v44 }
  0x26   :  { %1040 = vmatprep.subr.bf16.mxu1 %v1103_v45  ;;  %670 = vmatprep.mubr.bf16.mxu0 %v864_v62 }
  0x27   :  { %719 = vmatprep.mubr.bf16.mxu1 %v866_v6 }
  0x28   :  { %1013 = vmatpush3.bf16.msra.mxu0 %v1104_v46 }
  0x29   :  { %1041 = vmatpush3.bf16.msra.mxu1 %v1105_v47  ;;  %1014 = vmatprep.subr.bf16.mxu0 %v1106_v48 }
  0x2a   :  { %1042 = vmatprep.subr.bf16.mxu1 %v1107_v49 }
  0x2b   :  { %671 = vmatmul.mubr.bf16.gmra.mrb[4].mxu0 %v863_v0 }
  0x2c   :  { %1015 = vmatpush3.bf16.msra.mxu0 %v1108_v50  ;;  %720 = vmatmul.mubr.bf16.gmra.mrb[4].mxu1 %v865_v7 }
  0x2d   :  { %1043 = vmatpush3.bf16.msra.mxu1 %v1109_v51  ;;  %1016 = vmatprep.subr.bf16.mxu0 %v1110_v52 }
  0x2e   :  { %1044 = vmatprep.subr.bf16.mxu1 %v1111_v53  ;;  %760 = vmatprep.mubr.bf16.mxu0 %v860_v21 }
  0x2f   :  { %809 = vmatprep.mubr.bf16.mxu1 %v862_v23 }
  0x30   :  { %1017 = vmatpush3.bf16.msra.mxu0 %v1112_v54 }
  0x31   :  { %1045 = vmatpush3.bf16.msra.mxu1 %v1113_v55  ;;  %1018 = vmatprep.subr.bf16.mxu0 %v1114_v56 }
  0x32   :  { %1046 = vmatprep.subr.bf16.mxu1 %v1115_v57 }
  0x34   :  { %1019 = vmatpush3.bf16.msra.mxu0 %v1116_v58 }
  0x35   :  { %1047 = vmatpush3.bf16.msra.mxu1 %v1117_v59  ;;  %1020 = vmatprep.subr.bf16.mxu0 %v1118_v63 }
  0x36   :  { %1048 = vmatprep.subr.bf16.mxu1 %v1119_v1 }
  0x38   :  { %1021 = vmatpush3.bf16.msra.mxu0 %v1120_v2 }
  0x39   :  { %1049 = vmatpush3.bf16.msra.mxu1 %v1121_v3  ;;  %1022 = vmatprep.subr.bf16.mxu0 %v1122_v8 }
  0x3a   :  { %1050 = vmatprep.subr.bf16.mxu1 %v1123_v9 }
  0x3c   :  { %1023 = vmatpush3.bf16.msra.mxu0 %v1124_v10 }
  0x3d   :  { %1051 = vmatpush3.bf16.msra.mxu1 %v1125_v11  ;;  %1024 = vmatprep.subr.bf16.mxu0 %v1126_v12 }
  0x3e   :  { %1052 = vmatprep.subr.bf16.mxu1 %v1127_v13 }
  0x40   :  { %1025 = vmatpush3.bf16.msra.mxu0 %v1128_v14 }
  0x41   :  { %1053 = vmatpush3.bf16.msra.mxu1 %v1129_v15 }
  0x43   :  { %761 = vmatmul.mubr.bf16.vlgmr.msra.gmra.mrb[8].mxu0 %v859_v20 }
  0x44   :  { %810 = vmatmul.mubr.bf16.vlgmr.msra.gmra.mrb[8].mxu1 %v861_v22  ;;  %768 = vmatprep.mubr.bf16.mxu0 %v868_v27 }
  0x45   :  { %817 = vmatprep.mubr.bf16.mxu1 %v870_v29 }
  0x4b   :  { %769 = vmatmul.mubr.bf16.gmra.mrb[12].mxu0 %v867_v30 }
  0x4c   :  { %818 = vmatmul.mubr.bf16.gmra.mrb[12].mxu1 %v869_v31 }
  0xf6   :  { %v970_v32 = vpop.f32.mrb[0].mxu0 }
  0xf7   :  { %v998_v33 = vpop.f32.mrb[0].mxu1  ;;  %v971_v35 = vpop.f32.mrb[1].mxu0 }
  0xf8   :  { %v972_v36 = vadd.f32 %v971_v35, %v970_v32  ;;  %v999_v37 = vpop.f32.mrb[1].mxu1  ;;  %v973_v38 = vpop.f32.mrb[2].mxu0 }
  0xf9   :  { %v1000_v39 = vadd.f32 %v999_v37, %v998_v33  ;;  %v1001_v40 = vpop.f32.mrb[2].mxu1  ;;  %v974_v41 = vpop.f32.mrb[3].mxu0 }
  0xfa   :  { %v665_v42 = vadd.f32 %v972_v36, %v854_v34  ;;  %v975_v43 = vadd.f32 %v974_v41, %v973_v38  ;;  %v1002_v44 = vpop.f32.mrb[3].mxu1 }
  0xfb   :  { %v1003_v45 = vadd.f32 %v1002_v44, %v1001_v40 }
  0xfc   :  { %v714_v46 = vadd.f32 %v1000_v39, %v665_v42  ;;  %v668_v47 = vadd.f32 %v975_v43, %v854_v34 }
  0xfe   :  { %v717_v48 = vadd.f32 %v1003_v45, %v668_v47  ;;  %v976_v49 = vpop.f32.mrb[4].mxu0 }
  0xff   :  { %v977_v50 = vpop.f32.mrb[5].mxu0  ;;  %v1004_v56 = vpop.f32.mrb[4].mxu1 }
 0x100   :  { %v978_v51 = vadd.f32 %v977_v50, %v976_v49  ;;  %v979_v52 = vpop.f32.mrb[6].mxu0  ;;  %v1005_v57 = vpop.f32.mrb[5].mxu1 }
 0x101   :  { %v980_v53 = vpop.f32.mrb[7].mxu0  ;;  %v1006_v59 = vadd.f32 %v1005_v57, %v1004_v56  ;;  %v1007_v60 = vpop.f32.mrb[6].mxu1 }
 0x102   :  { %v981_v54 = vadd.f32 %v980_v53, %v979_v52  ;;  %v673_v55 = vadd.f32 %v978_v51, %v854_v34  ;;  %v1008_v61 = vpop.f32.mrb[7].mxu1 }
 0x103   :  { %v1009_v63 = vadd.f32 %v1008_v61, %v1007_v60 }
 0x104   :  { %v676_v58 = vadd.f32 %v981_v54, %v854_v34  ;;  %v722_v62 = vadd.f32 %v1006_v59, %v673_v55 }
 0x106   :  { %v725_v0 = vadd.f32 %v1009_v63, %v676_v58 }
 0x116   :  { %v1026_v1 = vpop.f32.mrb[8].mxu0 }
 0x117   :  { %v1054_v2 = vpop.f32.mrb[8].mxu1  ;;  %v1027_v3 = vpop.f32.mrb[9].mxu0 }
 0x118   :  { %v1055_v4 = vpop.f32.mrb[9].mxu1  ;;  %v1028_v5 = vadd.f32 %v1027_v3, %v1026_v1  ;;  %v1029_v7 = vpop.f32.mrb[10].mxu0 }
 0x119   :  { %v1056_v6 = vadd.f32 %v1055_v4, %v1054_v2  ;;  %v1057_v8 = vpop.f32.mrb[10].mxu1  ;;  %v1030_v9 = vpop.f32.mrb[11].mxu0 }
 0x11a   :  { %v1058_v10 = vpop.f32.mrb[11].mxu1  ;;  %v763_v11 = vadd.f32 %v1028_v5, %v714_v46  ;;  %v1031_v12 = vadd.f32 %v1030_v9, %v1029_v7 }
 0x11b   :  { %v1059_v13 = vadd.f32 %v1058_v10, %v1057_v8 }
 0x11c   :  { %v812_v14 = vadd.f32 %v1056_v6, %v763_v11  ;;  %v766_v15 = vadd.f32 %v1031_v12, %v717_v48 }
 0x11e   :  { %v815_v16 = vadd.f32 %v1059_v13, %v766_v15  ;;  %v1032_v17 = vpop.f32.mrb[12].mxu0  ;;  %v826_v21 = vmax.f32 %v812_v14, 0.0 }
 0x11f   :  { %v1060_v18 = vpop.f32.mrb[12].mxu1  ;;  %v1033_v19 = vpop.f32.mrb[13].mxu0 }
 0x120   :  { %v1061_v20 = vpop.f32.mrb[13].mxu1  ;;  %v827_v22 = vmax.f32 %v815_v16, 0.0  ;;  %v1034_v23 = vadd.f32 %v1033_v19, %v1032_v17  ;;  %v1035_v25 = vpop.f32.mrb[14].mxu0 }
 0x121   :  { %v1062_v24 = vadd.f32 %v1061_v20, %v1060_v18  ;;  %v1063_v26 = vpop.f32.mrb[14].mxu1  ;;  %v1036_v27 = vpop.f32.mrb[15].mxu0 }
 0x122   :  { %v1064_v28 = vpop.f32.mrb[15].mxu1  ;;  %v946_v29 = vpack.c.bf16 %v827_v22, %v826_v21  ;;  %v771_v30 = vadd.f32 %v1034_v23, %v722_v62  ;;  %v1037_v31 = vadd.f32 %v1036_v27, %v1035_v25 }
 0x123   :  { %v1065_v32 = vadd.f32 %v1064_v28, %v1063_v26 }
 0x124   :  { %947 = vst [vmem:[%s1402_s3] sm:$0xff] %v946_v29   ;;  %v820_v33 = vadd.f32 %v1062_v24, %v771_v30  ;;  %v774_v34 = vadd.f32 %v1037_v31, %v725_v0 }
 0x126   :  { %v823_v35 = vadd.f32 %v1065_v32, %v774_v34  ;;  %v828_v36 = vmax.f32 %v820_v33, 0.0 }
 0x128   :  { %v829_v37 = vmax.f32 %v823_v35, 0.0 }
 0x12a   :  { %v951_v38 = vpack.c.bf16 %v829_v37, %v828_v36 }
 0x12c   :  { %953 = vst [vmem:[%s1402_s3 + $0x8] sm:$0xff] %v951_v38  }

// kernel: tile.8
= control target key start
LH: loop header
LB: loop body
LE: loop exit
PB: predicated region body
PF: predicated region fallthrough
CT: control target
= control target key end

     0   :  { %s28_s0 = inlined_call_operand.vmem [shape: f32[64], index: 0, kind: input, shape index: {}]   ;;  %s29_s1 = inlined_call_operand.vmem [shape: f32[16,64], index: 1, kind: output, shape index: {}]  }
   0x1   :  { %v4_v0 = vld [vmem:[%s28_s0] ss:$0 sm:$0xff] }
   0x2   :  { %5 = vst [vmem:[%s29_s1] sm:$0xff] %v4_v0  ;;  %8 = vst [vmem:[%s29_s1 + $0x8] sm:$0xff] %v4_v0 }

// kernel: tile.9
= control target key start
LH: loop header
LB: loop body
LE: loop exit
PB: predicated region body
PF: predicated region fallthrough
CT: control target
= control target key end

     0   :  { %vm3_vm0 = vcmask 523264   ;;  %vm10_vm1 = vcmask 1048064   ;;  %s116_s0 = inlined_call_operand.vmem [shape: f32[16,64], index: 0, kind: input, shape index: {}]   ;;  %s117_s1 = inlined_call_operand.vmem [shape: f32[1,1024], index: 1, kind: output, shape index: {}]  }
   0x1   :  { %v66_v0 = vld [vmem:[%s116_s0 + $0x1] ss:$2 sm:$0xff]   ;;  %v2_v1 = vld [vmem:[%s116_s0] ss:$2 sm:$0xff]   ;;  %s75_s0 = smov 64  }
   0x2   :  { %8 = vrot.lane.b32.xlu0 %v66_v0, %s75_s0  ;;  %4 = vst.msk [vmem:[#allocation0] ss:$8 sm:$0xf] %vm3_vm0, %v2_v1   ;;  %5 = vst.msk [vmem:[#allocation0] ss:$8 sm:$0xf0] %vm3_vm0, %v2_v1  }
  0x74   :  { %v9_v2 = vpop.permute.xlu0 %8  }
  0x75   :  { %11 = vst.msk [vmem:[#allocation0] ss:$8 sm:$0xf] %vm10_vm1, %v9_v2   ;;  %12 = vst.msk [vmem:[#allocation0] ss:$8 sm:$0xf0] %vm10_vm1, %v9_v2  }
  0x7c   :  { %v16_v3 = vld [vmem:[#allocation0] sm:$0x1]  ;;  %v20_v4 = vld [vmem:[#allocation0 + $0x8] sm:$0x1]  ;;  %v25_v5 = vld [vmem:[#allocation0 + $0x10] sm:$0x1] }
  0x7d   :  { %18 = vst [vmem:[%s117_s1] sm:$0x1] %v16_v3  ;;  %67 = vst [vmem:[%s117_s1 + $0x1] sm:$0x1] %v20_v4  ;;  %v31_v6 = vld [vmem:[#allocation0 + $0x18] sm:$0x1] }
  0x7e   :  { %68 = vst [vmem:[%s117_s1 + $0x2] sm:$0x1] %v25_v5  ;;  %v37_v7 = vld [vmem:[#allocation0 + $0x20] sm:$0x1]  ;;  %v43_v8 = vld [vmem:[#allocation0 + $0x28] sm:$0x1] }
  0x7f   :  { %69 = vst [vmem:[%s117_s1 + $0x3] sm:$0x1] %v31_v6  ;;  %70 = vst [vmem:[%s117_s1 + $0x4] sm:$0x1] %v37_v7  ;;  %v49_v9 = vld [vmem:[#allocation0 + $0x30] sm:$0x1] }
  0x80   :  { %71 = vst [vmem:[%s117_s1 + $0x5] sm:$0x1] %v43_v8  ;;  %v55_v10 = vld [vmem:[#allocation0 + $0x38] sm:$0x1]  ;;  %72 = vst [vmem:[%s117_s1 + $0x6] sm:$0x1] %v49_v9 }
  0x81   :  { %73 = vst [vmem:[%s117_s1 + $0x7] sm:$0x1] %v55_v10 }

// kernel: factor_vae2_forward.13
= control target key start
LH: loop header
LB: loop body
LE: loop exit
PB: predicated region body
PF: predicated region fallthrough
CT: control target
= control target key end

     0   :  { %s4465_s1 = inlined_call_operand.vmem [shape: bf16[1024,256], index: 1, kind: input, shape index: {}]   ;;  %s4466_s0 = inlined_call_operand.vmem [shape: bf16[16,1024], index: 0, kind: input, shape index: {}]   ;;  %s4467_s3 = inlined_call_operand.vmem [shape: f32[256,128], index: 3, kind: input, shape index: {}]   ;;  %s4468_s5 = inlined_call_operand.vmem [shape: f32[256,128], index: 5, kind: input, shape index: {}]   ;;  %s4469_s2 = inlined_call_operand.vmem [shape: f32[1,256], index: 2, kind: input, shape index: {}]   ;;  %s4470_s8 = inlined_call_operand.vmem [shape: f32[128,256], index: 8, kind: input, shape index: {}]   ;;  %s4471_s10 = inlined_call_operand.vmem [shape: bf16[256,1024], index: 10, kind: input, shape index: {}]   ;;  %s4472_s4 = inlined_call_operand.vmem [shape: f32[1,128], index: 4, kind: input, shape index: {}]   ;;  %s4473_s12 = inlined_call_operand.vmem [shape: f32[16,128], index: 12, kind: output, shape index: {0}]   ;;  %s4474_s6 = inlined_call_operand.vmem [shape: f32[1,128], index: 6, kind: input, shape index: {}]   ;;  %s4475_s13 = inlined_call_operand.vmem [shape: f32[16,128], index: 13, kind: output, shape index: {1}]   ;;  %s4476_s7 = inlined_call_operand.vmem [shape: f32[16,128], index: 7, kind: input, shape index: {}]   ;;  %s4477_s14 = inlined_call_operand.vmem [shape: f32[16,128], index: 14, kind: output, shape index: {2}]   ;;  %s4478_s9 = inlined_call_operand.vmem [shape: f32[1,256], index: 9, kind: input, shape index: {}]   ;;  %s4479_s11 = inlined_call_operand.vmem [shape: f32[1,1024], index: 11, kind: input, shape index: {}]   ;;  %s4480_s15 = inlined_call_operand.vmem [shape: bf16[16,1024], index: 15, kind: output, shape index: {3}]  }
   0x1   :  { %v2963_v0 = vld [vmem:[%s4465_s1 + $0x4] ss:$8 sps:$4 sm:$0xff]   ;;  %v2965_v1 = vld [vmem:[%s4465_s1] ss:$8 sps:$4 sm:$0xff]   ;;  %v2966_v2 = vld [vmem:[%s4465_s1 + $0x14] ss:$8 sps:$4 sm:$0xff]  }
   0x2   :  { %873 = vmatprep.subr.bf16.mxu0 %v2963_v0  ;;  %v2968_v3 = vld [vmem:[%s4465_s1 + $0x10] ss:$8 sps:$4 sm:$0xff]   ;;  %v2969_v4 = vld [vmem:[%s4465_s1 + $0x24] ss:$8 sps:$4 sm:$0xff]   ;;  %v2971_v5 = vld [vmem:[%s4465_s1 + $0x20] ss:$8 sps:$4 sm:$0xff]  }
   0x3   :  { %874 = vmatpush1.bf16.msra.mxu0 %v2965_v1  ;;  %v2972_v6 = vld [vmem:[%s4465_s1 + $0x34] ss:$8 sps:$4 sm:$0xff]   ;;  %v2974_v7 = vld [vmem:[%s4465_s1 + $0x30] ss:$8 sps:$4 sm:$0xff]   ;;  %v2975_v8 = vld [vmem:[%s4465_s1 + $0x44] ss:$8 sps:$4 sm:$0xff]  }
   0x4   :  { %875 = vmatprep.subr.bf16.mxu0 %v2966_v2  ;;  %v2977_v9 = vld [vmem:[%s4465_s1 + $0x40] ss:$8 sps:$4 sm:$0xff]   ;;  %v2978_v10 = vld [vmem:[%s4465_s1 + $0x54] ss:$8 sps:$4 sm:$0xff]   ;;  %v2980_v11 = vld [vmem:[%s4465_s1 + $0x50] ss:$8 sps:$4 sm:$0xff]  }
   0x5   :  { %v2981_v12 = vld [vmem:[%s4465_s1 + $0x64] ss:$8 sps:$4 sm:$0xff]   ;;  %v2983_v16 = vld [vmem:[%s4465_s1 + $0x60] ss:$8 sps:$4 sm:$0xff]   ;;  %v2984_v17 = vld [vmem:[%s4465_s1 + $0x74] ss:$8 sps:$4 sm:$0xff]  }
   0x6   :  { %v45_v13 = vld [vmem:[%s4466_s0] sm:$0xff]  ;;  %v2986_v18 = vld [vmem:[%s4465_s1 + $0x70] ss:$8 sps:$4 sm:$0xff]   ;;  %v2990_v21 = vld [vmem:[%s4465_s1 + $0x94] ss:$8 sps:$4 sm:$0xff]  }
   0x7   :  { %876 = vmatpush1.bf16.msra.mxu0 %v2968_v3  ;;  %v49_v14 = vld [vmem:[%s4466_s0 + $0x20] sm:$0xff]  ;;  %v2992_v22 = vld [vmem:[%s4465_s1 + $0x90] ss:$8 sps:$4 sm:$0xff]   ;;  %v2996_v25 = vld [vmem:[%s4465_s1 + $0xb4] ss:$8 sps:$4 sm:$0xff]  }
   0x8   :  { %877 = vmatprep.subr.bf16.mxu0 %v2969_v4  ;;  %v2493_v15 = vcombine.high %v45_v13, %v49_v14  ;;  %v2987_v19 = vld [vmem:[%s4465_s1 + $0x84] ss:$8 sps:$4 sm:$0xff]   ;;  %v2989_v20 = vld [vmem:[%s4465_s1 + $0x80] ss:$8 sps:$4 sm:$0xff]   ;;  %v2998_v26 = vld [vmem:[%s4465_s1 + $0xb0] ss:$8 sps:$4 sm:$0xff]   ;;  %v2492_v38 = vcombine.low %v45_v13, %v49_v14 }
   0x9   :  { %v2993_v23 = vld [vmem:[%s4465_s1 + $0xa4] ss:$8 sps:$4 sm:$0xff]   ;;  %v2995_v24 = vld [vmem:[%s4465_s1 + $0xa0] ss:$8 sps:$4 sm:$0xff]   ;;  %v3002_v29 = vld [vmem:[%s4465_s1 + $0xd4] ss:$8 sps:$4 sm:$0xff]  }
   0xa   :  { %905 = vmatprep.mubr.bf16.mxu0 %v2493_v15  ;;  %v2999_v27 = vld [vmem:[%s4465_s1 + $0xc4] ss:$8 sps:$4 sm:$0xff]   ;;  %v3001_v28 = vld [vmem:[%s4465_s1 + $0xc0] ss:$8 sps:$4 sm:$0xff]   ;;  %v3004_v30 = vld [vmem:[%s4465_s1 + $0xd0] ss:$8 sps:$4 sm:$0xff]  }
   0xb   :  { %878 = vmatpush1.bf16.msra.mxu0 %v2971_v5  ;;  %v3005_v31 = vld [vmem:[%s4465_s1 + $0xe4] ss:$8 sps:$4 sm:$0xff]   ;;  %v3007_v32 = vld [vmem:[%s4465_s1 + $0xe0] ss:$8 sps:$4 sm:$0xff]   ;;  %v3008_v33 = vld [vmem:[%s4465_s1 + $0xf4] ss:$8 sps:$4 sm:$0xff]  }
   0xc   :  { %879 = vmatprep.subr.bf16.mxu0 %v2972_v6  ;;  %v3010_v34 = vld [vmem:[%s4465_s1 + $0xf0] ss:$8 sps:$4 sm:$0xff]   ;;  %v3013_v35 = vld [vmem:[%s4465_s1 + $0x104] ss:$8 sps:$4 sm:$0xff]   ;;  %v3011_v39 = vld [vmem:[%s4465_s1 + $0x100] ss:$8 sps:$4 sm:$0xff]  }
   0xd   :  { %v3348_v36 = vld [vmem:[%s4466_s0 + $0x8] sm:$0xff]  ;;  %v3016_v41 = vld [vmem:[%s4465_s1 + $0x114] ss:$8 sps:$4 sm:$0xff]   ;;  %v3014_v42 = vld [vmem:[%s4465_s1 + $0x110] ss:$8 sps:$4 sm:$0xff]  }
   0xe   :  { %v3353_v37 = vld [vmem:[%s4466_s0 + $0x28] sm:$0xff]  ;;  %v3022_v45 = vld [vmem:[%s4465_s1 + $0x134] ss:$8 sps:$4 sm:$0xff]   ;;  %v3020_v46 = vld [vmem:[%s4465_s1 + $0x130] ss:$8 sps:$4 sm:$0xff]  }
   0xf   :  { %880 = vmatpush1.bf16.msra.mxu0 %v2974_v7  ;;  %v2495_v40 = vcombine.high %v3348_v36, %v3353_v37  ;;  %v3019_v43 = vld [vmem:[%s4465_s1 + $0x124] ss:$8 sps:$4 sm:$0xff]   ;;  %v3017_v44 = vld [vmem:[%s4465_s1 + $0x120] ss:$8 sps:$4 sm:$0xff]   ;;  %v3028_v49 = vld [vmem:[%s4465_s1 + $0x154] ss:$8 sps:$4 sm:$0xff]  }
  0x10   :  { %881 = vmatprep.subr.bf16.mxu0 %v2975_v8  ;;  %v3025_v47 = vld [vmem:[%s4465_s1 + $0x144] ss:$8 sps:$4 sm:$0xff]   ;;  %v3023_v48 = vld [vmem:[%s4465_s1 + $0x140] ss:$8 sps:$4 sm:$0xff]   ;;  %v3026_v50 = vld [vmem:[%s4465_s1 + $0x150] ss:$8 sps:$4 sm:$0xff]  }
  0x11   :  { %v3031_v51 = vld [vmem:[%s4465_s1 + $0x164] ss:$8 sps:$4 sm:$0xff]   ;;  %v3029_v52 = vld [vmem:[%s4465_s1 + $0x160] ss:$8 sps:$4 sm:$0xff]   ;;  %v3034_v53 = vld [vmem:[%s4465_s1 + $0x174] ss:$8 sps:$4 sm:$0xff]  }
  0x12   :  { %v3032_v54 = vld [vmem:[%s4465_s1 + $0x170] ss:$8 sps:$4 sm:$0xff]   ;;  %v3037_v55 = vld [vmem:[%s4465_s1 + $0x184] ss:$8 sps:$4 sm:$0xff]   ;;  %v3035_v56 = vld [vmem:[%s4465_s1 + $0x180] ss:$8 sps:$4 sm:$0xff]  }
  0x13   :  { %882 = vmatpush1.bf16.msra.mxu0 %v2977_v9  ;;  %v3040_v57 = vld [vmem:[%s4465_s1 + $0x194] ss:$8 sps:$4 sm:$0xff]   ;;  %v3038_v58 = vld [vmem:[%s4465_s1 + $0x190] ss:$8 sps:$4 sm:$0xff]   ;;  %v3043_v59 = vld [vmem:[%s4465_s1 + $0x1a4] ss:$8 sps:$4 sm:$0xff]  }
  0x14   :  { %883 = vmatprep.subr.bf16.mxu0 %v2978_v10  ;;  %v3041_v60 = vld [vmem:[%s4465_s1 + $0x1a0] ss:$8 sps:$4 sm:$0xff]   ;;  %v3046_v61 = vld [vmem:[%s4465_s1 + $0x1b4] ss:$8 sps:$4 sm:$0xff]   ;;  %v3044_v62 = vld [vmem:[%s4465_s1 + $0x1b0] ss:$8 sps:$4 sm:$0xff]   ;;  %v2494_v10 = vcombine.low %v3348_v36, %v3353_v37 }
  0x15   :  { %v3049_v63 = vld [vmem:[%s4465_s1 + $0x1c4] ss:$8 sps:$4 sm:$0xff]   ;;  %v3047_v0 = vld [vmem:[%s4465_s1 + $0x1c0] ss:$8 sps:$4 sm:$0xff]   ;;  %v3052_v1 = vld [vmem:[%s4465_s1 + $0x1d4] ss:$8 sps:$4 sm:$0xff]  }
  0x16   :  { %v3050_v2 = vld [vmem:[%s4465_s1 + $0x1d0] ss:$8 sps:$4 sm:$0xff]   ;;  %v3055_v3 = vld [vmem:[%s4465_s1 + $0x1e4] ss:$8 sps:$4 sm:$0xff]   ;;  %v3053_v4 = vld [vmem:[%s4465_s1 + $0x1e0] ss:$8 sps:$4 sm:$0xff]  }
  0x17   :  { %884 = vmatpush1.bf16.msra.mxu0 %v2980_v11  ;;  %v3058_v5 = vld [vmem:[%s4465_s1 + $0x1f4] ss:$8 sps:$4 sm:$0xff]   ;;  %v3056_v6 = vld [vmem:[%s4465_s1 + $0x1f0] ss:$8 sps:$4 sm:$0xff]   ;;  %v3061_v7 = vld [vmem:[%s4465_s1 + $0x204] ss:$8 sps:$4 sm:$0xff]  }
  0x18   :  { %885 = vmatprep.subr.bf16.mxu0 %v2981_v12  ;;  %v3456_v8 = vld [vmem:[%s4466_s0 + $0x10] sm:$0xff]  ;;  %v3059_v11 = vld [vmem:[%s4465_s1 + $0x200] ss:$8 sps:$4 sm:$0xff]   ;;  %v3067_v15 = vld [vmem:[%s4465_s1 + $0x224] ss:$8 sps:$4 sm:$0xff]  }
  0x19   :  { %v3461_v9 = vld [vmem:[%s4466_s0 + $0x30] sm:$0xff]  ;;  %v1072_v36 = vld [vmem:[%s4467_s3 + $0xb8] sm:$0xff] }
  0x1a   :  { %v2497_v12 = vcombine.high %v3456_v8, %v3461_v9  ;;  %v3064_v13 = vld [vmem:[%s4465_s1 + $0x214] ss:$8 sps:$4 sm:$0xff]   ;;  %v3062_v14 = vld [vmem:[%s4465_s1 + $0x210] ss:$8 sps:$4 sm:$0xff]  }
  0x1b   :  { %886 = vmatpush1.bf16.msra.mxu0 %v2983_v16  ;;  %v1065_v16 = vld [vmem:[%s4467_s3 + $0x80] sm:$0xff]  ;;  %v3068_v37 = vld [vmem:[%s4465_s1 + $0x230] ss:$8 sps:$4 sm:$0xff]  }
  0x1c   :  { %887 = vmatprep.subr.bf16.mxu0 %v2984_v17  ;;  %v1066_v17 = vld [vmem:[%s4467_s3 + $0x88] sm:$0xff] }
  0x1f   :  { %888 = vmatpush1.bf16.msra.mxu0 %v2986_v18  ;;  %v1049_v18 = vld [vmem:[%s4467_s3] sm:$0xff] }
  0x20   :  { %889 = vmatprep.subr.bf16.mxu0 %v2987_v19  ;;  %v2850_v19 = vpack.c.bf16 %v1066_v17, %v1065_v16  ;;  %v3095_v16 = vld [vmem:[%s4465_s1 + $0x2c0] ss:$8 sps:$4 sm:$0xff]   ;;  %v3100_v17 = vld [vmem:[%s4465_s1 + $0x2d4] ss:$8 sps:$4 sm:$0xff]  }
  0x22   :  { %2851 = vmatprep.subr.bf16.mxu1 %v2850_v19  ;;  %v3103_v19 = vld [vmem:[%s4465_s1 + $0x2e4] ss:$8 sps:$4 sm:$0xff]  }
  0x23   :  { %890 = vmatpush1.bf16.msra.mxu0 %v2989_v20  ;;  %v1050_v20 = vld [vmem:[%s4467_s3 + $0x8] sm:$0xff] }
  0x24   :  { %891 = vmatprep.subr.bf16.mxu0 %v2990_v21  ;;  %v1067_v21 = vld [vmem:[%s4467_s3 + $0x90] sm:$0xff] }
  0x27   :  { %892 = vmatpush1.bf16.msra.mxu0 %v2992_v22  ;;  %v1068_v22 = vld [vmem:[%s4467_s3 + $0x98] sm:$0xff] }
  0x28   :  { %893 = vmatprep.subr.bf16.mxu0 %v2993_v23  ;;  %v2852_v23 = vpack.c.bf16 %v1050_v20, %v1049_v18  ;;  %v3098_v18 = vld [vmem:[%s4465_s1 + $0x2d0] ss:$8 sps:$4 sm:$0xff]   ;;  %v3101_v20 = vld [vmem:[%s4465_s1 + $0x2e0] ss:$8 sps:$4 sm:$0xff]  }
  0x2a   :  { %2853 = vmatpush3.bf16.msra.mxu1 %v2852_v23  ;;  %v3109_v23 = vld [vmem:[%s4465_s1 + $0x304] ss:$8 sps:$4 sm:$0xff]  }
  0x2b   :  { %894 = vmatpush1.bf16.msra.mxu0 %v2995_v24  ;;  %v2854_v24 = vpack.c.bf16 %v1068_v22, %v1067_v21  ;;  %v3106_v21 = vld [vmem:[%s4465_s1 + $0x2f4] ss:$8 sps:$4 sm:$0xff]   ;;  %v3104_v22 = vld [vmem:[%s4465_s1 + $0x2f0] ss:$8 sps:$4 sm:$0xff]  }
  0x2c   :  { %895 = vmatprep.subr.bf16.mxu0 %v2996_v25  ;;  %v1051_v25 = vld [vmem:[%s4467_s3 + $0x10] sm:$0xff] }
  0x2d   :  { %2855 = vmatprep.subr.bf16.mxu1 %v2854_v24  ;;  %v3650_v24 = vld [vmem:[%s4466_s0 + $0x18] sm:$0xff] }
  0x2f   :  { %896 = vmatpush1.bf16.msra.mxu0 %v2998_v26  ;;  %v1052_v26 = vld [vmem:[%s4467_s3 + $0x18] sm:$0xff] }
  0x30   :  { %897 = vmatprep.subr.bf16.mxu0 %v2999_v27  ;;  %v1069_v27 = vld [vmem:[%s4467_s3 + $0xa0] sm:$0xff] }
  0x33   :  { %898 = vmatpush1.bf16.msra.mxu0 %v3001_v28  ;;  %v1070_v28 = vld [vmem:[%s4467_s3 + $0xa8] sm:$0xff] }
  0x34   :  { %899 = vmatprep.subr.bf16.mxu0 %v3002_v29  ;;  %v3065_v29 = vld [vmem:[%s4465_s1 + $0x220] ss:$8 sps:$4 sm:$0xff]  }
  0x37   :  { %900 = vmatpush1.bf16.msra.mxu0 %v3004_v30  ;;  %v2856_v30 = vpack.c.bf16 %v1052_v26, %v1051_v25  ;;  %v3655_v25 = vld [vmem:[%s4466_s0 + $0x38] sm:$0xff]  ;;  %v2496_v26 = vcombine.low %v3456_v8, %v3461_v9  ;;  %v3115_v8 = vld [vmem:[%s4465_s1 + $0x324] ss:$8 sps:$4 sm:$0xff]   ;;  %v3113_v9 = vld [vmem:[%s4465_s1 + $0x320] ss:$8 sps:$4 sm:$0xff]  }
  0x38   :  { %901 = vmatprep.subr.bf16.mxu0 %v3005_v31  ;;  %v3070_v31 = vld [vmem:[%s4465_s1 + $0x234] ss:$8 sps:$4 sm:$0xff]  }
  0x39   :  { %2857 = vmatpush3.bf16.msra.mxu1 %v2856_v30  ;;  %v3110_v30 = vld [vmem:[%s4465_s1 + $0x310] ss:$8 sps:$4 sm:$0xff]  }
  0x3b   :  { %902 = vmatpush1.bf16.msra.mxu0 %v3007_v32  ;;  %v2858_v32 = vpack.c.bf16 %v1070_v28, %v1069_v27  ;;  %v3107_v27 = vld [vmem:[%s4465_s1 + $0x300] ss:$8 sps:$4 sm:$0xff]   ;;  %v2499_v28 = vcombine.high %v3650_v24, %v3655_v25 }
  0x3c   :  { %903 = vmatprep.subr.bf16.mxu0 %v3008_v33  ;;  %v1053_v33 = vld [vmem:[%s4467_s3 + $0x20] sm:$0xff] }
  0x3d   :  { %2859 = vmatprep.subr.bf16.mxu1 %v2858_v32  ;;  %v3116_v32 = vld [vmem:[%s4465_s1 + $0x330] ss:$8 sps:$4 sm:$0xff]  }
  0x3f   :  { %904 = vmatpush1.bf16.msra.mxu0 %v3010_v34  ;;  %v1054_v34 = vld [vmem:[%s4467_s3 + $0x28] sm:$0xff] }
  0x40   :  { %916 = vmatprep.subr.bf16.mxu0 %v3013_v35  ;;  %v1071_v35 = vld [vmem:[%s4467_s3 + $0xb0] sm:$0xff] }
  0x42   :  { %906 = vmatmul.mubr.bf16.vlgmr.msra.gmra.mrb[0].mxu0 %v2492_v38  ;;  %v2860_v38 = vpack.c.bf16 %v1054_v34, %v1053_v33  ;;  %v3121_v33 = vld [vmem:[%s4465_s1 + $0x344] ss:$8 sps:$4 sm:$0xff]   ;;  %v3119_v34 = vld [vmem:[%s4465_s1 + $0x340] ss:$8 sps:$4 sm:$0xff]  }
  0x43   :  { %917 = vmatpush1.bf16.msra.mxu0 %v3011_v39  ;;  %948 = vmatprep.mubr.bf16.mxu0 %v2495_v40  ;;  %v3073_v39 = vld [vmem:[%s4465_s1 + $0x244] ss:$8 sps:$4 sm:$0xff]   ;;  %v2862_v40 = vpack.c.bf16 %v1072_v36, %v1071_v35  ;;  %v3124_v35 = vld [vmem:[%s4465_s1 + $0x354] ss:$8 sps:$4 sm:$0xff]   ;;  %v3122_v36 = vld [vmem:[%s4465_s1 + $0x350] ss:$8 sps:$4 sm:$0xff]  }
  0x44   :  { %918 = vmatprep.subr.bf16.mxu0 %v3016_v41  ;;  %v1055_v41 = vld [vmem:[%s4467_s3 + $0x30] sm:$0xff]  ;;  %2861 = vmatpush3.bf16.msra.mxu1 %v2860_v38  ;;  %v3125_v38 = vld [vmem:[%s4465_s1 + $0x360] ss:$8 sps:$4 sm:$0xff]  }
  0x45   :  { %2863 = vmatprep.subr.bf16.mxu1 %v2862_v40  ;;  %v3128_v40 = vld [vmem:[%s4465_s1 + $0x370] ss:$8 sps:$4 sm:$0xff]  }
  0x47   :  { %919 = vmatpush1.bf16.msra.mxu0 %v3014_v42  ;;  %v1056_v42 = vld [vmem:[%s4467_s3 + $0x38] sm:$0xff] }
  0x48   :  { %920 = vmatprep.subr.bf16.mxu0 %v3019_v43  ;;  %v1073_v43 = vld [vmem:[%s4467_s3 + $0xc0] sm:$0xff] }
  0x4b   :  { %921 = vmatpush1.bf16.msra.mxu0 %v3017_v44  ;;  %v1074_v44 = vld [vmem:[%s4467_s3 + $0xc8] sm:$0xff] }
  0x4c   :  { %922 = vmatprep.subr.bf16.mxu0 %v3022_v45  ;;  %v3071_v45 = vld [vmem:[%s4465_s1 + $0x240] ss:$8 sps:$4 sm:$0xff]  }
  0x4f   :  { %923 = vmatpush1.bf16.msra.mxu0 %v3020_v46  ;;  %v2864_v46 = vpack.c.bf16 %v1056_v42, %v1055_v41  ;;  %v3133_v41 = vld [vmem:[%s4465_s1 + $0x384] ss:$8 sps:$4 sm:$0xff]   ;;  %v3131_v42 = vld [vmem:[%s4465_s1 + $0x380] ss:$8 sps:$4 sm:$0xff]  }
  0x50   :  { %924 = vmatprep.subr.bf16.mxu0 %v3025_v47  ;;  %v3076_v47 = vld [vmem:[%s4465_s1 + $0x254] ss:$8 sps:$4 sm:$0xff]  }
  0x51   :  { %2865 = vmatpush3.bf16.msra.mxu1 %v2864_v46  ;;  %v3137_v46 = vld [vmem:[%s4465_s1 + $0x3a0] ss:$8 sps:$4 sm:$0xff]  }
  0x53   :  { %925 = vmatpush1.bf16.msra.mxu0 %v3023_v48  ;;  %v2866_v48 = vpack.c.bf16 %v1074_v44, %v1073_v43  ;;  %v3136_v43 = vld [vmem:[%s4465_s1 + $0x394] ss:$8 sps:$4 sm:$0xff]   ;;  %v3134_v44 = vld [vmem:[%s4465_s1 + $0x390] ss:$8 sps:$4 sm:$0xff]  }
  0x54   :  { %926 = vmatprep.subr.bf16.mxu0 %v3028_v49  ;;  %v1057_v49 = vld [vmem:[%s4467_s3 + $0x40] sm:$0xff] }
  0x55   :  { %2867 = vmatprep.subr.bf16.mxu1 %v2866_v48  ;;  %v3140_v48 = vld [vmem:[%s4465_s1 + $0x3b0] ss:$8 sps:$4 sm:$0xff]  }
  0x57   :  { %927 = vmatpush1.bf16.msra.mxu0 %v3026_v50  ;;  %v1058_v50 = vld [vmem:[%s4467_s3 + $0x48] sm:$0xff] }
  0x58   :  { %928 = vmatprep.subr.bf16.mxu0 %v3031_v51  ;;  %v1075_v51 = vld [vmem:[%s4467_s3 + $0xd0] sm:$0xff] }
  0x5b   :  { %929 = vmatpush1.bf16.msra.mxu0 %v3029_v52  ;;  %v1076_v52 = vld [vmem:[%s4467_s3 + $0xd8] sm:$0xff] }
  0x5c   :  { %930 = vmatprep.subr.bf16.mxu0 %v3034_v53  ;;  %v3074_v53 = vld [vmem:[%s4465_s1 + $0x250] ss:$8 sps:$4 sm:$0xff]  }
  0x5f   :  { %931 = vmatpush1.bf16.msra.mxu0 %v3032_v54  ;;  %v2868_v54 = vpack.c.bf16 %v1058_v50, %v1057_v49  ;;  %v3145_v49 = vld [vmem:[%s4465_s1 + $0x3c4] ss:$8 sps:$4 sm:$0xff]   ;;  %v3143_v50 = vld [vmem:[%s4465_s1 + $0x3c0] ss:$8 sps:$4 sm:$0xff]  }
  0x60   :  { %932 = vmatprep.subr.bf16.mxu0 %v3037_v55  ;;  %v3079_v55 = vld [vmem:[%s4465_s1 + $0x264] ss:$8 sps:$4 sm:$0xff]  }
  0x61   :  { %2869 = vmatpush3.bf16.msra.mxu1 %v2868_v54  ;;  %v3149_v54 = vld [vmem:[%s4465_s1 + $0x3e0] ss:$8 sps:$4 sm:$0xff]  }
  0x63   :  { %933 = vmatpush1.bf16.msra.mxu0 %v3035_v56  ;;  %v2870_v56 = vpack.c.bf16 %v1076_v52, %v1075_v51  ;;  %v3148_v51 = vld [vmem:[%s4465_s1 + $0x3d4] ss:$8 sps:$4 sm:$0xff]   ;;  %v3146_v52 = vld [vmem:[%s4465_s1 + $0x3d0] ss:$8 sps:$4 sm:$0xff]  }
  0x64   :  { %934 = vmatprep.subr.bf16.mxu0 %v3040_v57  ;;  %v1059_v57 = vld [vmem:[%s4467_s3 + $0x50] sm:$0xff] }
  0x65   :  { %2871 = vmatprep.subr.bf16.mxu1 %v2870_v56  ;;  %v3152_v56 = vld [vmem:[%s4465_s1 + $0x3f0] ss:$8 sps:$4 sm:$0xff]  }
  0x67   :  { %935 = vmatpush1.bf16.msra.mxu0 %v3038_v58  ;;  %v1060_v58 = vld [vmem:[%s4467_s3 + $0x58] sm:$0xff] }
  0x68   :  { %936 = vmatprep.subr.bf16.mxu0 %v3043_v59  ;;  %v1077_v59 = vld [vmem:[%s4467_s3 + $0xe0] sm:$0xff] }
  0x6b   :  { %937 = vmatpush1.bf16.msra.mxu0 %v3041_v60  ;;  %v1078_v60 = vld [vmem:[%s4467_s3 + $0xe8] sm:$0xff] }
  0x6c   :  { %938 = vmatprep.subr.bf16.mxu0 %v3046_v61  ;;  %v3077_v61 = vld [vmem:[%s4465_s1 + $0x260] ss:$8 sps:$4 sm:$0xff]  }
  0x6f   :  { %939 = vmatpush1.bf16.msra.mxu0 %v3044_v62  ;;  %v2872_v62 = vpack.c.bf16 %v1060_v58, %v1059_v57  ;;  %v2498_v57 = vcombine.low %v3650_v24, %v3655_v25  ;;  %v1079_v58 = vld [vmem:[%s4467_s3 + $0xf0] sm:$0xff] }
  0x70   :  { %940 = vmatprep.subr.bf16.mxu0 %v3049_v63  ;;  %v3082_v63 = vld [vmem:[%s4465_s1 + $0x274] ss:$8 sps:$4 sm:$0xff]  }
  0x71   :  { %2873 = vmatpush3.bf16.msra.mxu1 %v2872_v62  ;;  %v1064_v62 = vld [vmem:[%s4467_s3 + $0x78] sm:$0xff] }
  0x73   :  { %941 = vmatpush1.bf16.msra.mxu0 %v3047_v0  ;;  %v2874_v0 = vpack.c.bf16 %v1078_v60, %v1077_v59  ;;  %v1080_v59 = vld [vmem:[%s4467_s3 + $0xf8] sm:$0xff] }
  0x74   :  { %942 = vmatprep.subr.bf16.mxu0 %v3052_v1  ;;  %v1061_v1 = vld [vmem:[%s4467_s3 + $0x60] sm:$0xff]  ;;  %v2878_v60 = vpack.c.bf16 %v1080_v59, %v1079_v58  ;;  %v1176_v59 = vld [vmem:[%s4468_s5 + $0x68] sm:$0xff] }
  0x75   :  { %2875 = vmatprep.subr.bf16.mxu1 %v2874_v0  ;;  %v1179_v0 = vld [vmem:[%s4468_s5 + $0x80] sm:$0xff] }
  0x76   :  { %v1175_v58 = vld [vmem:[%s4468_s5 + $0x60] sm:$0xff] }
  0x77   :  { %943 = vmatpush1.bf16.msra.mxu0 %v3050_v2  ;;  %v1062_v2 = vld [vmem:[%s4467_s3 + $0x68] sm:$0xff] }
  0x78   :  { %944 = vmatprep.subr.bf16.mxu0 %v3055_v3  ;;  %v3080_v3 = vld [vmem:[%s4465_s1 + $0x270] ss:$8 sps:$4 sm:$0xff]  }
  0x7b   :  { %945 = vmatpush1.bf16.msra.mxu0 %v3053_v4  ;;  %v2876_v4 = vpack.c.bf16 %v1062_v2, %v1061_v1  ;;  %v1180_v1 = vld [vmem:[%s4468_s5 + $0x88] sm:$0xff] }
  0x7c   :  { %946 = vmatprep.subr.bf16.mxu0 %v3058_v5  ;;  %v3085_v5 = vld [vmem:[%s4465_s1 + $0x284] ss:$8 sps:$4 sm:$0xff]   ;;  %v2882_v2 = vpack.c.bf16 %v1180_v1, %v1179_v0  ;;  %v1177_v0 = vld [vmem:[%s4468_s5 + $0x70] sm:$0xff]  ;;  %v1178_v1 = vld [vmem:[%s4468_s5 + $0x78] sm:$0xff] }
  0x7d   :  { %2877 = vmatpush3.bf16.msra.mxu1 %v2876_v4 }
  0x7e   :  { %2879 = vmatprep.subr.bf16.mxu1 %v2878_v60  ;;  %v1193_v60 = vld [vmem:[%s4468_s5 + $0xf0] sm:$0xff] }
  0x7f   :  { %947 = vmatpush1.bf16.msra.mxu0 %v3056_v6  ;;  %v3083_v6 = vld [vmem:[%s4465_s1 + $0x280] ss:$8 sps:$4 sm:$0xff]  }
  0x80   :  { %959 = vmatprep.subr.bf16.mxu0 %v3061_v7  ;;  %v3088_v7 = vld [vmem:[%s4465_s1 + $0x294] ss:$8 sps:$4 sm:$0xff]  }
  0x82   :  { %949 = vmatmul.mubr.bf16.vlgmr.msra.gmra.mrb[0].mxu0 %v2494_v10  ;;  %v3086_v10 = vld [vmem:[%s4465_s1 + $0x290] ss:$8 sps:$4 sm:$0xff]  }
  0x83   :  { %960 = vmatpush1.bf16.msra.mxu0 %v3059_v11  ;;  %991 = vmatprep.mubr.bf16.mxu0 %v2497_v12  ;;  %v3091_v11 = vld [vmem:[%s4465_s1 + $0x2a4] ss:$8 sps:$4 sm:$0xff]   ;;  %v3089_v12 = vld [vmem:[%s4465_s1 + $0x2a0] ss:$8 sps:$4 sm:$0xff]  }
  0x84   :  { %961 = vmatprep.subr.bf16.mxu0 %v3064_v13  ;;  %v3094_v13 = vld [vmem:[%s4465_s1 + $0x2b4] ss:$8 sps:$4 sm:$0xff]  }
  0x87   :  { %962 = vmatpush1.bf16.msra.mxu0 %v3062_v14  ;;  %v3092_v14 = vld [vmem:[%s4465_s1 + $0x2b0] ss:$8 sps:$4 sm:$0xff]  }
  0x88   :  { %963 = vmatprep.subr.bf16.mxu0 %v3067_v15  ;;  %v3097_v15 = vld [vmem:[%s4465_s1 + $0x2c4] ss:$8 sps:$4 sm:$0xff]  }
  0x8b   :  { %964 = vmatpush1.bf16.msra.mxu0 %v3065_v29  ;;  %v3112_v29 = vld [vmem:[%s4465_s1 + $0x314] ss:$8 sps:$4 sm:$0xff]  }
  0x8c   :  { %965 = vmatprep.subr.bf16.mxu0 %v3070_v31  ;;  %v3118_v31 = vld [vmem:[%s4465_s1 + $0x334] ss:$8 sps:$4 sm:$0xff]  }
  0x8f   :  { %966 = vmatpush1.bf16.msra.mxu0 %v3068_v37  ;;  %v3127_v37 = vld [vmem:[%s4465_s1 + $0x364] ss:$8 sps:$4 sm:$0xff]  }
  0x90   :  { %967 = vmatprep.subr.bf16.mxu0 %v3073_v39  ;;  %v3130_v39 = vld [vmem:[%s4465_s1 + $0x374] ss:$8 sps:$4 sm:$0xff]  }
  0x93   :  { %968 = vmatpush1.bf16.msra.mxu0 %v3071_v45  ;;  %v3139_v45 = vld [vmem:[%s4465_s1 + $0x3a4] ss:$8 sps:$4 sm:$0xff]  }
  0x94   :  { %969 = vmatprep.subr.bf16.mxu0 %v3076_v47  ;;  %v3142_v47 = vld [vmem:[%s4465_s1 + $0x3b4] ss:$8 sps:$4 sm:$0xff]  }
  0x97   :  { %970 = vmatpush1.bf16.msra.mxu0 %v3074_v53  ;;  %v3151_v53 = vld [vmem:[%s4465_s1 + $0x3e4] ss:$8 sps:$4 sm:$0xff]  }
  0x98   :  { %971 = vmatprep.subr.bf16.mxu0 %v3079_v55  ;;  %v3154_v55 = vld [vmem:[%s4465_s1 + $0x3f4] ss:$8 sps:$4 sm:$0xff]  }
  0x9b   :  { %972 = vmatpush1.bf16.msra.mxu0 %v3077_v61  ;;  %v1063_v61 = vld [vmem:[%s4467_s3 + $0x70] sm:$0xff] }
  0x9c   :  { %973 = vmatprep.subr.bf16.mxu0 %v3082_v63  ;;  %v2880_v63 = vpack.c.bf16 %v1064_v62, %v1063_v61  ;;  %v1194_v61 = vld [vmem:[%s4468_s5 + $0xf8] sm:$0xff]  ;;  %v2908_v62 = vpack.c.bf16 %v1176_v59, %v1175_v58 }
  0x9e   :  { %2881 = vmatpush3.bf16.msra.mxu1 %v2880_v63  ;;  %v2910_v63 = vpack.c.bf16 %v1194_v61, %v1193_v60  ;;  %v1423_v60 = vld [vmem:[%s4471_s10 + $0x38] sm:$0xff] }
  0x9f   :  { %974 = vmatpush1.bf16.msra.mxu0 %v3080_v3  ;;  %2883 = vmatprep.subr.bf16.mxu1 %v2882_v2  ;;  %v183_v3 = vlaneseq  ;;  %v2912_v2 = vpack.c.bf16 %v1178_v1, %v1177_v0  ;;  %v1431_v0 = vld [vmem:[%s4471_s10 + $0x78] sm:$0xff] }
  0xa0   :  { %975 = vmatprep.subr.bf16.mxu0 %v3085_v5 }
  0xa1   :  { %v3774_v4 = vshrl.u32 %v183_v3, 7  ;;  %v1290_v3 = vld [vmem:[%s4470_s8 + $0x8] sm:$0xff] }
  0xa3   :  { %976 = vmatpush1.bf16.msra.mxu0 %v3083_v6  ;;  %v3777_v5 = vsub.s32 0, %v3774_v4  ;;  %v181_v6 = vld [vmem:[%s4469_s2] sm:$0x3] }
  0xa4   :  { %977 = vmatprep.subr.bf16.mxu0 %v3088_v7  ;;  %v3783_v7 = vsub.s32 1, %v3774_v4 }
  0xa7   :  { %978 = vmatpush1.bf16.msra.mxu0 %v3086_v10  ;;  %v186_v10 = vrot.slane %v181_v6, %v3777_v5 }
  0xa8   :  { %979 = vmatprep.subr.bf16.mxu0 %v3091_v11  ;;  %v190_v11 = vrot.slane %v181_v6, %v3783_v7  ;;  %v1292_v6 = vld [vmem:[%s4470_s8 + $0x18] sm:$0xff] }
  0xab   :  { %980 = vmatpush1.bf16.msra.mxu0 %v3089_v12 }
  0xac   :  { %981 = vmatprep.subr.bf16.mxu0 %v3094_v13 }
  0xaf   :  { %982 = vmatpush1.bf16.msra.mxu0 %v3092_v14 }
  0xb0   :  { %983 = vmatprep.subr.bf16.mxu0 %v3097_v15  ;;  %v1163_v15 = vld [vmem:[%s4468_s5] sm:$0xff] }
  0xb3   :  { %984 = vmatpush1.bf16.msra.mxu0 %v3095_v16  ;;  %v1164_v16 = vld [vmem:[%s4468_s5 + $0x8] sm:$0xff] }
  0xb4   :  { %985 = vmatprep.subr.bf16.mxu0 %v3100_v17  ;;  %v2884_v24 = vpack.c.bf16 %v1164_v16, %v1163_v15 }
  0xb7   :  { %986 = vmatpush1.bf16.msra.mxu0 %v3098_v18 }
  0xb8   :  { %987 = vmatprep.subr.bf16.mxu0 %v3103_v19  ;;  %v1181_v19 = vld [vmem:[%s4468_s5 + $0x90] sm:$0xff] }
  0xbb   :  { %988 = vmatpush1.bf16.msra.mxu0 %v3101_v20  ;;  %v1182_v20 = vld [vmem:[%s4468_s5 + $0x98] sm:$0xff] }
  0xbc   :  { %989 = vmatprep.subr.bf16.mxu0 %v3106_v21 }
  0xbf   :  { %990 = vmatpush1.bf16.msra.mxu0 %v3104_v22 }
  0xc0   :  { %1002 = vmatprep.subr.bf16.mxu0 %v3109_v23 }
  0xc2   :  { %992 = vmatmul.mubr.bf16.vlgmr.msra.gmra.mrb[0].mxu0 %v2496_v26 }
  0xc3   :  { %1003 = vmatpush1.bf16.msra.mxu0 %v3107_v27  ;;  %1034 = vmatprep.mubr.bf16.mxu0 %v2499_v28  ;;  %v2886_v27 = vpack.c.bf16 %v1182_v20, %v1181_v19  ;;  %v1165_v28 = vld [vmem:[%s4468_s5 + $0x10] sm:$0xff]  ;;  %v1298_v20 = vld [vmem:[%s4470_s8 + $0x48] sm:$0xff] }
  0xc4   :  { %1004 = vmatprep.subr.bf16.mxu0 %v3112_v29  ;;  %v1166_v29 = vld [vmem:[%s4468_s5 + $0x18] sm:$0xff] }
  0xc7   :  { %1005 = vmatpush1.bf16.msra.mxu0 %v3110_v30 }
  0xc8   :  { %1006 = vmatprep.subr.bf16.mxu0 %v3115_v8  ;;  %v1183_v8 = vld [vmem:[%s4468_s5 + $0xa0] sm:$0xff] }
  0xcb   :  { %1007 = vmatpush1.bf16.msra.mxu0 %v3113_v9  ;;  %v1184_v9 = vld [vmem:[%s4468_s5 + $0xa8] sm:$0xff] }
  0xcc   :  { %1008 = vmatprep.subr.bf16.mxu0 %v3118_v31  ;;  %v2888_v31 = vpack.c.bf16 %v1166_v29, %v1165_v28  ;;  %v1301_v29 = vld [vmem:[%s4470_s8 + $0x60] sm:$0xff] }
  0xcf   :  { %1009 = vmatpush1.bf16.msra.mxu0 %v3116_v32 }
  0xd0   :  { %1010 = vmatprep.subr.bf16.mxu0 %v3121_v33  ;;  %v2890_v33 = vpack.c.bf16 %v1184_v9, %v1183_v8  ;;  %v1306_v9 = vld [vmem:[%s4470_s8 + $0x88] sm:$0xff] }
  0xd3   :  { %1011 = vmatpush1.bf16.msra.mxu0 %v3119_v34  ;;  %v1167_v34 = vld [vmem:[%s4468_s5 + $0x20] sm:$0xff] }
  0xd4   :  { %1012 = vmatprep.subr.bf16.mxu0 %v3124_v35  ;;  %v1168_v35 = vld [vmem:[%s4468_s5 + $0x28] sm:$0xff] }
  0xd7   :  { %1013 = vmatpush1.bf16.msra.mxu0 %v3122_v36  ;;  %v1185_v36 = vld [vmem:[%s4468_s5 + $0xb0] sm:$0xff] }
  0xd8   :  { %1014 = vmatprep.subr.bf16.mxu0 %v3127_v37  ;;  %v1186_v37 = vld [vmem:[%s4468_s5 + $0xb8] sm:$0xff] }
  0xdb   :  { %1015 = vmatpush1.bf16.msra.mxu0 %v3125_v38  ;;  %v2892_v38 = vpack.c.bf16 %v1168_v35, %v1167_v34  ;;  %v1307_v34 = vld [vmem:[%s4470_s8 + $0x90] sm:$0xff] }
  0xdc   :  { %1016 = vmatprep.subr.bf16.mxu0 %v3130_v39  ;;  %v2894_v39 = vpack.c.bf16 %v1186_v37, %v1185_v36  ;;  %v1310_v36 = vld [vmem:[%s4470_s8 + $0xa8] sm:$0xff]  ;;  %v1312_v37 = vld [vmem:[%s4470_s8 + $0xb8] sm:$0xff] }
  0xdf   :  { %1017 = vmatpush1.bf16.msra.mxu0 %v3128_v40  ;;  %v1169_v40 = vld [vmem:[%s4468_s5 + $0x30] sm:$0xff] }
  0xe0   :  { %1018 = vmatprep.subr.bf16.mxu0 %v3133_v41  ;;  %v1170_v41 = vld [vmem:[%s4468_s5 + $0x38] sm:$0xff] }
  0xe3   :  { %1019 = vmatpush1.bf16.msra.mxu0 %v3131_v42  ;;  %v1187_v42 = vld [vmem:[%s4468_s5 + $0xc0] sm:$0xff] }
  0xe4   :  { %1020 = vmatprep.subr.bf16.mxu0 %v3136_v43  ;;  %v1188_v43 = vld [vmem:[%s4468_s5 + $0xc8] sm:$0xff] }
  0xe7   :  { %1021 = vmatpush1.bf16.msra.mxu0 %v3134_v44  ;;  %v2896_v44 = vpack.c.bf16 %v1170_v41, %v1169_v40  ;;  %v1311_v40 = vld [vmem:[%s4470_s8 + $0xb0] sm:$0xff] }
  0xe8   :  { %1022 = vmatprep.subr.bf16.mxu0 %v3139_v45  ;;  %v2898_v45 = vpack.c.bf16 %v1188_v43, %v1187_v42  ;;  %v1314_v42 = vld [vmem:[%s4470_s8 + $0xc8] sm:$0xff]  ;;  %v1316_v43 = vld [vmem:[%s4470_s8 + $0xd8] sm:$0xff] }
  0xeb   :  { %1023 = vmatpush1.bf16.msra.mxu0 %v3137_v46  ;;  %v1171_v46 = vld [vmem:[%s4468_s5 + $0x40] sm:$0xff] }
  0xec   :  { %1024 = vmatprep.subr.bf16.mxu0 %v3142_v47  ;;  %v1172_v47 = vld [vmem:[%s4468_s5 + $0x48] sm:$0xff] }
  0xef   :  { %1025 = vmatpush1.bf16.msra.mxu0 %v3140_v48  ;;  %v1189_v48 = vld [vmem:[%s4468_s5 + $0xd0] sm:$0xff] }
  0xf0   :  { %1026 = vmatprep.subr.bf16.mxu0 %v3145_v49  ;;  %v1190_v49 = vld [vmem:[%s4468_s5 + $0xd8] sm:$0xff] }
  0xf3   :  { %1027 = vmatpush1.bf16.msra.mxu0 %v3143_v50  ;;  %v2900_v50 = vpack.c.bf16 %v1172_v47, %v1171_v46  ;;  %v1315_v46 = vld [vmem:[%s4470_s8 + $0xd0] sm:$0xff]  ;;  %v1318_v47 = vld [vmem:[%s4470_s8 + $0xe8] sm:$0xff] }
  0xf4   :  { %1028 = vmatprep.subr.bf16.mxu0 %v3148_v51  ;;  %v2902_v51 = vpack.c.bf16 %v1190_v49, %v1189_v48  ;;  %v1320_v48 = vld [vmem:[%s4470_s8 + $0xf8] sm:$0xff]  ;;  %v3159_v49 = vmov 0.0  }
  0xf7   :  { %1029 = vmatpush1.bf16.msra.mxu0 %v3146_v52  ;;  %v1173_v52 = vld [vmem:[%s4468_s5 + $0x50] sm:$0xff] }
  0xf8   :  { %1030 = vmatprep.subr.bf16.mxu0 %v3151_v53  ;;  %v1174_v53 = vld [vmem:[%s4468_s5 + $0x58] sm:$0xff] }
  0xfb   :  { %1031 = vmatpush1.bf16.msra.mxu0 %v3149_v54  ;;  %v1191_v54 = vld [vmem:[%s4468_s5 + $0xe0] sm:$0xff] }
  0xfc   :  { %1032 = vmatprep.subr.bf16.mxu0 %v3154_v55  ;;  %v1192_v55 = vld [vmem:[%s4468_s5 + $0xe8] sm:$0xff] }
  0xff   :  { %1033 = vmatpush1.bf16.msra.mxu0 %v3152_v56  ;;  %v2904_v56 = vpack.c.bf16 %v1174_v53, %v1173_v52  ;;  %v1317_v52 = vld [vmem:[%s4470_s8 + $0xe0] sm:$0xff]  ;;  %v1319_v53 = vld [vmem:[%s4470_s8 + $0xf0] sm:$0xff] }
 0x102   :  { %1035 = vmatmul.mubr.bf16.vlgmr.msra.gmra.mrb[0].mxu0 %v2498_v57  ;;  %v2906_v57 = vpack.c.bf16 %v1192_v55, %v1191_v54  ;;  %v2944_v54 = vpack.c.bf16 %v1319_v53, %v1317_v52  ;;  %v3990_v55 = vld [vmem:[%s4471_s10] sm:$0xff] }
 0x103   :  { %v2628_v52 = vld [vmem:[%s4472_s4] ss:$0 sm:$0xff] }
 0x1d5   :  { %v1036_v12 = vpop.f32.mrb[0].mxu0 }
 0x1d6   :  { %v3787_v13 = vadd.f32 %v1036_v12, %v186_v10  ;;  %v1038_v14 = vpop.f32.mrb[1].mxu0  ;;  %v1291_v12 = vld [vmem:[%s4470_s8 + $0x10] sm:$0xff] }
 0x1d7   :  { %v2947_v17 = vadd.f32 %v1038_v14, %v190_v11  ;;  %v1040_v18 = vpop.f32.mrb[2].mxu0  ;;  %v1296_v14 = vld [vmem:[%s4470_s8 + $0x38] sm:$0xff] }
 0x1d8   :  { %v1042_v21 = vpop.f32.mrb[3].mxu0  ;;  %v1045_v25 = vmax.f32 %v3787_v13, 0.0  ;;  %v3804_v26 = vadd.f32 %v1040_v18, %v186_v10  ;;  %v1289_v10 = vld [vmem:[%s4470_s8] sm:$0xff]  ;;  %v1294_v13 = vld [vmem:[%s4470_s8 + $0x28] sm:$0xff]  ;;  %v1295_v18 = vld [vmem:[%s4470_s8 + $0x30] sm:$0xff] }
 0x1d9   :  { %v1046_v22 = vmax.f32 %v2947_v17, 0.0  ;;  %v3801_v23 = vadd.f32 %v1042_v21, %v190_v11  ;;  %v2914_v11 = vpack.c.bf16 %v1292_v6, %v1290_v3  ;;  %v2916_v15 = vpack.c.bf16 %v1291_v12, %v1289_v10  ;;  %v1293_v17 = vld [vmem:[%s4470_s8 + $0x20] sm:$0xff]  ;;  %v1300_v21 = vld [vmem:[%s4470_s8 + $0x58] sm:$0xff] }
 0x1da   :  { %v1047_v32 = vmax.f32 %v3804_v26, 0.0  ;;  %v2918_v16 = vpack.c.bf16 %v1296_v14, %v1294_v13  ;;  %v2920_v19 = vpack.c.bf16 %v1295_v18, %v1293_v17  ;;  %v1302_v26 = vld [vmem:[%s4470_s8 + $0x68] sm:$0xff]  ;;  %v1439_v3 = vld [vmem:[%s4471_s10 + $0xb8] sm:$0xff] }
 0x1db   :  { %v1048_v30 = vmax.f32 %v3801_v23, 0.0  ;;  %1152 = vmatprep.mubr.f32.mxu1 %v1046_v22  ;;  %v1297_v23 = vld [vmem:[%s4470_s8 + $0x40] sm:$0xff]  ;;  %v1447_v12 = vld [vmem:[%s4471_s10 + $0xf8] sm:$0xff] }
 0x1dc   :  { %1153 = vmatmul.mubr.f32.vlgmr.msra.gmra.mrb[0].mxu1 %v1045_v25 }
 0x1dd   :  { %2885 = vmatpush3.bf16.msra.mxu1 %v2884_v24  ;;  %1157 = vmatprep.mubr.f32.mxu1 %v1048_v30  ;;  %v1299_v24 = vld [vmem:[%s4470_s8 + $0x50] sm:$0xff] }
 0x1de   :  { %2887 = vmatprep.subr.bf16.mxu1 %v2886_v27  ;;  %v1304_v27 = vld [vmem:[%s4470_s8 + $0x78] sm:$0xff] }
 0x1df   :  { %v2926_v28 = vpack.c.bf16 %v1304_v27, %v1302_v26  ;;  %v1475_v27 = vld [vmem:[%s4471_s10 + $0x1d8] sm:$0xff] }
 0x1e0   :  { %1158 = vmatmul.mubr.f32.gmra.mrb[2].mxu1 %v1047_v32 }
 0x1e1   :  { %2889 = vmatpush3.bf16.msra.mxu1 %v2888_v31  ;;  %1266 = vmatprep.mubr.f32.mxu1 %v1046_v22  ;;  %v2922_v22 = vpack.c.bf16 %v1300_v21, %v1298_v20  ;;  %v1308_v31 = vld [vmem:[%s4470_s8 + $0x98] sm:$0xff] }
 0x1e2   :  { %2891 = vmatprep.subr.bf16.mxu1 %v2890_v33  ;;  %v1305_v33 = vld [vmem:[%s4470_s8 + $0x80] sm:$0xff]  ;;  %v1463_v20 = vld [vmem:[%s4471_s10 + $0x178] sm:$0xff] }
 0x1e3   :  { %v2932_v35 = vpack.c.bf16 %v1307_v34, %v1305_v33  ;;  %v1491_v33 = vld [vmem:[%s4471_s10 + $0x258] sm:$0xff] }
 0x1e4   :  { %v1495_v34 = vld [vmem:[%s4471_s10 + $0x278] sm:$0xff] }
 0x1e5   :  { %2893 = vmatpush3.bf16.msra.mxu1 %v2892_v38  ;;  %v2934_v38 = vpack.c.bf16 %v1312_v37, %v1310_v36  ;;  %v2709_v36 = vcombine.high %v1491_v33, %v1495_v34  ;;  %v1499_v37 = vld [vmem:[%s4471_s10 + $0x298] sm:$0xff] }
 0x1e6   :  { %2895 = vmatprep.subr.bf16.mxu1 %v2894_v39  ;;  %v1309_v39 = vld [vmem:[%s4470_s8 + $0xa0] sm:$0xff] }
 0x1e7   :  { %v2936_v41 = vpack.c.bf16 %v1311_v40, %v1309_v39  ;;  %v2708_v39 = vcombine.low %v1491_v33, %v1495_v34  ;;  %v1456_v34 = vld [vmem:[%s4471_s10 + $0x140] sm:$0xff] }
 0x1e9   :  { %2897 = vmatpush3.bf16.msra.mxu1 %v2896_v44  ;;  %v1313_v44 = vld [vmem:[%s4470_s8 + $0xc0] sm:$0xff] }
 0x1ea   :  { %2899 = vmatprep.subr.bf16.mxu1 %v2898_v45  ;;  %v2938_v45 = vpack.c.bf16 %v1316_v43, %v1314_v42  ;;  %v1511_v42 = vld [vmem:[%s4471_s10 + $0x2f8] sm:$0xff] }
 0x1ed   :  { %2901 = vmatpush3.bf16.msra.mxu1 %v2900_v50  ;;  %v2940_v50 = vpack.c.bf16 %v1315_v46, %v1313_v44  ;;  %v1519_v46 = vld [vmem:[%s4471_s10 + $0x338] sm:$0xff] }
 0x1ee   :  { %2903 = vmatprep.subr.bf16.mxu1 %v2902_v51  ;;  %v2942_v51 = vpack.c.bf16 %v1320_v48, %v1318_v47 }
 0x1f1   :  { %2905 = vmatpush3.bf16.msra.mxu1 %v2904_v56  ;;  %v3995_v56 = vld [vmem:[%s4471_s10 + $0x20] sm:$0xff] }
 0x1f2   :  { %2907 = vmatprep.subr.bf16.mxu1 %v2906_v57  ;;  %v1419_v57 = vld [vmem:[%s4471_s10 + $0x18] sm:$0xff]  ;;  %v2630_v58 = vcombine.low %v3990_v55, %v3995_v56  ;;  %v2631_v59 = vcombine.high %v3990_v55, %v3995_v56  ;;  %v1448_v56 = vld [vmem:[%s4471_s10 + $0x100] sm:$0xff] }
 0x1f3   :  { %v2636_v61 = vcombine.low %v1419_v57, %v1423_v60 }
 0x1f5   :  { %2909 = vmatpush3.bf16.msra.mxu1 %v2908_v62  ;;  %v2637_v62 = vcombine.high %v1419_v57, %v1423_v60 }
 0x1f6   :  { %2911 = vmatprep.subr.bf16.mxu1 %v2910_v63  ;;  %v1427_v63 = vld [vmem:[%s4471_s10 + $0x58] sm:$0xff] }
 0x1f7   :  { %v2645_v1 = vcombine.high %v1427_v63, %v1431_v0  ;;  %2355 = vmatprep.subr.bf16.mxu0 %v2637_v62  ;;  %v2644_v6 = vcombine.low %v1427_v63, %v1431_v0  ;;  %v2629_v0 = vld [vmem:[%s4474_s6] ss:$0 sm:$0xff] }
 0x1f8   :  { %2356 = vmatpush1.bf16.msra.mxu0 %v2636_v61 }
 0x1f9   :  { %2913 = vmatpush3.bf16.msra.mxu1 %v2912_v2  ;;  %v1435_v2 = vld [vmem:[%s4471_s10 + $0x98] sm:$0xff]  ;;  %2357 = vmatprep.subr.bf16.mxu0 %v2645_v1 }
 0x1fa   :  { %2915 = vmatprep.subr.bf16.mxu1 %v2914_v11  ;;  %v2653_v10 = vcombine.high %v1435_v2, %v1439_v3  ;;  %v1443_v11 = vld [vmem:[%s4471_s10 + $0xd8] sm:$0xff]  ;;  %v2652_v13 = vcombine.low %v1435_v2, %v1439_v3 }
 0x1fb   :  { %v2661_v14 = vcombine.high %v1443_v11, %v1447_v12  ;;  %v2660_v17 = vcombine.low %v1443_v11, %v1447_v12 }
 0x1fc   :  { %1267 = vmatmul.mubr.f32.vlgmr.msra.gmra.mrb[4].mxu1 %v1045_v25  ;;  %v2924_v25 = vpack.c.bf16 %v1299_v24, %v1297_v23  ;;  %2358 = vmatpush1.bf16.msra.mxu0 %v2644_v6  ;;  %v1467_v23 = vld [vmem:[%s4471_s10 + $0x198] sm:$0xff] }
 0x1fd   :  { %1271 = vmatprep.mubr.f32.mxu1 %v1048_v30  ;;  %2917 = vmatpush1.bf16.msra.mxu1 %v2916_v15  ;;  %v1303_v30 = vld [vmem:[%s4470_s8 + $0x70] sm:$0xff]  ;;  %v1451_v15 = vld [vmem:[%s4471_s10 + $0x118] sm:$0xff] }
 0x1fe   :  { %2919 = vmatprep.subr.bf16.mxu1 %v2918_v16  ;;  %v2928_v8 = vpack.c.bf16 %v1303_v30, %v1301_v29  ;;  %2359 = vmatprep.subr.bf16.mxu0 %v2653_v10  ;;  %v1455_v16 = vld [vmem:[%s4471_s10 + $0x138] sm:$0xff] }
 0x1ff   :  { %v2669_v18 = vcombine.high %v1451_v15, %v1455_v16  ;;  %v2668_v21 = vcombine.low %v1451_v15, %v1455_v16  ;;  %v1471_v24 = vld [vmem:[%s4471_s10 + $0x1b8] sm:$0xff] }
 0x200   :  { %1272 = vmatmul.mubr.f32.gmra.mrb[6].mxu1 %v1047_v32  ;;  %v2930_v32 = vpack.c.bf16 %v1308_v31, %v1306_v9  ;;  %2360 = vmatpush1.bf16.msra.mxu0 %v2652_v13  ;;  %v2685_v26 = vcombine.high %v1467_v23, %v1471_v24  ;;  %v2684_v29 = vcombine.low %v1467_v23, %v1471_v24  ;;  %v1487_v9 = vld [vmem:[%s4471_s10 + $0x238] sm:$0xff] }
 0x201   :  { %2921 = vmatpush1.bf16.msra.mxu1 %v2920_v19  ;;  %1397 = vmatprep.mubr.f32.mxu1 %v3159_v49  ;;  %v1459_v19 = vld [vmem:[%s4471_s10 + $0x158] sm:$0xff] }
 0x202   :  { %2923 = vmatprep.subr.bf16.mxu1 %v2922_v22  ;;  %2361 = vmatprep.subr.bf16.mxu0 %v2661_v14  ;;  %v2677_v22 = vcombine.high %v1459_v19, %v1463_v20 }
 0x204   :  { %2362 = vmatpush1.bf16.msra.mxu0 %v2660_v17  ;;  %v1277_v17 = vld [vmem:[%s4476_s7] sm:$0xff] }
 0x205   :  { %2925 = vmatpush1.bf16.msra.mxu1 %v2924_v25  ;;  %2363 = vmatprep.subr.bf16.mxu0 %v2669_v18  ;;  %v2676_v25 = vcombine.low %v1459_v19, %v1463_v20  ;;  %v1424_v19 = vld [vmem:[%s4471_s10 + $0x40] sm:$0xff] }
 0x206   :  { %2927 = vmatprep.subr.bf16.mxu1 %v2926_v28  ;;  %v1479_v28 = vld [vmem:[%s4471_s10 + $0x1f8] sm:$0xff]  ;;  %v1428_v20 = vld [vmem:[%s4471_s10 + $0x60] sm:$0xff] }
 0x207   :  { %v2693_v30 = vcombine.high %v1475_v27, %v1479_v28  ;;  %v2692_v31 = vcombine.low %v1475_v27, %v1479_v28  ;;  %v2639_v24 = vcombine.high %v1424_v19, %v1428_v20  ;;  %v1436_v27 = vld [vmem:[%s4471_s10 + $0xa0] sm:$0xff] }
 0x208   :  { %2364 = vmatpush1.bf16.msra.mxu0 %v2668_v21 }
 0x209   :  { %2929 = vmatpush1.bf16.msra.mxu1 %v2928_v8  ;;  %2365 = vmatprep.subr.bf16.mxu0 %v2677_v22  ;;  %v1483_v8 = vld [vmem:[%s4471_s10 + $0x218] sm:$0xff]  ;;  %v1278_v22 = vld [vmem:[%s4476_s7 + $0x8] sm:$0xff] }
 0x20a   :  { %2931 = vmatprep.subr.bf16.mxu1 %v2930_v32  ;;  %v2701_v32 = vcombine.high %v1483_v8, %v1487_v9 }
 0x20c   :  { %2366 = vmatpush1.bf16.msra.mxu0 %v2676_v25 }
 0x20d   :  { %2933 = vmatpush1.bf16.msra.mxu1 %v2932_v35  ;;  %2367 = vmatprep.subr.bf16.mxu0 %v2685_v26  ;;  %v2700_v35 = vcombine.low %v1483_v8, %v1487_v9  ;;  %v1432_v26 = vld [vmem:[%s4471_s10 + $0x80] sm:$0xff] }
 0x20e   :  { %2935 = vmatprep.subr.bf16.mxu1 %v2934_v38  ;;  %v1503_v38 = vld [vmem:[%s4471_s10 + $0x2b8] sm:$0xff]  ;;  %v2647_v8 = vcombine.high %v1432_v26, %v1436_v27  ;;  %v1440_v9 = vld [vmem:[%s4471_s10 + $0xc0] sm:$0xff] }
 0x20f   :  { %v2717_v40 = vcombine.high %v1499_v37, %v1503_v38  ;;  %v2716_v43 = vcombine.low %v1499_v37, %v1503_v38  ;;  %v1464_v38 = vld [vmem:[%s4471_s10 + $0x180] sm:$0xff] }
 0x210   :  { %2368 = vmatpush1.bf16.msra.mxu0 %v2684_v29  ;;  %v2638_v29 = vcombine.low %v1424_v19, %v1428_v20  ;;  %v1528_v20 = vld [vmem:[%s4471_s10 + $0x380] sm:$0xff] }
 0x211   :  { %2937 = vmatpush1.bf16.msra.mxu1 %v2936_v41  ;;  %2369 = vmatprep.subr.bf16.mxu0 %v2693_v30  ;;  %v1507_v41 = vld [vmem:[%s4471_s10 + $0x2d8] sm:$0xff] }
 0x212   :  { %2939 = vmatprep.subr.bf16.mxu1 %v2938_v45  ;;  %v2725_v44 = vcombine.high %v1507_v41, %v1511_v42  ;;  %v1515_v45 = vld [vmem:[%s4471_s10 + $0x318] sm:$0xff]  ;;  %v2724_v47 = vcombine.low %v1507_v41, %v1511_v42  ;;  %v1472_v42 = vld [vmem:[%s4471_s10 + $0x1c0] sm:$0xff] }
 0x213   :  { %v2733_v48 = vcombine.high %v1515_v45, %v1519_v46 }
 0x214   :  { %2370 = vmatpush1.bf16.msra.mxu0 %v2692_v31  ;;  %v1444_v31 = vld [vmem:[%s4471_s10 + $0xe0] sm:$0xff] }
 0x215   :  { %2941 = vmatpush1.bf16.msra.mxu1 %v2940_v50  ;;  %2371 = vmatprep.subr.bf16.mxu0 %v2701_v32  ;;  %v2732_v50 = vcombine.low %v1515_v45, %v1519_v46  ;;  %v2655_v55 = vcombine.high %v1440_v9, %v1444_v31  ;;  %v2654_v32 = vcombine.low %v1440_v9, %v1444_v31  ;;  %v1480_v46 = vld [vmem:[%s4471_s10 + $0x200] sm:$0xff]  ;;  %v1543_v9 = vld [vmem:[%s4471_s10 + $0x3f8] sm:$0xff] }
 0x216   :  { %2943 = vmatprep.subr.bf16.mxu1 %v2942_v51 }
 0x218   :  { %2372 = vmatpush1.bf16.msra.mxu0 %v2700_v35  ;;  %v1460_v35 = vld [vmem:[%s4471_s10 + $0x160] sm:$0xff] }
 0x219   :  { %2945 = vmatpush1.bf16.msra.mxu1 %v2944_v54  ;;  %2373 = vmatprep.subr.bf16.mxu0 %v2709_v36  ;;  %v2671_v37 = vcombine.high %v1456_v34, %v1460_v35 }
 0x21a   :  { %2226 = vmatprep.subr.bf16.mxu1 %v2631_v59 }
 0x21c   :  { %2374 = vmatpush1.bf16.msra.mxu0 %v2708_v39  ;;  %v1468_v39 = vld [vmem:[%s4471_s10 + $0x1a0] sm:$0xff] }
 0x21d   :  { %2375 = vmatprep.subr.bf16.mxu0 %v2717_v40  ;;  %v2670_v40 = vcombine.low %v1456_v34, %v1460_v35  ;;  %v2679_v41 = vcombine.high %v1464_v38, %v1468_v39  ;;  %v1321_v34 = vld [vmem:[%s4478_s9] sm:$0x3] }
 0x21e   :  { %v1326_v35 = vrot.slane %v1321_v34, %v3777_v5 }
 0x220   :  { %2376 = vmatpush1.bf16.msra.mxu0 %v2716_v43  ;;  %v1476_v43 = vld [vmem:[%s4471_s10 + $0x1e0] sm:$0xff] }
 0x221   :  { %2377 = vmatprep.subr.bf16.mxu0 %v2725_v44  ;;  %v2678_v44 = vcombine.low %v1464_v38, %v1468_v39  ;;  %v2687_v45 = vcombine.high %v1472_v42, %v1476_v43 }
 0x224   :  { %2378 = vmatpush1.bf16.msra.mxu0 %v2724_v47  ;;  %v1484_v47 = vld [vmem:[%s4471_s10 + $0x220] sm:$0xff] }
 0x225   :  { %2379 = vmatprep.subr.bf16.mxu0 %v2733_v48  ;;  %v2686_v48 = vcombine.low %v1472_v42, %v1476_v43 }
 0x228   :  { %2380 = vmatpush1.bf16.msra.mxu0 %v2732_v50  ;;  %v2695_v50 = vcombine.high %v1480_v46, %v1484_v47 }
 0x2af   :  { %v2806_v51 = vpop.f32.mrb[0].mxu1 }
 0x2b0   :  { %v2807_v53 = vpop.f32.mrb[1].mxu1 }
 0x2b1   :  { %v2808_v54 = vadd.f32 %v2807_v53, %v2806_v51  ;;  %v1488_v51 = vld [vmem:[%s4471_s10 + $0x240] sm:$0xff]  ;;  %v2694_v53 = vcombine.low %v1480_v46, %v1484_v47 }
 0x2b3   :  { %v1155_v57 = vadd.f32 %v2808_v54, %v2628_v52  ;;  %v2809_v59 = vpop.f32.mrb[2].mxu1 }
 0x2b4   :  { %v2810_v60 = vpop.f32.mrb[3].mxu1 }
 0x2b5   :  { %2414 = vst [vmem:[%s4473_s12] sm:$0xff] %v1155_v57  ;;  %v2811_v61 = vadd.f32 %v2810_v60, %v2809_v59  ;;  %v1500_v59 = vld [vmem:[%s4471_s10 + $0x2a0] sm:$0xff] }
 0x2b7   :  { %v1160_v62 = vadd.f32 %v2811_v61, %v2628_v52  ;;  %v1492_v52 = vld [vmem:[%s4471_s10 + $0x260] sm:$0xff] }
 0x2b8   :  { %v2703_v54 = vcombine.high %v1488_v51, %v1492_v52  ;;  %v2702_v60 = vcombine.low %v1488_v51, %v1492_v52  ;;  %v1429_v51 = vld [vmem:[%s4471_s10 + $0x68] sm:$0xff] }
 0x2b9   :  { %2415 = vst [vmem:[%s4473_s12 + $0x8] sm:$0xff] %v1160_v62 }
 0x2cf   :  { %v2844_v63 = vpop.f32.mrb[4].mxu1 }
 0x2d0   :  { %v2845_v1 = vpop.f32.mrb[5].mxu1 }
 0x2d1   :  { %v2846_v2 = vadd.f32 %v2845_v1, %v2844_v63  ;;  %v1508_v63 = vld [vmem:[%s4471_s10 + $0x2e0] sm:$0xff] }
 0x2d3   :  { %v1269_v3 = vadd.f32 %v2846_v2, %v2629_v0  ;;  %v2847_v6 = vpop.f32.mrb[6].mxu1  ;;  %v1512_v2 = vld [vmem:[%s4471_s10 + $0x300] sm:$0xff] }
 0x2d4   :  { %v2848_v10 = vpop.f32.mrb[7].mxu1 }
 0x2d5   :  { %v1279_v11 = vmul.f32 0.5, %v1269_v3  ;;  %2416 = vst [vmem:[%s4475_s13] sm:$0xff] %v1269_v3  ;;  %v2849_v12 = vadd.f32 %v2848_v10, %v2847_v6  ;;  %v1516_v3 = vld [vmem:[%s4471_s10 + $0x320] sm:$0xff] }
 0x2d6   :  { %v2727_v10 = vcombine.high %v1512_v2, %v1516_v3 }
 0x2d7   :  { %v1281_v13 = vmul.f32 1.442695, %v1279_v11  ;;  %v1274_v14 = vadd.f32 %v2849_v12, %v2629_v0  ;;  %v2726_v11 = vcombine.low %v1512_v2, %v1516_v3  ;;  %v1520_v12 = vld [vmem:[%s4471_s10 + $0x340] sm:$0xff]  ;;  %v1449_v2 = vld [vmem:[%s4471_s10 + $0x108] sm:$0xff] }
 0x2d8   :  { %v1453_v3 = vld [vmem:[%s4471_s10 + $0x128] sm:$0xff] }
 0x2d9   :  { %3155 = vpow2.f32 %v1281_v13  ;;  %v1280_v15 = vmul.f32 0.5, %v1274_v14  ;;  %2417 = vst [vmem:[%s4475_s13 + $0x8] sm:$0xff] %v1274_v14  ;;  %v1524_v13 = vld [vmem:[%s4471_s10 + $0x360] sm:$0xff] }
 0x2da   :  { %v2735_v14 = vcombine.high %v1520_v12, %v1524_v13 }
 0x2db   :  { %v1283_v16 = vmul.f32 1.442695, %v1280_v15  ;;  %v1523_v15 = vld [vmem:[%s4471_s10 + $0x358] sm:$0xff] }
 0x2dd   :  { %3157 = vpow2.f32 %v1283_v16  ;;  %v1527_v16 = vld [vmem:[%s4471_s10 + $0x378] sm:$0xff] }
 0x2de   :  { %v2740_v19 = vcombine.low %v1523_v15, %v1527_v16 }
 0x2e3   :  { %v3156_v18 = vpop.eup %3155 }
 0x2e4   :  { %v1285_v21 = vmul.f32 %v3156_v18, %v1277_v17  ;;  %v2734_v17 = vcombine.low %v1520_v12, %v1524_v13  ;;  %v2741_v18 = vcombine.high %v1523_v15, %v1527_v16  ;;  %v1461_v12 = vld [vmem:[%s4471_s10 + $0x168] sm:$0xff]  ;;  %v2664_v13 = vcombine.low %v1449_v2, %v1453_v3 }
 0x2e5   :  { %v1465_v15 = vld [vmem:[%s4471_s10 + $0x188] sm:$0xff] }
 0x2e6   :  { %v1287_v23 = vadd.f32 %v1285_v21, %v1155_v57  ;;  %v1496_v57 = vld [vmem:[%s4471_s10 + $0x280] sm:$0xff]  ;;  %2381 = vmatprep.subr.bf16.mxu0 %v2741_v18  ;;  %v1469_v16 = vld [vmem:[%s4471_s10 + $0x1a8] sm:$0xff] }
 0x2e7   :  { %v3158_v25 = vpop.eup %3157  ;;  %v2711_v61 = vcombine.high %v1496_v57, %v1500_v59  ;;  %v2710_v0 = vcombine.low %v1496_v57, %v1500_v59  ;;  %v1532_v21 = vld [vmem:[%s4471_s10 + $0x3a0] sm:$0xff]  ;;  %2382 = vmatpush1.bf16.msra.mxu0 %v2740_v19  ;;  %v1433_v57 = vld [vmem:[%s4471_s10 + $0x88] sm:$0xff]  ;;  %v2681_v18 = vcombine.high %v1465_v15, %v1469_v16 }
 0x2e8   :  { %1398 = vmatmul.mubr.f32.vlgmr.msra.gmra.mrb[8].mxu1 %v1287_v23  ;;  %v1286_v28 = vmul.f32 %v3158_v25, %v1278_v22  ;;  %2418 = vst [vmem:[%s4477_s14] sm:$0xff] %v1287_v23  ;;  %v2743_v22 = vcombine.high %v1528_v20, %v1532_v21  ;;  %v1531_v23 = vld [vmem:[%s4471_s10 + $0x398] sm:$0xff]  ;;  %v2742_v25 = vcombine.low %v1528_v20, %v1532_v21  ;;  %v1437_v59 = vld [vmem:[%s4471_s10 + $0xa8] sm:$0xff] }
 0x2e9   :  { %1403 = vmatprep.mubr.f32.mxu1 %v3159_v49  ;;  %2227 = vmatpush1.bf16.msra.mxu1 %v2630_v58  ;;  %v2646_v49 = vcombine.low %v1432_v26, %v1436_v27  ;;  %v1452_v58 = vld [vmem:[%s4471_s10 + $0x120] sm:$0xff]  ;;  %v1473_v19 = vld [vmem:[%s4471_s10 + $0x1c8] sm:$0xff]  ;;  %v2680_v21 = vcombine.low %v1465_v15, %v1469_v16  ;;  %v1458_v15 = vld [vmem:[%s4471_s10 + $0x150] sm:$0xff] }
 0x2ea   :  { %v1288_v30 = vadd.f32 %v1286_v28, %v1160_v62  ;;  %2228 = vmatprep.subr.bf16.mxu1 %v2639_v24  ;;  %v2663_v33 = vcombine.high %v1448_v56, %v1452_v58  ;;  %v2662_v36 = vcombine.low %v1448_v56, %v1452_v58  ;;  %v1504_v62 = vld [vmem:[%s4471_s10 + $0x2c0] sm:$0xff]  ;;  %v1535_v24 = vld [vmem:[%s4471_s10 + $0x3b8] sm:$0xff]  ;;  %v1417_v56 = vld [vmem:[%s4471_s10 + $0x8] sm:$0xff] }
 0x2eb   :  { %v2719_v1 = vcombine.high %v1504_v62, %v1508_v63  ;;  %v2718_v6 = vcombine.low %v1504_v62, %v1508_v63  ;;  %v2749_v26 = vcombine.high %v1531_v23, %v1535_v24  ;;  %v2748_v27 = vcombine.low %v1531_v23, %v1535_v24  ;;  %v1536_v28 = vld [vmem:[%s4471_s10 + $0x3c0] sm:$0xff]  ;;  %v1421_v58 = vld [vmem:[%s4471_s10 + $0x28] sm:$0xff]  ;;  %v1462_v16 = vld [vmem:[%s4471_s10 + $0x170] sm:$0xff] }
 0x2ec   :  { %1404 = vmatmul.mubr.f32.gmra.mrb[10].mxu1 %v1288_v30  ;;  %2419 = vst [vmem:[%s4477_s14 + $0x8] sm:$0xff] %v1288_v30  ;;  %v1441_v62 = vld [vmem:[%s4471_s10 + $0xc8] sm:$0xff] }
 0x2ed   :  { %2229 = vmatpush1.bf16.msra.mxu1 %v2638_v29  ;;  %2383 = vmatprep.subr.bf16.mxu0 %v2749_v26  ;;  %v1540_v29 = vld [vmem:[%s4471_s10 + $0x3e0] sm:$0xff]  ;;  %v1445_v63 = vld [vmem:[%s4471_s10 + $0xe8] sm:$0xff] }
 0x2ee   :  { %2230 = vmatprep.subr.bf16.mxu1 %v2647_v8  ;;  %2384 = vmatpush1.bf16.msra.mxu0 %v2748_v27  ;;  %v2751_v30 = vcombine.high %v1536_v28, %v1540_v29  ;;  %v1539_v8 = vld [vmem:[%s4471_s10 + $0x3d8] sm:$0xff]  ;;  %v2750_v31 = vcombine.low %v1536_v28, %v1540_v29  ;;  %v1477_v20 = vld [vmem:[%s4471_s10 + $0x1e8] sm:$0xff] }
 0x2ef   :  { %v1481_v23 = vld [vmem:[%s4471_s10 + $0x208] sm:$0xff] }
 0x2f0   :  { %v1485_v24 = vld [vmem:[%s4471_s10 + $0x228] sm:$0xff] }
 0x2f1   :  { %2231 = vmatpush1.bf16.msra.mxu1 %v2646_v49  ;;  %v2757_v49 = vcombine.high %v1539_v8, %v1543_v9  ;;  %v2697_v26 = vcombine.high %v1481_v23, %v1485_v24  ;;  %v1489_v27 = vld [vmem:[%s4471_s10 + $0x248] sm:$0xff]  ;;  %v2696_v29 = vcombine.low %v1481_v23, %v1485_v24  ;;  %v1474_v23 = vld [vmem:[%s4471_s10 + $0x1d0] sm:$0xff] }
 0x2f2   :  { %2232 = vmatprep.subr.bf16.mxu1 %v2655_v55  ;;  %v2756_v55 = vcombine.low %v1539_v8, %v1543_v9  ;;  %v1493_v28 = vld [vmem:[%s4471_s10 + $0x268] sm:$0xff]  ;;  %v1478_v24 = vld [vmem:[%s4471_s10 + $0x1f0] sm:$0xff] }
 0x2f3   :  { %2385 = vmatprep.subr.bf16.mxu0 %v2757_v49  ;;  %v1497_v8 = vld [vmem:[%s4471_s10 + $0x288] sm:$0xff] }
 0x2f4   :  { %2386 = vmatpush1.bf16.msra.mxu0 %v2756_v55  ;;  %v1501_v9 = vld [vmem:[%s4471_s10 + $0x2a8] sm:$0xff] }
 0x2f5   :  { %2233 = vmatpush1.bf16.msra.mxu1 %v2654_v32  ;;  %v2633_v32 = vcombine.high %v1417_v56, %v1421_v58  ;;  %v2713_v49 = vcombine.high %v1497_v8, %v1501_v9  ;;  %v1505_v55 = vld [vmem:[%s4471_s10 + $0x2c8] sm:$0xff] }
 0x2f6   :  { %2234 = vmatprep.subr.bf16.mxu1 %v2663_v33  ;;  %v2632_v33 = vcombine.low %v1417_v56, %v1421_v58  ;;  %v1509_v56 = vld [vmem:[%s4471_s10 + $0x2e8] sm:$0xff]  ;;  %v2712_v58 = vcombine.low %v1497_v8, %v1501_v9  ;;  %v1490_v8 = vld [vmem:[%s4471_s10 + $0x250] sm:$0xff] }
 0x2f7   :  { %v1494_v9 = vld [vmem:[%s4471_s10 + $0x270] sm:$0xff] }
 0x2f9   :  { %2235 = vmatpush1.bf16.msra.mxu1 %v2662_v36 }
 0x2fa   :  { %2236 = vmatprep.subr.bf16.mxu1 %v2671_v37  ;;  %v1330_v37 = vrot.slane %v1321_v34, %v3783_v7  ;;  %v1517_v34 = vld [vmem:[%s4471_s10 + $0x328] sm:$0xff] }
 0x2fd   :  { %2237 = vmatpush1.bf16.msra.mxu1 %v2670_v40 }
 0x2fe   :  { %2238 = vmatprep.subr.bf16.mxu1 %v2679_v41 }
 0x301   :  { %2239 = vmatpush1.bf16.msra.mxu1 %v2678_v44 }
 0x302   :  { %2240 = vmatprep.subr.bf16.mxu1 %v2687_v45 }
 0x305   :  { %2241 = vmatpush1.bf16.msra.mxu1 %v2686_v48 }
 0x306   :  { %2242 = vmatprep.subr.bf16.mxu1 %v2695_v50  ;;  %v1425_v50 = vld [vmem:[%s4471_s10 + $0x48] sm:$0xff] }
 0x309   :  { %2243 = vmatpush1.bf16.msra.mxu1 %v2694_v53 }
 0x30a   :  { %2244 = vmatprep.subr.bf16.mxu1 %v2703_v54  ;;  %v2641_v54 = vcombine.high %v1425_v50, %v1429_v51 }
 0x30d   :  { %2245 = vmatpush1.bf16.msra.mxu1 %v2702_v60  ;;  %v2640_v60 = vcombine.low %v1425_v50, %v1429_v51  ;;  %v1418_v50 = vld [vmem:[%s4471_s10 + $0x10] sm:$0xff] }
 0x30e   :  { %2246 = vmatprep.subr.bf16.mxu1 %v2711_v61  ;;  %v2649_v61 = vcombine.high %v1433_v57, %v1437_v59  ;;  %v1422_v51 = vld [vmem:[%s4471_s10 + $0x30] sm:$0xff] }
 0x311   :  { %2247 = vmatpush1.bf16.msra.mxu1 %v2710_v0  ;;  %v2648_v0 = vcombine.low %v1433_v57, %v1437_v59  ;;  %v2635_v57 = vcombine.high %v1418_v50, %v1422_v51  ;;  %v1426_v59 = vld [vmem:[%s4471_s10 + $0x50] sm:$0xff] }
 0x312   :  { %2248 = vmatprep.subr.bf16.mxu1 %v2719_v1  ;;  %v2657_v1 = vcombine.high %v1441_v62, %v1445_v63 }
 0x315   :  { %2249 = vmatpush1.bf16.msra.mxu1 %v2718_v6  ;;  %v2656_v6 = vcombine.low %v1441_v62, %v1445_v63  ;;  %v1434_v63 = vld [vmem:[%s4471_s10 + $0x90] sm:$0xff] }
 0x316   :  { %2250 = vmatprep.subr.bf16.mxu1 %v2727_v10  ;;  %v2665_v10 = vcombine.high %v1449_v2, %v1453_v3  ;;  %v1442_v3 = vld [vmem:[%s4471_s10 + $0xd0] sm:$0xff] }
 0x319   :  { %2251 = vmatpush1.bf16.msra.mxu1 %v2726_v11  ;;  %v1457_v11 = vld [vmem:[%s4471_s10 + $0x148] sm:$0xff] }
 0x31a   :  { %2252 = vmatprep.subr.bf16.mxu1 %v2735_v14  ;;  %v2673_v14 = vcombine.high %v1457_v11, %v1461_v12 }
 0x31d   :  { %2253 = vmatpush1.bf16.msra.mxu1 %v2734_v17  ;;  %v2672_v17 = vcombine.low %v1457_v11, %v1461_v12  ;;  %v1450_v12 = vld [vmem:[%s4471_s10 + $0x110] sm:$0xff] }
 0x31e   :  { %2254 = vmatprep.subr.bf16.mxu1 %v2743_v22  ;;  %v2689_v22 = vcombine.high %v1473_v19, %v1477_v20 }
 0x321   :  { %2255 = vmatpush1.bf16.msra.mxu1 %v2742_v25  ;;  %v2688_v25 = vcombine.low %v1473_v19, %v1477_v20  ;;  %v1466_v19 = vld [vmem:[%s4471_s10 + $0x190] sm:$0xff] }
 0x322   :  { %2256 = vmatprep.subr.bf16.mxu1 %v2751_v30  ;;  %v2705_v30 = vcombine.high %v1489_v27, %v1493_v28  ;;  %v1470_v20 = vld [vmem:[%s4471_s10 + $0x1b0] sm:$0xff] }
 0x325   :  { %2257 = vmatpush1.bf16.msra.mxu1 %v2750_v31  ;;  %v2704_v31 = vcombine.low %v1489_v27, %v1493_v28  ;;  %v1482_v27 = vld [vmem:[%s4471_s10 + $0x210] sm:$0xff] }
 0x326   :  { %2269 = vmatprep.subr.bf16.mxu1 %v2633_v32  ;;  %v2721_v32 = vcombine.high %v1505_v55, %v1509_v56  ;;  %v1486_v28 = vld [vmem:[%s4471_s10 + $0x230] sm:$0xff] }
 0x3bb   :  { %v1399_v36 = vpop.f32.mrb[8].mxu1 }
 0x3bc   :  { %v1401_v38 = vpop.f32.mrb[9].mxu1  ;;  %v1400_v39 = vadd.f32 %v1399_v36, %v1326_v35 }
 0x3bd   :  { %v1402_v40 = vadd.f32 %v1401_v38, %v1330_v37  ;;  %v1525_v38 = vld [vmem:[%s4471_s10 + $0x368] sm:$0xff] }
 0x3be   :  { %v1410_v45 = vmax.f32 %v1400_v39, 0.0 }
 0x3bf   :  { %v1405_v41 = vpop.f32.mrb[10].mxu1  ;;  %v1411_v47 = vmax.f32 %v1402_v40, 0.0 }
 0x3c0   :  { %v1406_v42 = vadd.f32 %v1405_v41, %v1326_v35  ;;  %v1407_v43 = vpop.f32.mrb[11].mxu1  ;;  %v2720_v35 = vcombine.low %v1505_v55, %v1509_v56  ;;  %v1529_v41 = vld [vmem:[%s4471_s10 + $0x388] sm:$0xff]  ;;  %v1498_v55 = vld [vmem:[%s4471_s10 + $0x290] sm:$0xff] }
 0x3c1   :  { %v1408_v44 = vadd.f32 %v1407_v43, %v1330_v37  ;;  %v1521_v37 = vld [vmem:[%s4471_s10 + $0x348] sm:$0xff]  ;;  %v1502_v56 = vld [vmem:[%s4471_s10 + $0x2b0] sm:$0xff] }
 0x3c2   :  { %v1412_v46 = vmax.f32 %v1406_v42, 0.0  ;;  %v2737_v40 = vcombine.high %v1521_v37, %v1525_v38  ;;  %v1533_v42 = vld [vmem:[%s4471_s10 + $0x3a8] sm:$0xff]  ;;  %v2736_v43 = vcombine.low %v1521_v37, %v1525_v38  ;;  %v1514_v37 = vld [vmem:[%s4471_s10 + $0x310] sm:$0xff] }
 0x3c3   :  { %v1413_v48 = vmax.f32 %v1408_v44, 0.0  ;;  %v2745_v44 = vcombine.high %v1529_v41, %v1533_v42  ;;  %v1518_v38 = vld [vmem:[%s4471_s10 + $0x330] sm:$0xff] }
 0x3c4   :  { %v4238_v52 = vpack.c.bf16 %v1412_v46, %v1410_v45  ;;  %v1537_v45 = vld [vmem:[%s4471_s10 + $0x3c8] sm:$0xff] }
 0x3c5   :  { %v4240_v53 = vpack.c.bf16 %v1413_v48, %v1411_v47  ;;  %v1541_v46 = vld [vmem:[%s4471_s10 + $0x3e8] sm:$0xff]  ;;  %v2744_v47 = vcombine.low %v1529_v41, %v1533_v42  ;;  %v1522_v41 = vld [vmem:[%s4471_s10 + $0x350] sm:$0xff] }
 0x3c6   :  { %v2753_v48 = vcombine.high %v1537_v45, %v1541_v46  ;;  %v1526_v42 = vld [vmem:[%s4471_s10 + $0x370] sm:$0xff] }
 0x3c7   :  { %2258 = vmatprep.mubr.bf16.mxu1 %v4240_v53  ;;  %2387 = vmatprep.mubr.bf16.mxu0 %v4240_v53 }
 0x3c8   :  { %2259 = vmatmul.mubr.bf16.vlgmr.msra.gmra.mrb[12].mxu1 %v4238_v52  ;;  %2388 = vmatmul.mubr.bf16.vlgmr.msra.gmra.mrb[4].mxu0 %v4238_v52 }
 0x3c9   :  { %2270 = vmatpush1.bf16.msra.mxu1 %v2632_v33  ;;  %2301 = vmatprep.mubr.bf16.mxu1 %v4240_v53  ;;  %v1513_v33 = vld [vmem:[%s4471_s10 + $0x308] sm:$0xff] }
 0x3ca   :  { %2271 = vmatprep.subr.bf16.mxu1 %v2641_v54  ;;  %v2729_v36 = vcombine.high %v1513_v33, %v1517_v34  ;;  %v2728_v39 = vcombine.low %v1513_v33, %v1517_v34  ;;  %v2752_v54 = vcombine.low %v1537_v45, %v1541_v46  ;;  %v1506_v33 = vld [vmem:[%s4471_s10 + $0x2d0] sm:$0xff] }
 0x3cb   :  { %v1510_v34 = vld [vmem:[%s4471_s10 + $0x2f0] sm:$0xff] }
 0x3cc   :  { %v1530_v45 = vld [vmem:[%s4471_s10 + $0x390] sm:$0xff] }
 0x3cd   :  { %2272 = vmatpush1.bf16.msra.mxu1 %v2640_v60  ;;  %v1430_v60 = vld [vmem:[%s4471_s10 + $0x70] sm:$0xff] }
 0x3ce   :  { %2273 = vmatprep.subr.bf16.mxu1 %v2649_v61  ;;  %v2634_v61 = vcombine.low %v1418_v50, %v1422_v51  ;;  %v2643_v62 = vcombine.high %v1426_v59, %v1430_v60  ;;  %v1534_v46 = vld [vmem:[%s4471_s10 + $0x3b0] sm:$0xff] }
 0x3cf   :  { %v1538_v50 = vld [vmem:[%s4471_s10 + $0x3d0] sm:$0xff] }
 0x3d0   :  { %v1542_v51 = vld [vmem:[%s4471_s10 + $0x3f0] sm:$0xff] }
 0x3d1   :  { %2274 = vmatpush1.bf16.msra.mxu1 %v2648_v0  ;;  %v1438_v0 = vld [vmem:[%s4471_s10 + $0xb0] sm:$0xff] }
 0x3d2   :  { %2275 = vmatprep.subr.bf16.mxu1 %v2657_v1  ;;  %v2642_v1 = vcombine.low %v1426_v59, %v1430_v60  ;;  %v2651_v2 = vcombine.high %v1434_v63, %v1438_v0  ;;  %v2754_v59 = vcombine.low %v1538_v50, %v1542_v51  ;;  %v1572_v60 = vsub.s32 6, %v3774_v4 }
 0x3d5   :  { %2276 = vmatpush1.bf16.msra.mxu1 %v2656_v6  ;;  %v1446_v6 = vld [vmem:[%s4471_s10 + $0xf0] sm:$0xff] }
 0x3d6   :  { %2277 = vmatprep.subr.bf16.mxu1 %v2665_v10  ;;  %v2650_v10 = vcombine.low %v1434_v63, %v1438_v0  ;;  %v2659_v11 = vcombine.high %v1442_v3, %v1446_v6 }
 0x3d9   :  { %2278 = vmatpush1.bf16.msra.mxu1 %v2664_v13  ;;  %v2658_v13 = vcombine.low %v1442_v3, %v1446_v6 }
 0x3da   :  { %2279 = vmatprep.subr.bf16.mxu1 %v2673_v14 }
 0x3dd   :  { %2280 = vmatpush1.bf16.msra.mxu1 %v2672_v17 }
 0x3de   :  { %2281 = vmatprep.subr.bf16.mxu1 %v2681_v18  ;;  %v2675_v18 = vcombine.high %v1458_v15, %v1462_v16 }
 0x3e1   :  { %2282 = vmatpush1.bf16.msra.mxu1 %v2680_v21  ;;  %v2674_v21 = vcombine.low %v1458_v15, %v1462_v16 }
 0x3e2   :  { %2283 = vmatprep.subr.bf16.mxu1 %v2689_v22  ;;  %v2683_v22 = vcombine.high %v1466_v19, %v1470_v20 }
 0x3e5   :  { %2284 = vmatpush1.bf16.msra.mxu1 %v2688_v25  ;;  %v2682_v25 = vcombine.low %v1466_v19, %v1470_v20 }
 0x3e6   :  { %2285 = vmatprep.subr.bf16.mxu1 %v2697_v26  ;;  %v2691_v26 = vcombine.high %v1474_v23, %v1478_v24 }
 0x3e9   :  { %2286 = vmatpush1.bf16.msra.mxu1 %v2696_v29  ;;  %v2690_v29 = vcombine.low %v1474_v23, %v1478_v24 }
 0x3ea   :  { %2287 = vmatprep.subr.bf16.mxu1 %v2705_v30  ;;  %v2699_v30 = vcombine.high %v1482_v27, %v1486_v28 }
 0x3ed   :  { %2288 = vmatpush1.bf16.msra.mxu1 %v2704_v31  ;;  %v2698_v31 = vcombine.low %v1482_v27, %v1486_v28 }
 0x3ee   :  { %2289 = vmatprep.subr.bf16.mxu1 %v2713_v49  ;;  %v2707_v49 = vcombine.high %v1490_v8, %v1494_v9 }
 0x3f1   :  { %2290 = vmatpush1.bf16.msra.mxu1 %v2712_v58  ;;  %v2706_v58 = vcombine.low %v1490_v8, %v1494_v9  ;;  %v1556_v9 = vsub.s32 2, %v3774_v4 }
 0x3f2   :  { %2291 = vmatprep.subr.bf16.mxu1 %v2721_v32  ;;  %v2715_v32 = vcombine.high %v1498_v55, %v1502_v56 }
 0x3f5   :  { %2292 = vmatpush1.bf16.msra.mxu1 %v2720_v35  ;;  %v2714_v35 = vcombine.low %v1498_v55, %v1502_v56 }
 0x3f6   :  { %2293 = vmatprep.subr.bf16.mxu1 %v2729_v36  ;;  %v2723_v36 = vcombine.high %v1506_v33, %v1510_v34 }
 0x3f9   :  { %2294 = vmatpush1.bf16.msra.mxu1 %v2728_v39  ;;  %v2722_v39 = vcombine.low %v1506_v33, %v1510_v34 }
 0x3fa   :  { %2295 = vmatprep.subr.bf16.mxu1 %v2737_v40  ;;  %v2731_v40 = vcombine.high %v1514_v37, %v1518_v38 }
 0x3fd   :  { %2296 = vmatpush1.bf16.msra.mxu1 %v2736_v43  ;;  %v2730_v43 = vcombine.low %v1514_v37, %v1518_v38 }
 0x3fe   :  { %2297 = vmatprep.subr.bf16.mxu1 %v2745_v44  ;;  %v2739_v44 = vcombine.high %v1522_v41, %v1526_v42 }
 0x401   :  { %2298 = vmatpush1.bf16.msra.mxu1 %v2744_v47  ;;  %v2738_v47 = vcombine.low %v1522_v41, %v1526_v42 }
 0x402   :  { %2299 = vmatprep.subr.bf16.mxu1 %v2753_v48  ;;  %v2747_v48 = vcombine.high %v1530_v45, %v1534_v46 }
 0x405   :  { %2300 = vmatpush1.bf16.msra.mxu1 %v2752_v54  ;;  %v2746_v54 = vcombine.low %v1530_v45, %v1534_v46  ;;  %v1568_v45 = vsub.s32 5, %v3774_v4 }
 0x406   :  { %2312 = vmatprep.subr.bf16.mxu1 %v2635_v57  ;;  %v2755_v57 = vcombine.high %v1538_v50, %v1542_v51 }
 0x408   :  { %2302 = vmatmul.mubr.bf16.vlgmr.msra.gmra.mrb[16].mxu1 %v4238_v52 }
 0x409   :  { %2313 = vmatpush1.bf16.msra.mxu1 %v2634_v61  ;;  %2344 = vmatprep.mubr.bf16.mxu1 %v4240_v53  ;;  %v1454_v53 = vld [vmem:[%s4471_s10 + $0x130] sm:$0xff]  ;;  %v1544_v61 = vld [vmem:[%s4479_s11] sm:$0xff] }
 0x40a   :  { %2314 = vmatprep.subr.bf16.mxu1 %v2643_v62  ;;  %v2667_v14 = vcombine.high %v1450_v12, %v1454_v53  ;;  %v2666_v17 = vcombine.low %v1450_v12, %v1454_v53  ;;  %v1576_v62 = vsub.s32 7, %v3774_v4  ;;  %v1549_v63 = vrot.slane %v1544_v61, %v3777_v5 }
 0x40b   :  { %v1573_v0 = vrot.slane %v1544_v61, %v1572_v60 }
 0x40d   :  { %2315 = vmatpush1.bf16.msra.mxu1 %v2642_v1  ;;  %v1553_v1 = vrot.slane %v1544_v61, %v3783_v7 }
 0x40e   :  { %2316 = vmatprep.subr.bf16.mxu1 %v2651_v2  ;;  %v1577_v2 = vrot.slane %v1544_v61, %v1576_v62 }
 0x411   :  { %2317 = vmatpush1.bf16.msra.mxu1 %v2650_v10 }
 0x412   :  { %2318 = vmatprep.subr.bf16.mxu1 %v2659_v11 }
 0x415   :  { %2319 = vmatpush1.bf16.msra.mxu1 %v2658_v13 }
 0x416   :  { %2320 = vmatprep.subr.bf16.mxu1 %v2667_v14 }
 0x419   :  { %2321 = vmatpush1.bf16.msra.mxu1 %v2666_v17 }
 0x41a   :  { %2322 = vmatprep.subr.bf16.mxu1 %v2675_v18 }
 0x41d   :  { %2323 = vmatpush1.bf16.msra.mxu1 %v2674_v21 }
 0x41e   :  { %2324 = vmatprep.subr.bf16.mxu1 %v2683_v22 }
 0x421   :  { %2325 = vmatpush1.bf16.msra.mxu1 %v2682_v25 }
 0x422   :  { %2326 = vmatprep.subr.bf16.mxu1 %v2691_v26 }
 0x425   :  { %2327 = vmatpush1.bf16.msra.mxu1 %v2690_v29 }
 0x426   :  { %2328 = vmatprep.subr.bf16.mxu1 %v2699_v30 }
 0x429   :  { %2329 = vmatpush1.bf16.msra.mxu1 %v2698_v31  ;;  %v1560_v31 = vsub.s32 3, %v3774_v4 }
 0x42a   :  { %2330 = vmatprep.subr.bf16.mxu1 %v2707_v49  ;;  %v1557_v49 = vrot.slane %v1544_v61, %v1556_v9 }
 0x42b   :  { %v1561_v55 = vrot.slane %v1544_v61, %v1560_v31 }
 0x42d   :  { %2331 = vmatpush1.bf16.msra.mxu1 %v2706_v58 }
 0x42e   :  { %2332 = vmatprep.subr.bf16.mxu1 %v2715_v32 }
 0x431   :  { %2333 = vmatpush1.bf16.msra.mxu1 %v2714_v35 }
 0x432   :  { %2334 = vmatprep.subr.bf16.mxu1 %v2723_v36 }
 0x435   :  { %2335 = vmatpush1.bf16.msra.mxu1 %v2722_v39 }
 0x436   :  { %2336 = vmatprep.subr.bf16.mxu1 %v2731_v40 }
 0x439   :  { %2337 = vmatpush1.bf16.msra.mxu1 %v2730_v43 }
 0x43a   :  { %2338 = vmatprep.subr.bf16.mxu1 %v2739_v44  ;;  %v1564_v44 = vsub.s32 4, %v3774_v4 }
 0x43c   :  { %v1565_v46 = vrot.slane %v1544_v61, %v1564_v44 }
 0x43d   :  { %2339 = vmatpush1.bf16.msra.mxu1 %v2738_v47  ;;  %v1569_v47 = vrot.slane %v1544_v61, %v1568_v45 }
 0x43e   :  { %2340 = vmatprep.subr.bf16.mxu1 %v2747_v48 }
 0x441   :  { %2341 = vmatpush1.bf16.msra.mxu1 %v2746_v54 }
 0x442   :  { %2342 = vmatprep.subr.bf16.mxu1 %v2755_v57 }
 0x445   :  { %2343 = vmatpush1.bf16.msra.mxu1 %v2754_v59 }
 0x448   :  { %2345 = vmatmul.mubr.bf16.vlgmr.msra.gmra.mrb[20].mxu1 %v4238_v52 }
 0x49b   :  { %v2260_v3 = vpop.f32.mrb[12].mxu1  ;;  %v2389_v6 = vpop.f32.mrb[4].mxu0 }
 0x49c   :  { %v2261_v10 = vadd.f32 %v2260_v3, %v1549_v63  ;;  %v2390_v11 = vadd.f32 %v2389_v6, %v1573_v0  ;;  %v2262_v12 = vpop.f32.mrb[13].mxu1  ;;  %v2391_v52 = vpop.f32.mrb[5].mxu0 }
 0x49d   :  { %v2263_v53 = vadd.f32 %v2262_v12, %v1553_v1  ;;  %v2392_v13 = vadd.f32 %v2391_v52, %v1577_v2  ;;  %v2264_v14 = vpop.f32.mrb[14].mxu1  ;;  %v2393_v15 = vpop.f32.mrb[6].mxu0 }
 0x49e   :  { %v2398_v16 = vmax.f32 %v2261_v10, 0.0  ;;  %v2404_v17 = vmax.f32 %v2390_v11, 0.0  ;;  %v2265_v18 = vadd.f32 %v2264_v14, %v1549_v63  ;;  %v2394_v19 = vadd.f32 %v2393_v15, %v1573_v0  ;;  %v2266_v20 = vpop.f32.mrb[15].mxu1  ;;  %v2395_v5 = vpop.f32.mrb[7].mxu0 }
 0x49f   :  { %v2399_v21 = vmax.f32 %v2263_v53, 0.0  ;;  %v2405_v22 = vmax.f32 %v2392_v13, 0.0  ;;  %v2267_v7 = vadd.f32 %v2266_v20, %v1553_v1  ;;  %v2396_v23 = vadd.f32 %v2395_v5, %v1577_v2 }
 0x4a0   :  { %v2406_v24 = vmax.f32 %v2265_v18, 0.0  ;;  %v2412_v25 = vmax.f32 %v2394_v19, 0.0 }
 0x4a1   :  { %v2766_v26 = vpack.c.bf16 %v2399_v21, %v2398_v16  ;;  %v2769_v27 = vpack.c.bf16 %v2405_v22, %v2404_v17  ;;  %v2407_v28 = vmax.f32 %v2267_v7, 0.0  ;;  %v2413_v29 = vmax.f32 %v2396_v23, 0.0 }
 0x4a3   :  { %2468 = vst [vmem:[%s4480_s15] sm:$0xff] %v2766_v26  ;;  %2471 = vst [vmem:[%s4480_s15 + $0x18] sm:$0xff] %v2769_v27  ;;  %v2770_v30 = vpack.c.bf16 %v2407_v28, %v2406_v24  ;;  %v2773_v8 = vpack.c.bf16 %v2413_v29, %v2412_v25 }
 0x4a5   :  { %2472 = vst [vmem:[%s4480_s15 + $0x20] sm:$0xff] %v2770_v30  ;;  %2475 = vst [vmem:[%s4480_s15 + $0x38] sm:$0xff] %v2773_v8 }
 0x4db   :  { %v2303_v56 = vpop.f32.mrb[16].mxu1 }
 0x4dc   :  { %v2304_v58 = vadd.f32 %v2303_v56, %v1557_v49  ;;  %v2305_v32 = vpop.f32.mrb[17].mxu1 }
 0x4dd   :  { %v2306_v33 = vadd.f32 %v2305_v32, %v1561_v55  ;;  %v2307_v34 = vpop.f32.mrb[18].mxu1 }
 0x4de   :  { %v2400_v35 = vmax.f32 %v2304_v58, 0.0  ;;  %v2308_v36 = vadd.f32 %v2307_v34, %v1557_v49  ;;  %v2309_v37 = vpop.f32.mrb[19].mxu1 }
 0x4df   :  { %v2401_v38 = vmax.f32 %v2306_v33, 0.0  ;;  %v2310_v39 = vadd.f32 %v2309_v37, %v1561_v55 }
 0x4e0   :  { %v2408_v40 = vmax.f32 %v2308_v36, 0.0 }
 0x4e1   :  { %v2767_v41 = vpack.c.bf16 %v2401_v38, %v2400_v35  ;;  %v2409_v42 = vmax.f32 %v2310_v39, 0.0 }
 0x4e3   :  { %2469 = vst [vmem:[%s4480_s15 + $0x8] sm:$0xff] %v2767_v41  ;;  %v2771_v43 = vpack.c.bf16 %v2409_v42, %v2408_v40 }
 0x4e5   :  { %2473 = vst [vmem:[%s4480_s15 + $0x28] sm:$0xff] %v2771_v43 }
 0x51b   :  { %v2346_v48 = vpop.f32.mrb[20].mxu1 }
 0x51c   :  { %v2347_v50 = vadd.f32 %v2346_v48, %v1565_v46  ;;  %v2348_v51 = vpop.f32.mrb[21].mxu1 }
 0x51d   :  { %v2349_v54 = vadd.f32 %v2348_v51, %v1569_v47  ;;  %v2350_v57 = vpop.f32.mrb[22].mxu1 }
 0x51e   :  { %v2402_v59 = vmax.f32 %v2347_v50, 0.0  ;;  %v2351_v60 = vadd.f32 %v2350_v57, %v1565_v46  ;;  %v2352_v62 = vpop.f32.mrb[23].mxu1 }
 0x51f   :  { %v2403_v63 = vmax.f32 %v2349_v54, 0.0  ;;  %v2353_v0 = vadd.f32 %v2352_v62, %v1569_v47 }
 0x520   :  { %v2410_v1 = vmax.f32 %v2351_v60, 0.0 }
 0x521   :  { %v2768_v2 = vpack.c.bf16 %v2403_v63, %v2402_v59  ;;  %v2411_v3 = vmax.f32 %v2353_v0, 0.0 }
 0x523   :  { %2470 = vst [vmem:[%s4480_s15 + $0x10] sm:$0xff] %v2768_v2  ;;  %v2772_v4 = vpack.c.bf16 %v2411_v3, %v2410_v1 }
 0x525   :  { %2474 = vst [vmem:[%s4480_s15 + $0x30] sm:$0xff] %v2772_v4 }

// kernel: factor_vae2_forward.14
= control target key start
LH: loop header
LB: loop body
LE: loop exit
PB: predicated region body
PF: predicated region fallthrough
CT: control target
= control target key end

     0   :  { %v630_v3 = vmov 0   ;;  %vm218_vm0 = vcmask 523264   ;;  %s812_s1 = inlined_call_operand.vmem [shape: bf16[64,1024], index: 1, kind: input, shape index: {}]   ;;  %s813_s0 = inlined_call_operand.vmem [shape: bf16[32,64], index: 0, kind: input, shape index: {}]   ;;  %s814_s2 = inlined_call_operand.vmem [shape: bf16[32,1024], index: 2, kind: output, shape index: {}]  }
   0x1   :  { %v16_v0 = vld [vmem:[%s812_s1] sm:$0xff]  ;;  %v17_v2 = vld [vmem:[%s812_s1 + $0x8] sm:$0xff]  ;;  %257 = vmatprep.mubr.bf16.mxu0 %v630_v3  ;;  %310 = vmatprep.mubr.bf16.mxu1 %v630_v3  ;;  %v18_v31 = vld [vmem:[%s812_s1 + $0x10] sm:$0xff] }
   0x2   :  { %v20_v1 = vld [vmem:[%s812_s1 + $0x20] sm:$0xff]  ;;  %v21_v5 = vld [vmem:[%s812_s1 + $0x28] sm:$0xff]  ;;  %v22_v32 = vld [vmem:[%s812_s1 + $0x30] sm:$0xff] }
   0x3   :  { %v556_v4 = vcombine.high %v16_v0, %v20_v1  ;;  %v555_v6 = vcombine.low %v16_v0, %v20_v1  ;;  %v24_v7 = vld [vmem:[%s812_s1 + $0x40] sm:$0xff]  ;;  %v558_v9 = vcombine.high %v17_v2, %v21_v5  ;;  %v557_v10 = vcombine.low %v17_v2, %v21_v5  ;;  %v25_v12 = vld [vmem:[%s812_s1 + $0x48] sm:$0xff]  ;;  %v19_v33 = vld [vmem:[%s812_s1 + $0x18] sm:$0xff] }
   0x4   :  { %v28_v8 = vld [vmem:[%s812_s1 + $0x60] sm:$0xff]  ;;  %v29_v13 = vld [vmem:[%s812_s1 + $0x68] sm:$0xff]  ;;  %v23_v34 = vld [vmem:[%s812_s1 + $0x38] sm:$0xff]  ;;  %v560_v37 = vcombine.high %v18_v31, %v22_v32  ;;  %v559_v44 = vcombine.low %v18_v31, %v22_v32 }
   0x5   :  { %v564_v11 = vcombine.high %v24_v7, %v28_v8  ;;  %v32_v14 = vld [vmem:[%s812_s1 + $0x80] sm:$0xff]  ;;  %225 = vmatprep.subr.bf16.mxu0 %v556_v4  ;;  %v566_v15 = vcombine.high %v25_v12, %v29_v13  ;;  %v33_v17 = vld [vmem:[%s812_s1 + $0x88] sm:$0xff]  ;;  %278 = vmatprep.subr.bf16.mxu1 %v558_v9  ;;  %v563_v19 = vcombine.low %v24_v7, %v28_v8  ;;  %v26_v39 = vld [vmem:[%s812_s1 + $0x50] sm:$0xff] }
   0x6   :  { %v36_v16 = vld [vmem:[%s812_s1 + $0xa0] sm:$0xff]  ;;  %v37_v18 = vld [vmem:[%s812_s1 + $0xa8] sm:$0xff]  ;;  %226 = vmatpush1.bf16.msra.mxu0 %v555_v6  ;;  %279 = vmatpush1.bf16.msra.mxu1 %v557_v10  ;;  %v565_v20 = vcombine.low %v25_v12, %v29_v13  ;;  %v562_v38 = vcombine.high %v19_v33, %v23_v34  ;;  %v30_v40 = vld [vmem:[%s812_s1 + $0x70] sm:$0xff]  ;;  %v561_v45 = vcombine.low %v19_v33, %v23_v34 }
   0x7   :  { %227 = vmatprep.subr.bf16.mxu0 %v564_v11  ;;  %v572_v21 = vcombine.high %v32_v14, %v36_v16  ;;  %280 = vmatprep.subr.bf16.mxu1 %v566_v15  ;;  %v574_v22 = vcombine.high %v33_v17, %v37_v18  ;;  %v40_v23 = vld [vmem:[%s812_s1 + $0xc0] sm:$0xff]  ;;  %v41_v25 = vld [vmem:[%s812_s1 + $0xc8] sm:$0xff]  ;;  %v571_v27 = vcombine.low %v32_v14, %v36_v16  ;;  %v27_v42 = vld [vmem:[%s812_s1 + $0x58] sm:$0xff] }
   0x8   :  { %v44_v24 = vld [vmem:[%s812_s1 + $0xe0] sm:$0xff]  ;;  %v45_v26 = vld [vmem:[%s812_s1 + $0xe8] sm:$0xff]  ;;  %v573_v28 = vcombine.low %v33_v17, %v37_v18  ;;  %v31_v43 = vld [vmem:[%s812_s1 + $0x78] sm:$0xff]  ;;  %v568_v46 = vcombine.high %v26_v39, %v30_v40  ;;  %v567_v52 = vcombine.low %v26_v39, %v30_v40 }
   0x9   :  { %v580_v29 = vcombine.high %v40_v23, %v44_v24  ;;  %v582_v30 = vcombine.high %v41_v25, %v45_v26  ;;  %v579_v35 = vcombine.low %v40_v23, %v44_v24  ;;  %v581_v36 = vcombine.low %v41_v25, %v45_v26  ;;  %v628_v41 = vld [vmem:[%s813_s0] sm:$0xff]   ;;  %v34_v48 = vld [vmem:[%s812_s1 + $0x90] sm:$0xff]  ;;  %v35_v50 = vld [vmem:[%s812_s1 + $0x98] sm:$0xff] }
   0xa   :  { %228 = vmatpush1.bf16.msra.mxu0 %v563_v19  ;;  %281 = vmatpush1.bf16.msra.mxu1 %v565_v20  ;;  %v570_v47 = vcombine.high %v27_v42, %v31_v43  ;;  %v38_v49 = vld [vmem:[%s812_s1 + $0xb0] sm:$0xff]  ;;  %v39_v51 = vld [vmem:[%s812_s1 + $0xb8] sm:$0xff]  ;;  %v569_v53 = vcombine.low %v27_v42, %v31_v43  ;;  %v629_v58 = vld [vmem:[%s813_s0 + $0x8] sm:$0xff]  }
   0xb   :  { %229 = vmatprep.subr.bf16.mxu0 %v572_v21  ;;  %282 = vmatprep.subr.bf16.mxu1 %v574_v22  ;;  %v576_v54 = vcombine.high %v34_v48, %v38_v49  ;;  %v578_v55 = vcombine.high %v35_v50, %v39_v51  ;;  %v42_v56 = vld [vmem:[%s812_s1 + $0xd0] sm:$0xff]  ;;  %v43_v59 = vld [vmem:[%s812_s1 + $0xd8] sm:$0xff]  ;;  %v575_v61 = vcombine.low %v34_v48, %v38_v49 }
   0xc   :  { %v46_v57 = vld [vmem:[%s812_s1 + $0xf0] sm:$0xff]  ;;  %v47_v60 = vld [vmem:[%s812_s1 + $0xf8] sm:$0xff]  ;;  %v577_v62 = vcombine.low %v35_v50, %v39_v51 }
   0xd   :  { %v584_v63 = vcombine.high %v42_v56, %v46_v57  ;;  %v586_v0 = vcombine.high %v43_v59, %v47_v60  ;;  %v583_v1 = vcombine.low %v42_v56, %v46_v57  ;;  %v585_v2 = vcombine.low %v43_v59, %v47_v60 }
   0xe   :  { %230 = vmatpush1.bf16.msra.mxu0 %v571_v27  ;;  %283 = vmatpush1.bf16.msra.mxu1 %v573_v28 }
   0xf   :  { %231 = vmatprep.subr.bf16.mxu0 %v580_v29  ;;  %284 = vmatprep.subr.bf16.mxu1 %v582_v30 }
  0x12   :  { %232 = vmatpush1.bf16.msra.mxu0 %v579_v35  ;;  %285 = vmatpush1.bf16.msra.mxu1 %v581_v36 }
  0x13   :  { %331 = vmatprep.subr.bf16.mxu0 %v560_v37  ;;  %384 = vmatprep.subr.bf16.mxu1 %v562_v38 }
  0x15   :  { %587 = vmatmul.mubr.msk.bf16.vlgmr.msra.gmra.mrb[0].mxu0 %vm218_vm0, %v628_v41  ;;  %589 = vmatmul.mubr.msk.bf16.vlgmr.msra.gmra.mrb[0].mxu1 %vm218_vm0, %v628_v41 }
  0x16   :  { %332 = vmatpush1.bf16.msra.mxu0 %v559_v44  ;;  %385 = vmatpush1.bf16.msra.mxu1 %v561_v45 }
  0x17   :  { %333 = vmatprep.subr.bf16.mxu0 %v568_v46  ;;  %386 = vmatprep.subr.bf16.mxu1 %v570_v47 }
  0x18   :  { %267 = vmatprep.mubr.bf16.mxu0 %v630_v3  ;;  %320 = vmatprep.mubr.bf16.mxu1 %v630_v3 }
  0x1a   :  { %334 = vmatpush1.bf16.msra.mxu0 %v567_v52  ;;  %387 = vmatpush1.bf16.msra.mxu1 %v569_v53 }
  0x1b   :  { %335 = vmatprep.subr.bf16.mxu0 %v576_v54  ;;  %388 = vmatprep.subr.bf16.mxu1 %v578_v55 }
  0x1d   :  { %588 = vmatmul.mubr.msk.bf16.gmra.mrb[4].mxu0 %vm218_vm0, %v629_v58  ;;  %590 = vmatmul.mubr.msk.bf16.gmra.mrb[4].mxu1 %vm218_vm0, %v629_v58 }
  0x1e   :  { %336 = vmatpush1.bf16.msra.mxu0 %v575_v61  ;;  %389 = vmatpush1.bf16.msra.mxu1 %v577_v62 }
  0x1f   :  { %337 = vmatprep.subr.bf16.mxu0 %v584_v63  ;;  %390 = vmatprep.subr.bf16.mxu1 %v586_v0 }
  0x20   :  { %363 = vmatprep.mubr.bf16.mxu0 %v630_v3  ;;  %416 = vmatprep.mubr.bf16.mxu1 %v630_v3 }
  0x22   :  { %338 = vmatpush1.bf16.msra.mxu0 %v583_v1  ;;  %391 = vmatpush1.bf16.msra.mxu1 %v585_v2 }
  0x25   :  { %591 = vmatmul.mubr.msk.bf16.vlgmr.msra.gmra.mrb[8].mxu0 %vm218_vm0, %v628_v41  ;;  %593 = vmatmul.mubr.msk.bf16.vlgmr.msra.gmra.mrb[8].mxu1 %vm218_vm0, %v628_v41 }
  0x26   :  { %373 = vmatprep.mubr.bf16.mxu0 %v630_v3  ;;  %426 = vmatprep.mubr.bf16.mxu1 %v630_v3 }
  0x2d   :  { %592 = vmatmul.mubr.msk.bf16.gmra.mrb[12].mxu0 %vm218_vm0, %v629_v58  ;;  %594 = vmatmul.mubr.msk.bf16.gmra.mrb[12].mxu1 %vm218_vm0, %v629_v58 }
  0xe8   :  { %v259_v4 = vpop.f32.mrb[0].mxu0  ;;  %v312_v5 = vpop.f32.mrb[0].mxu1 }
  0xe9   :  { %v261_v6 = vpop.f32.mrb[1].mxu0  ;;  %v314_v8 = vpop.f32.mrb[1].mxu1 }
  0xea   :  { %v611_v7 = vpack.c.bf16 %v261_v6, %v259_v4  ;;  %v263_v9 = vpop.f32.mrb[2].mxu0  ;;  %v612_v10 = vpack.c.bf16 %v314_v8, %v312_v5  ;;  %v316_v11 = vpop.f32.mrb[2].mxu1 }
  0xeb   :  { %v265_v12 = vpop.f32.mrb[3].mxu0  ;;  %v318_v14 = vpop.f32.mrb[3].mxu1 }
  0xec   :  { %533 = vst [vmem:[%s814_s2] sm:$0xff] %v611_v7  ;;  %v615_v13 = vpack.c.bf16 %v265_v12, %v263_v9  ;;  %534 = vst [vmem:[%s814_s2 + $0x8] sm:$0xff] %v612_v10  ;;  %v616_v3 = vpack.c.bf16 %v318_v14, %v316_v11 }
  0xee   :  { %537 = vst [vmem:[%s814_s2 + $0x20] sm:$0xff] %v615_v13  ;;  %538 = vst [vmem:[%s814_s2 + $0x28] sm:$0xff] %v616_v3 }
  0xf0   :  { %v269_v15 = vpop.f32.mrb[4].mxu0  ;;  %v322_v16 = vpop.f32.mrb[4].mxu1 }
  0xf1   :  { %v271_v17 = vpop.f32.mrb[5].mxu0  ;;  %v324_v19 = vpop.f32.mrb[5].mxu1 }
  0xf2   :  { %v619_v18 = vpack.c.bf16 %v271_v17, %v269_v15  ;;  %v273_v20 = vpop.f32.mrb[6].mxu0  ;;  %v620_v21 = vpack.c.bf16 %v324_v19, %v322_v16  ;;  %v326_v22 = vpop.f32.mrb[6].mxu1 }
  0xf3   :  { %v275_v23 = vpop.f32.mrb[7].mxu0  ;;  %v328_v25 = vpop.f32.mrb[7].mxu1 }
  0xf4   :  { %541 = vst [vmem:[%s814_s2 + $0x40] sm:$0xff] %v619_v18  ;;  %v623_v24 = vpack.c.bf16 %v275_v23, %v273_v20  ;;  %542 = vst [vmem:[%s814_s2 + $0x48] sm:$0xff] %v620_v21  ;;  %v624_v26 = vpack.c.bf16 %v328_v25, %v326_v22 }
  0xf6   :  { %545 = vst [vmem:[%s814_s2 + $0x60] sm:$0xff] %v623_v24  ;;  %546 = vst [vmem:[%s814_s2 + $0x68] sm:$0xff] %v624_v26 }
  0xf8   :  { %v365_v27 = vpop.f32.mrb[8].mxu0  ;;  %v418_v28 = vpop.f32.mrb[8].mxu1 }
  0xf9   :  { %v367_v29 = vpop.f32.mrb[9].mxu0  ;;  %v420_v31 = vpop.f32.mrb[9].mxu1 }
  0xfa   :  { %v613_v30 = vpack.c.bf16 %v367_v29, %v365_v27  ;;  %v369_v32 = vpop.f32.mrb[10].mxu0  ;;  %v614_v33 = vpack.c.bf16 %v420_v31, %v418_v28  ;;  %v422_v34 = vpop.f32.mrb[10].mxu1 }
  0xfb   :  { %v371_v35 = vpop.f32.mrb[11].mxu0  ;;  %v424_v37 = vpop.f32.mrb[11].mxu1 }
  0xfc   :  { %535 = vst [vmem:[%s814_s2 + $0x10] sm:$0xff] %v613_v30  ;;  %v617_v36 = vpack.c.bf16 %v371_v35, %v369_v32  ;;  %536 = vst [vmem:[%s814_s2 + $0x18] sm:$0xff] %v614_v33  ;;  %v618_v38 = vpack.c.bf16 %v424_v37, %v422_v34 }
  0xfe   :  { %539 = vst [vmem:[%s814_s2 + $0x30] sm:$0xff] %v617_v36  ;;  %540 = vst [vmem:[%s814_s2 + $0x38] sm:$0xff] %v618_v38 }
 0x100   :  { %v375_v39 = vpop.f32.mrb[12].mxu0  ;;  %v428_v40 = vpop.f32.mrb[12].mxu1 }
 0x101   :  { %v377_v41 = vpop.f32.mrb[13].mxu0  ;;  %v430_v43 = vpop.f32.mrb[13].mxu1 }
 0x102   :  { %v621_v42 = vpack.c.bf16 %v377_v41, %v375_v39  ;;  %v379_v44 = vpop.f32.mrb[14].mxu0  ;;  %v622_v45 = vpack.c.bf16 %v430_v43, %v428_v40  ;;  %v432_v46 = vpop.f32.mrb[14].mxu1 }
 0x103   :  { %v381_v47 = vpop.f32.mrb[15].mxu0  ;;  %v434_v49 = vpop.f32.mrb[15].mxu1 }
 0x104   :  { %543 = vst [vmem:[%s814_s2 + $0x50] sm:$0xff] %v621_v42  ;;  %v625_v48 = vpack.c.bf16 %v381_v47, %v379_v44  ;;  %544 = vst [vmem:[%s814_s2 + $0x58] sm:$0xff] %v622_v45  ;;  %v626_v50 = vpack.c.bf16 %v434_v49, %v432_v46 }
 0x106   :  { %547 = vst [vmem:[%s814_s2 + $0x70] sm:$0xff] %v625_v48  ;;  %548 = vst [vmem:[%s814_s2 + $0x78] sm:$0xff] %v626_v50 }

// kernel: factor_vae2_forward.15
= control target key start
LH: loop header
LB: loop body
LE: loop exit
PB: predicated region body
PF: predicated region fallthrough
CT: control target
= control target key end

     0   :  { %v780_v1 = vmov 0   ;;  %vm164_vm0 = vcmask 523264   ;;  %s996_s1 = inlined_call_operand.vmem [shape: bf16[64,512], index: 1, kind: input, shape index: {}]   ;;  %s997_s0 = inlined_call_operand.vmem [shape: bf16[128,64], index: 0, kind: input, shape index: {}]   ;;  %s998_s2 = inlined_call_operand.vmem [shape: bf16[128,512], index: 2, kind: output, shape index: {}]  }
   0x1   :  { %v748_v0 = vld [vmem:[%s996_s1 + $0x4] ss:$16 sps:$4 sm:$0xff]   ;;  %221 = vmatprep.mubr.bf16.mxu0 %v780_v1  ;;  %334 = vmatprep.mubr.bf16.mxu1 %v780_v1  ;;  %v750_v2 = vld [vmem:[%s996_s1 + $0xc] ss:$16 sps:$4 sm:$0xff]   ;;  %v752_v3 = vld [vmem:[%s996_s1] ss:$16 sps:$4 sm:$0xff]  }
   0x2   :  { %189 = vmatprep.subr.bf16.mxu0 %v748_v0  ;;  %v753_v4 = vld [vmem:[%s996_s1 + $0x8] ss:$16 sps:$4 sm:$0xff]   ;;  %302 = vmatprep.subr.bf16.mxu1 %v750_v2  ;;  %v754_v5 = vld [vmem:[%s996_s1 + $0x24] ss:$16 sps:$4 sm:$0xff]   ;;  %v756_v6 = vld [vmem:[%s996_s1 + $0x2c] ss:$16 sps:$4 sm:$0xff]  }
   0x3   :  { %190 = vmatpush1.bf16.msra.mxu0 %v752_v3  ;;  %303 = vmatpush1.bf16.msra.mxu1 %v753_v4  ;;  %v758_v7 = vld [vmem:[%s996_s1 + $0x20] ss:$16 sps:$4 sm:$0xff]   ;;  %v759_v8 = vld [vmem:[%s996_s1 + $0x28] ss:$16 sps:$4 sm:$0xff]   ;;  %v760_v9 = vld [vmem:[%s996_s1 + $0x44] ss:$16 sps:$4 sm:$0xff]  }
   0x4   :  { %191 = vmatprep.subr.bf16.mxu0 %v754_v5  ;;  %304 = vmatprep.subr.bf16.mxu1 %v756_v6  ;;  %v762_v10 = vld [vmem:[%s996_s1 + $0x4c] ss:$16 sps:$4 sm:$0xff]   ;;  %v764_v11 = vld [vmem:[%s996_s1 + $0x40] ss:$16 sps:$4 sm:$0xff]   ;;  %v765_v12 = vld [vmem:[%s996_s1 + $0x48] ss:$16 sps:$4 sm:$0xff]  }
   0x5   :  { %v766_v13 = vld [vmem:[%s996_s1 + $0x64] ss:$16 sps:$4 sm:$0xff]   ;;  %v768_v14 = vld [vmem:[%s996_s1 + $0x6c] ss:$16 sps:$4 sm:$0xff]   ;;  %v770_v15 = vld [vmem:[%s996_s1 + $0x60] ss:$16 sps:$4 sm:$0xff]  }
   0x6   :  { %v771_v16 = vld [vmem:[%s996_s1 + $0x68] ss:$16 sps:$4 sm:$0xff]   ;;  %v772_v17 = vld [vmem:[%s997_s0] sm:$0xff]   ;;  %v774_v19 = vld [vmem:[%s997_s0 + $0x10] sm:$0xff]  }
   0x7   :  { %192 = vmatpush1.bf16.msra.mxu0 %v758_v7  ;;  %305 = vmatpush1.bf16.msra.mxu1 %v759_v8  ;;  %v773_v18 = vld [vmem:[%s997_s0 + $0x8] sm:$0xff]   ;;  %v775_v20 = vld [vmem:[%s997_s0 + $0x18] sm:$0xff]   ;;  %v776_v21 = vld [vmem:[%s997_s0 + $0x20] sm:$0xff]  }
   0x8   :  { %193 = vmatprep.subr.bf16.mxu0 %v760_v9  ;;  %306 = vmatprep.subr.bf16.mxu1 %v762_v10  ;;  %v777_v22 = vld [vmem:[%s997_s0 + $0x28] sm:$0xff]   ;;  %v778_v23 = vld [vmem:[%s997_s0 + $0x30] sm:$0xff]   ;;  %v779_v24 = vld [vmem:[%s997_s0 + $0x38] sm:$0xff]  }
   0xb   :  { %194 = vmatpush1.bf16.msra.mxu0 %v764_v11  ;;  %307 = vmatpush1.bf16.msra.mxu1 %v765_v12 }
   0xc   :  { %195 = vmatprep.subr.bf16.mxu0 %v766_v13  ;;  %308 = vmatprep.subr.bf16.mxu1 %v768_v14 }
   0xf   :  { %196 = vmatpush1.bf16.msra.mxu0 %v770_v15  ;;  %309 = vmatpush1.bf16.msra.mxu1 %v771_v16 }
  0x12   :  { %667 = vmatmul.mubr.msk.bf16.vlgmr.msra.gmra.mrb[0].mxu0 %vm164_vm0, %v772_v17  ;;  %675 = vmatmul.mubr.msk.bf16.vlgmr.msra.gmra.mrb[0].mxu1 %vm164_vm0, %v772_v17 }
  0x13   :  { %231 = vmatprep.mubr.bf16.mxu0 %v780_v1  ;;  %344 = vmatprep.mubr.bf16.mxu1 %v780_v1 }
  0x1a   :  { %668 = vmatmul.mubr.msk.bf16.gmra.mrb[4].mxu0 %vm164_vm0, %v773_v18  ;;  %676 = vmatmul.mubr.msk.bf16.gmra.mrb[4].mxu1 %vm164_vm0, %v773_v18 }
  0x1b   :  { %241 = vmatprep.mubr.bf16.mxu0 %v780_v1  ;;  %354 = vmatprep.mubr.bf16.mxu1 %v780_v1 }
  0x22   :  { %669 = vmatmul.mubr.msk.bf16.gmra.mrb[8].mxu0 %vm164_vm0, %v774_v19  ;;  %677 = vmatmul.mubr.msk.bf16.gmra.mrb[8].mxu1 %vm164_vm0, %v774_v19 }
  0x23   :  { %251 = vmatprep.mubr.bf16.mxu0 %v780_v1  ;;  %364 = vmatprep.mubr.bf16.mxu1 %v780_v1 }
  0x2a   :  { %670 = vmatmul.mubr.msk.bf16.gmra.mrb[12].mxu0 %vm164_vm0, %v775_v20  ;;  %678 = vmatmul.mubr.msk.bf16.gmra.mrb[12].mxu1 %vm164_vm0, %v775_v20 }
  0x2b   :  { %261 = vmatprep.mubr.bf16.mxu0 %v780_v1  ;;  %374 = vmatprep.mubr.bf16.mxu1 %v780_v1 }
  0x32   :  { %671 = vmatmul.mubr.msk.bf16.gmra.mrb[16].mxu0 %vm164_vm0, %v776_v21  ;;  %679 = vmatmul.mubr.msk.bf16.gmra.mrb[16].mxu1 %vm164_vm0, %v776_v21 }
  0x33   :  { %271 = vmatprep.mubr.bf16.mxu0 %v780_v1  ;;  %384 = vmatprep.mubr.bf16.mxu1 %v780_v1 }
  0x3a   :  { %672 = vmatmul.mubr.msk.bf16.gmra.mrb[20].mxu0 %vm164_vm0, %v777_v22  ;;  %680 = vmatmul.mubr.msk.bf16.gmra.mrb[20].mxu1 %vm164_vm0, %v777_v22 }
  0x3b   :  { %281 = vmatprep.mubr.bf16.mxu0 %v780_v1  ;;  %394 = vmatprep.mubr.bf16.mxu1 %v780_v1 }
  0x42   :  { %673 = vmatmul.mubr.msk.bf16.gmra.mrb[24].mxu0 %vm164_vm0, %v778_v23  ;;  %681 = vmatmul.mubr.msk.bf16.gmra.mrb[24].mxu1 %vm164_vm0, %v778_v23 }
  0x43   :  { %291 = vmatprep.mubr.bf16.mxu0 %v780_v1  ;;  %404 = vmatprep.mubr.bf16.mxu1 %v780_v1 }
  0x4a   :  { %674 = vmatmul.mubr.msk.bf16.gmra.mrb[28].mxu0 %vm164_vm0, %v779_v24  ;;  %682 = vmatmul.mubr.msk.bf16.gmra.mrb[28].mxu1 %vm164_vm0, %v779_v24 }
  0xe5   :  { %v223_v25 = vpop.f32.mrb[0].mxu0  ;;  %v336_v26 = vpop.f32.mrb[0].mxu1 }
  0xe6   :  { %v225_v27 = vpop.f32.mrb[1].mxu0  ;;  %v338_v28 = vpop.f32.mrb[1].mxu1 }
  0xe7   :  { %v715_v29 = vpack.c.bf16 %v225_v27, %v223_v25  ;;  %v716_v30 = vpack.c.bf16 %v338_v28, %v336_v26  ;;  %v227_v31 = vpop.f32.mrb[2].mxu0  ;;  %v340_v32 = vpop.f32.mrb[2].mxu1 }
  0xe8   :  { %v229_v33 = vpop.f32.mrb[3].mxu0  ;;  %v342_v34 = vpop.f32.mrb[3].mxu1 }
  0xe9   :  { %607 = vst [vmem:[%s998_s2] sm:$0xff] %v715_v29  ;;  %608 = vst [vmem:[%s998_s2 + $0x8] sm:$0xff] %v716_v30  ;;  %v717_v35 = vpack.c.bf16 %v229_v33, %v227_v31  ;;  %v718_v36 = vpack.c.bf16 %v342_v34, %v340_v32 }
  0xeb   :  { %609 = vst [vmem:[%s998_s2 + $0x10] sm:$0xff] %v717_v35  ;;  %610 = vst [vmem:[%s998_s2 + $0x18] sm:$0xff] %v718_v36 }
  0xed   :  { %v233_v37 = vpop.f32.mrb[4].mxu0  ;;  %v346_v38 = vpop.f32.mrb[4].mxu1 }
  0xee   :  { %v235_v39 = vpop.f32.mrb[5].mxu0  ;;  %v348_v40 = vpop.f32.mrb[5].mxu1 }
  0xef   :  { %v719_v41 = vpack.c.bf16 %v235_v39, %v233_v37  ;;  %v720_v42 = vpack.c.bf16 %v348_v40, %v346_v38  ;;  %v237_v43 = vpop.f32.mrb[6].mxu0  ;;  %v350_v44 = vpop.f32.mrb[6].mxu1 }
  0xf0   :  { %v239_v45 = vpop.f32.mrb[7].mxu0  ;;  %v352_v46 = vpop.f32.mrb[7].mxu1 }
  0xf1   :  { %611 = vst [vmem:[%s998_s2 + $0x20] sm:$0xff] %v719_v41  ;;  %612 = vst [vmem:[%s998_s2 + $0x28] sm:$0xff] %v720_v42  ;;  %v721_v47 = vpack.c.bf16 %v239_v45, %v237_v43  ;;  %v722_v48 = vpack.c.bf16 %v352_v46, %v350_v44 }
  0xf3   :  { %613 = vst [vmem:[%s998_s2 + $0x30] sm:$0xff] %v721_v47  ;;  %614 = vst [vmem:[%s998_s2 + $0x38] sm:$0xff] %v722_v48 }
  0xf5   :  { %v243_v49 = vpop.f32.mrb[8].mxu0  ;;  %v356_v50 = vpop.f32.mrb[8].mxu1 }
  0xf6   :  { %v245_v51 = vpop.f32.mrb[9].mxu0  ;;  %v358_v52 = vpop.f32.mrb[9].mxu1 }
  0xf7   :  { %v723_v53 = vpack.c.bf16 %v245_v51, %v243_v49  ;;  %v724_v54 = vpack.c.bf16 %v358_v52, %v356_v50  ;;  %v247_v55 = vpop.f32.mrb[10].mxu0  ;;  %v360_v56 = vpop.f32.mrb[10].mxu1 }
  0xf8   :  { %v249_v57 = vpop.f32.mrb[11].mxu0  ;;  %v362_v58 = vpop.f32.mrb[11].mxu1 }
  0xf9   :  { %615 = vst [vmem:[%s998_s2 + $0x40] sm:$0xff] %v723_v53  ;;  %616 = vst [vmem:[%s998_s2 + $0x48] sm:$0xff] %v724_v54  ;;  %v725_v59 = vpack.c.bf16 %v249_v57, %v247_v55  ;;  %v726_v60 = vpack.c.bf16 %v362_v58, %v360_v56 }
  0xfb   :  { %617 = vst [vmem:[%s998_s2 + $0x50] sm:$0xff] %v725_v59  ;;  %618 = vst [vmem:[%s998_s2 + $0x58] sm:$0xff] %v726_v60 }
  0xfd   :  { %v253_v61 = vpop.f32.mrb[12].mxu0  ;;  %v366_v62 = vpop.f32.mrb[12].mxu1 }
  0xfe   :  { %v255_v63 = vpop.f32.mrb[13].mxu0  ;;  %v368_v0 = vpop.f32.mrb[13].mxu1 }
  0xff   :  { %v727_v1 = vpack.c.bf16 %v255_v63, %v253_v61  ;;  %v728_v2 = vpack.c.bf16 %v368_v0, %v366_v62  ;;  %v257_v3 = vpop.f32.mrb[14].mxu0  ;;  %v370_v4 = vpop.f32.mrb[14].mxu1 }
 0x100   :  { %v259_v5 = vpop.f32.mrb[15].mxu0  ;;  %v372_v6 = vpop.f32.mrb[15].mxu1 }
 0x101   :  { %619 = vst [vmem:[%s998_s2 + $0x60] sm:$0xff] %v727_v1  ;;  %620 = vst [vmem:[%s998_s2 + $0x68] sm:$0xff] %v728_v2  ;;  %v729_v7 = vpack.c.bf16 %v259_v5, %v257_v3  ;;  %v730_v8 = vpack.c.bf16 %v372_v6, %v370_v4 }
 0x103   :  { %621 = vst [vmem:[%s998_s2 + $0x70] sm:$0xff] %v729_v7  ;;  %622 = vst [vmem:[%s998_s2 + $0x78] sm:$0xff] %v730_v8 }
 0x105   :  { %v263_v9 = vpop.f32.mrb[16].mxu0  ;;  %v376_v10 = vpop.f32.mrb[16].mxu1 }
 0x106   :  { %v265_v11 = vpop.f32.mrb[17].mxu0  ;;  %v378_v12 = vpop.f32.mrb[17].mxu1 }
 0x107   :  { %v731_v13 = vpack.c.bf16 %v265_v11, %v263_v9  ;;  %v732_v14 = vpack.c.bf16 %v378_v12, %v376_v10  ;;  %v267_v15 = vpop.f32.mrb[18].mxu0  ;;  %v380_v16 = vpop.f32.mrb[18].mxu1 }
 0x108   :  { %v269_v17 = vpop.f32.mrb[19].mxu0  ;;  %v382_v18 = vpop.f32.mrb[19].mxu1 }
 0x109   :  { %623 = vst [vmem:[%s998_s2 + $0x80] sm:$0xff] %v731_v13  ;;  %624 = vst [vmem:[%s998_s2 + $0x88] sm:$0xff] %v732_v14  ;;  %v733_v19 = vpack.c.bf16 %v269_v17, %v267_v15  ;;  %v734_v20 = vpack.c.bf16 %v382_v18, %v380_v16 }
 0x10b   :  { %625 = vst [vmem:[%s998_s2 + $0x90] sm:$0xff] %v733_v19  ;;  %626 = vst [vmem:[%s998_s2 + $0x98] sm:$0xff] %v734_v20 }
 0x10d   :  { %v273_v21 = vpop.f32.mrb[20].mxu0  ;;  %v386_v22 = vpop.f32.mrb[20].mxu1 }
 0x10e   :  { %v275_v23 = vpop.f32.mrb[21].mxu0  ;;  %v388_v24 = vpop.f32.mrb[21].mxu1 }
 0x10f   :  { %v735_v25 = vpack.c.bf16 %v275_v23, %v273_v21  ;;  %v736_v26 = vpack.c.bf16 %v388_v24, %v386_v22  ;;  %v277_v27 = vpop.f32.mrb[22].mxu0  ;;  %v390_v28 = vpop.f32.mrb[22].mxu1 }
 0x110   :  { %v279_v29 = vpop.f32.mrb[23].mxu0  ;;  %v392_v30 = vpop.f32.mrb[23].mxu1 }
 0x111   :  { %627 = vst [vmem:[%s998_s2 + $0xa0] sm:$0xff] %v735_v25  ;;  %628 = vst [vmem:[%s998_s2 + $0xa8] sm:$0xff] %v736_v26  ;;  %v737_v31 = vpack.c.bf16 %v279_v29, %v277_v27  ;;  %v738_v32 = vpack.c.bf16 %v392_v30, %v390_v28 }
 0x113   :  { %629 = vst [vmem:[%s998_s2 + $0xb0] sm:$0xff] %v737_v31  ;;  %630 = vst [vmem:[%s998_s2 + $0xb8] sm:$0xff] %v738_v32 }
 0x115   :  { %v283_v33 = vpop.f32.mrb[24].mxu0  ;;  %v396_v34 = vpop.f32.mrb[24].mxu1 }
 0x116   :  { %v285_v35 = vpop.f32.mrb[25].mxu0  ;;  %v398_v36 = vpop.f32.mrb[25].mxu1 }
 0x117   :  { %v739_v37 = vpack.c.bf16 %v285_v35, %v283_v33  ;;  %v740_v38 = vpack.c.bf16 %v398_v36, %v396_v34  ;;  %v287_v39 = vpop.f32.mrb[26].mxu0  ;;  %v400_v40 = vpop.f32.mrb[26].mxu1 }
 0x118   :  { %v289_v41 = vpop.f32.mrb[27].mxu0  ;;  %v402_v42 = vpop.f32.mrb[27].mxu1 }
 0x119   :  { %631 = vst [vmem:[%s998_s2 + $0xc0] sm:$0xff] %v739_v37  ;;  %632 = vst [vmem:[%s998_s2 + $0xc8] sm:$0xff] %v740_v38  ;;  %v741_v43 = vpack.c.bf16 %v289_v41, %v287_v39  ;;  %v742_v44 = vpack.c.bf16 %v402_v42, %v400_v40 }
 0x11b   :  { %633 = vst [vmem:[%s998_s2 + $0xd0] sm:$0xff] %v741_v43  ;;  %634 = vst [vmem:[%s998_s2 + $0xd8] sm:$0xff] %v742_v44 }
 0x11d   :  { %v293_v45 = vpop.f32.mrb[28].mxu0  ;;  %v406_v46 = vpop.f32.mrb[28].mxu1 }
 0x11e   :  { %v295_v47 = vpop.f32.mrb[29].mxu0  ;;  %v408_v48 = vpop.f32.mrb[29].mxu1 }
 0x11f   :  { %v743_v49 = vpack.c.bf16 %v295_v47, %v293_v45  ;;  %v744_v50 = vpack.c.bf16 %v408_v48, %v406_v46  ;;  %v297_v51 = vpop.f32.mrb[30].mxu0  ;;  %v410_v52 = vpop.f32.mrb[30].mxu1 }
 0x120   :  { %v299_v53 = vpop.f32.mrb[31].mxu0  ;;  %v412_v54 = vpop.f32.mrb[31].mxu1 }
 0x121   :  { %635 = vst [vmem:[%s998_s2 + $0xe0] sm:$0xff] %v743_v49  ;;  %636 = vst [vmem:[%s998_s2 + $0xe8] sm:$0xff] %v744_v50  ;;  %v745_v55 = vpack.c.bf16 %v299_v53, %v297_v51  ;;  %v746_v56 = vpack.c.bf16 %v412_v54, %v410_v52 }
 0x123   :  { %637 = vst [vmem:[%s998_s2 + $0xf0] sm:$0xff] %v745_v55  ;;  %638 = vst [vmem:[%s998_s2 + $0xf8] sm:$0xff] %v746_v56 }

// kernel: factor_vae2_forward.16
= control target key start
LH: loop header
LB: loop body
LE: loop exit
PB: predicated region body
PF: predicated region fallthrough
CT: control target
= control target key end

     0   :  { %s949_s9 = smov 0   ;;  %s1054_s0 = inlined_call_operand.vmem [shape: bf16[512,32], index: 0, kind: input, shape index: {}]   ;;  %s1055_s1 = inlined_call_operand.vmem [shape: bf16[32,512], index: 1, kind: input, shape index: {}]   ;;  %s1056_s2 = inlined_call_operand.vmem [shape: bf16[512,512], index: 2, kind: output, shape index: {}]  }
   0x1 LB: > { %s787_s10 = sadd.s32 4294967295, %s931_s9   ;;  %p791_p0 = scmp.ge.s32.totalorder %s931_s9, 1  ;;  %s931_s9 = sphi %s949_s9, %s12_s9  }
   0x2   : > { %p113_p1 = scmp.lt.s32.totalorder %s931_s9, 5 }
   0x4   : > { %p114_p2 = pnand %p791_p0, %p113_p1 }
   0x5   : > { %v905_v0 = vld [vmem:[%s1055_s1 + $0x4] ss:$16 sps:$4 sm:$0xff] (!%p114_p2)   ;;  %s792_s13 = sshll.u32 (!%p114_p2), %s787_s10, 4  ;;  %v907_v1 = vld [vmem:[%s1055_s1 + $0xc] ss:$16 sps:$4 sm:$0xff] (!%p114_p2)   ;;  %v933_v2 = vmov (!%p114_p2), 0  }
   0x6   : > { %117 = sbr.rel (%p114_p2) target bundleno = 291 (0x123), region = 28  ;;  %311 = vmatprep.mubr.bf16.mxu0 (!%p114_p2), %v933_v2  ;;  %424 = vmatprep.mubr.bf16.mxu1 (!%p114_p2), %v933_v2  ;;  %p137_p3 = scmp.lt.s32.totalorder (!%p114_p2), %s792_s13, 63  ;;  %v909_v3 = vld [vmem:[%s1055_s1] ss:$16 sps:$4 sm:$0xff] (!%p114_p2)   ;;  %v910_v4 = vld [vmem:[%s1055_s1 + $0x8] ss:$16 sps:$4 sm:$0xff] (!%p114_p2)  }
   0x7   : > { %279 = vmatprep.subr.bf16.mxu0 (!%p114_p2), %v905_v0  ;;  %392 = vmatprep.subr.bf16.mxu1 (!%p114_p2), %v907_v1  ;;  %v911_v5 = vld [vmem:[%s1055_s1 + $0x24] ss:$16 sps:$4 sm:$0xff] (!%p114_p2)   ;;  %v913_v6 = vld [vmem:[%s1055_s1 + $0x2c] ss:$16 sps:$4 sm:$0xff] (!%p114_p2)   ;;  %v915_v7 = vld [vmem:[%s1055_s1 + $0x20] ss:$16 sps:$4 sm:$0xff] (!%p114_p2)  }
   0x8   : > { %280 = vmatpush1.bf16.msra.mxu0 (!%p114_p2), %v909_v3  ;;  %393 = vmatpush1.bf16.msra.mxu1 (!%p114_p2), %v910_v4  ;;  %v916_v8 = vld [vmem:[%s1055_s1 + $0x28] ss:$16 sps:$4 sm:$0xff] (!%p114_p2)   ;;  %vm254_vm0 = vcmask (!%p114_p2), 261120  }
   0x9   : > { %281 = vmatprep.subr.bf16.mxu0 (!%p114_p2), %v911_v5  ;;  %394 = vmatprep.subr.bf16.mxu1 (!%p114_p2), %v913_v6 }
   0xc   : > { %282 = vmatpush1.bf16.msra.mxu0 (!%p114_p2), %v915_v7  ;;  %395 = vmatpush1.bf16.msra.mxu1 (!%p114_p2), %v916_v8 }
   0xd   : > { %s1058_s13 = smov (!%p137_p3, %s792_s13), 63 }
   0xe   : > { %s793_s28 = sshll.u32 %s1058_s13, 2  ;;  %s863_s4 = sshll.u32 %s1058_s13, 4 }
   0xf   : > { %s987_s3 = scalar_lea.vmem %s1054_s0, %s793_s28  ;;  %s1017_s7 = scalar_lea.vmem %s1056_s2, %s863_s4 }
  0x10   : > { %v917_v9 = vld [vmem:[%s987_s3] sm:$0xff]   ;;  %v918_v10 = vld [vmem:[%s987_s3 + $0x8] sm:$0xff]   ;;  %v919_v11 = vld [vmem:[%s987_s3 + $0x10] sm:$0xff]  }
  0x11   : > { %813 = vmatmul.mubr.msk.bf16.vlgmr.msra.gmra.mrb[0].mxu0 %vm254_vm0, %v917_v9  ;;  %821 = vmatmul.mubr.msk.bf16.vlgmr.msra.gmra.mrb[0].mxu1 %vm254_vm0, %v917_v9  ;;  %v920_v12 = vld [vmem:[%s987_s3 + $0x18] sm:$0xff]   ;;  %v921_v13 = vld [vmem:[%s987_s3 + $0x20] sm:$0xff]   ;;  %v922_v14 = vld [vmem:[%s987_s3 + $0x28] sm:$0xff]  }
  0x12   : > { %321 = vmatprep.mubr.bf16.mxu0 %v933_v2  ;;  %434 = vmatprep.mubr.bf16.mxu1 %v933_v2  ;;  %v923_v15 = vld [vmem:[%s987_s3 + $0x30] sm:$0xff]   ;;  %v924_v16 = vld [vmem:[%s987_s3 + $0x38] sm:$0xff]  }
  0x19   : > { %814 = vmatmul.mubr.msk.bf16.gmra.mrb[4].mxu0 %vm254_vm0, %v918_v10  ;;  %822 = vmatmul.mubr.msk.bf16.gmra.mrb[4].mxu1 %vm254_vm0, %v918_v10 }
  0x1a   : > { %331 = vmatprep.mubr.bf16.mxu0 %v933_v2  ;;  %444 = vmatprep.mubr.bf16.mxu1 %v933_v2 }
  0x21   : > { %815 = vmatmul.mubr.msk.bf16.gmra.mrb[8].mxu0 %vm254_vm0, %v919_v11  ;;  %823 = vmatmul.mubr.msk.bf16.gmra.mrb[8].mxu1 %vm254_vm0, %v919_v11 }
  0x22   : > { %341 = vmatprep.mubr.bf16.mxu0 %v933_v2  ;;  %454 = vmatprep.mubr.bf16.mxu1 %v933_v2 }
  0x29   : > { %816 = vmatmul.mubr.msk.bf16.gmra.mrb[12].mxu0 %vm254_vm0, %v920_v12  ;;  %824 = vmatmul.mubr.msk.bf16.gmra.mrb[12].mxu1 %vm254_vm0, %v920_v12 }
  0x2a   : > { %351 = vmatprep.mubr.bf16.mxu0 %v933_v2  ;;  %464 = vmatprep.mubr.bf16.mxu1 %v933_v2 }
  0x31   : > { %817 = vmatmul.mubr.msk.bf16.gmra.mrb[16].mxu0 %vm254_vm0, %v921_v13  ;;  %825 = vmatmul.mubr.msk.bf16.gmra.mrb[16].mxu1 %vm254_vm0, %v921_v13 }
  0x32   : > { %361 = vmatprep.mubr.bf16.mxu0 %v933_v2  ;;  %474 = vmatprep.mubr.bf16.mxu1 %v933_v2 }
  0x39   : > { %818 = vmatmul.mubr.msk.bf16.gmra.mrb[20].mxu0 %vm254_vm0, %v922_v14  ;;  %826 = vmatmul.mubr.msk.bf16.gmra.mrb[20].mxu1 %vm254_vm0, %v922_v14 }
  0x3a   : > { %371 = vmatprep.mubr.bf16.mxu0 %v933_v2  ;;  %484 = vmatprep.mubr.bf16.mxu1 %v933_v2 }
  0x41   : > { %819 = vmatmul.mubr.msk.bf16.gmra.mrb[24].mxu0 %vm254_vm0, %v923_v15  ;;  %827 = vmatmul.mubr.msk.bf16.gmra.mrb[24].mxu1 %vm254_vm0, %v923_v15 }
  0x42   : > { %381 = vmatprep.mubr.bf16.mxu0 %v933_v2  ;;  %494 = vmatprep.mubr.bf16.mxu1 %v933_v2 }
  0x49   : > { %820 = vmatmul.mubr.msk.bf16.gmra.mrb[28].mxu0 %vm254_vm0, %v924_v16  ;;  %828 = vmatmul.mubr.msk.bf16.gmra.mrb[28].mxu1 %vm254_vm0, %v924_v16 }
  0xe4   : > { %v313_v17 = vpop.f32.mrb[0].mxu0  ;;  %v426_v18 = vpop.f32.mrb[0].mxu1 }
  0xe5   : > { %v315_v19 = vpop.f32.mrb[1].mxu0  ;;  %v428_v20 = vpop.f32.mrb[1].mxu1 }
  0xe6   : > { %v864_v21 = vpack.c.bf16 %v315_v19, %v313_v17  ;;  %v865_v22 = vpack.c.bf16 %v428_v20, %v426_v18  ;;  %v317_v23 = vpop.f32.mrb[2].mxu0  ;;  %v430_v24 = vpop.f32.mrb[2].mxu1 }
  0xe7   : > { %v319_v25 = vpop.f32.mrb[3].mxu0  ;;  %v432_v26 = vpop.f32.mrb[3].mxu1 }
  0xe8   : > { %697 = vst [vmem:[%s1017_s7] sm:$0xff] %v864_v21  ;;  %698 = vst [vmem:[%s1017_s7 + $0x8] sm:$0xff] %v865_v22  ;;  %v866_v27 = vpack.c.bf16 %v319_v25, %v317_v23  ;;  %v867_v28 = vpack.c.bf16 %v432_v26, %v430_v24 }
  0xea   : > { %699 = vst [vmem:[%s1017_s7 + $0x10] sm:$0xff] %v866_v27  ;;  %700 = vst [vmem:[%s1017_s7 + $0x18] sm:$0xff] %v867_v28 }
  0xec   : > { %v323_v29 = vpop.f32.mrb[4].mxu0  ;;  %v436_v30 = vpop.f32.mrb[4].mxu1 }
  0xed   : > { %v325_v31 = vpop.f32.mrb[5].mxu0  ;;  %v438_v32 = vpop.f32.mrb[5].mxu1 }
  0xee   : > { %v868_v33 = vpack.c.bf16 %v325_v31, %v323_v29  ;;  %v869_v34 = vpack.c.bf16 %v438_v32, %v436_v30  ;;  %v327_v35 = vpop.f32.mrb[6].mxu0  ;;  %v440_v36 = vpop.f32.mrb[6].mxu1 }
  0xef   : > { %v329_v37 = vpop.f32.mrb[7].mxu0  ;;  %v442_v38 = vpop.f32.mrb[7].mxu1 }
  0xf0   : > { %701 = vst [vmem:[%s1017_s7 + $0x20] sm:$0xff] %v868_v33  ;;  %702 = vst [vmem:[%s1017_s7 + $0x28] sm:$0xff] %v869_v34  ;;  %v870_v39 = vpack.c.bf16 %v329_v37, %v327_v35  ;;  %v871_v40 = vpack.c.bf16 %v442_v38, %v440_v36 }
  0xf2   : > { %703 = vst [vmem:[%s1017_s7 + $0x30] sm:$0xff] %v870_v39  ;;  %704 = vst [vmem:[%s1017_s7 + $0x38] sm:$0xff] %v871_v40 }
  0xf4   : > { %v333_v41 = vpop.f32.mrb[8].mxu0  ;;  %v446_v42 = vpop.f32.mrb[8].mxu1 }
  0xf5   : > { %v335_v43 = vpop.f32.mrb[9].mxu0  ;;  %v448_v44 = vpop.f32.mrb[9].mxu1 }
  0xf6   : > { %v872_v45 = vpack.c.bf16 %v335_v43, %v333_v41  ;;  %v873_v46 = vpack.c.bf16 %v448_v44, %v446_v42  ;;  %v337_v47 = vpop.f32.mrb[10].mxu0  ;;  %v450_v48 = vpop.f32.mrb[10].mxu1 }
  0xf7   : > { %v339_v49 = vpop.f32.mrb[11].mxu0  ;;  %v452_v50 = vpop.f32.mrb[11].mxu1 }
  0xf8   : > { %705 = vst [vmem:[%s1017_s7 + $0x40] sm:$0xff] %v872_v45  ;;  %706 = vst [vmem:[%s1017_s7 + $0x48] sm:$0xff] %v873_v46  ;;  %v874_v51 = vpack.c.bf16 %v339_v49, %v337_v47  ;;  %v875_v52 = vpack.c.bf16 %v452_v50, %v450_v48 }
  0xfa   : > { %707 = vst [vmem:[%s1017_s7 + $0x50] sm:$0xff] %v874_v51  ;;  %708 = vst [vmem:[%s1017_s7 + $0x58] sm:$0xff] %v875_v52 }
  0xfc   : > { %v343_v53 = vpop.f32.mrb[12].mxu0  ;;  %v456_v54 = vpop.f32.mrb[12].mxu1 }
  0xfd   : > { %v345_v55 = vpop.f32.mrb[13].mxu0  ;;  %v458_v56 = vpop.f32.mrb[13].mxu1 }
  0xfe   : > { %v876_v57 = vpack.c.bf16 %v345_v55, %v343_v53  ;;  %v877_v58 = vpack.c.bf16 %v458_v56, %v456_v54  ;;  %v347_v59 = vpop.f32.mrb[14].mxu0  ;;  %v460_v60 = vpop.f32.mrb[14].mxu1 }
  0xff   : > { %v349_v61 = vpop.f32.mrb[15].mxu0  ;;  %v462_v62 = vpop.f32.mrb[15].mxu1 }
 0x100   : > { %709 = vst [vmem:[%s1017_s7 + $0x60] sm:$0xff] %v876_v57  ;;  %710 = vst [vmem:[%s1017_s7 + $0x68] sm:$0xff] %v877_v58  ;;  %v878_v63 = vpack.c.bf16 %v349_v61, %v347_v59  ;;  %v879_v0 = vpack.c.bf16 %v462_v62, %v460_v60 }
 0x102   : > { %711 = vst [vmem:[%s1017_s7 + $0x70] sm:$0xff] %v878_v63  ;;  %712 = vst [vmem:[%s1017_s7 + $0x78] sm:$0xff] %v879_v0 }
 0x104   : > { %v353_v1 = vpop.f32.mrb[16].mxu0  ;;  %v466_v2 = vpop.f32.mrb[16].mxu1 }
 0x105   : > { %v355_v3 = vpop.f32.mrb[17].mxu0  ;;  %v468_v4 = vpop.f32.mrb[17].mxu1 }
 0x106   : > { %v880_v5 = vpack.c.bf16 %v355_v3, %v353_v1  ;;  %v881_v6 = vpack.c.bf16 %v468_v4, %v466_v2  ;;  %v357_v7 = vpop.f32.mrb[18].mxu0  ;;  %v470_v8 = vpop.f32.mrb[18].mxu1 }
 0x107   : > { %v359_v9 = vpop.f32.mrb[19].mxu0  ;;  %v472_v10 = vpop.f32.mrb[19].mxu1 }
 0x108   : > { %713 = vst [vmem:[%s1017_s7 + $0x80] sm:$0xff] %v880_v5  ;;  %714 = vst [vmem:[%s1017_s7 + $0x88] sm:$0xff] %v881_v6  ;;  %v882_v11 = vpack.c.bf16 %v359_v9, %v357_v7  ;;  %v883_v12 = vpack.c.bf16 %v472_v10, %v470_v8 }
 0x10a   : > { %715 = vst [vmem:[%s1017_s7 + $0x90] sm:$0xff] %v882_v11  ;;  %716 = vst [vmem:[%s1017_s7 + $0x98] sm:$0xff] %v883_v12 }
 0x10c   : > { %v363_v13 = vpop.f32.mrb[20].mxu0  ;;  %v476_v14 = vpop.f32.mrb[20].mxu1 }
 0x10d   : > { %v365_v15 = vpop.f32.mrb[21].mxu0  ;;  %v478_v16 = vpop.f32.mrb[21].mxu1 }
 0x10e   : > { %v884_v17 = vpack.c.bf16 %v365_v15, %v363_v13  ;;  %v885_v18 = vpack.c.bf16 %v478_v16, %v476_v14  ;;  %v367_v19 = vpop.f32.mrb[22].mxu0  ;;  %v480_v20 = vpop.f32.mrb[22].mxu1 }
 0x10f   : > { %v369_v21 = vpop.f32.mrb[23].mxu0  ;;  %v482_v22 = vpop.f32.mrb[23].mxu1 }
 0x110   : > { %717 = vst [vmem:[%s1017_s7 + $0xa0] sm:$0xff] %v884_v17  ;;  %718 = vst [vmem:[%s1017_s7 + $0xa8] sm:$0xff] %v885_v18  ;;  %v886_v23 = vpack.c.bf16 %v369_v21, %v367_v19  ;;  %v887_v24 = vpack.c.bf16 %v482_v22, %v480_v20 }
 0x112   : > { %719 = vst [vmem:[%s1017_s7 + $0xb0] sm:$0xff] %v886_v23  ;;  %720 = vst [vmem:[%s1017_s7 + $0xb8] sm:$0xff] %v887_v24 }
 0x114   : > { %v373_v25 = vpop.f32.mrb[24].mxu0  ;;  %v486_v26 = vpop.f32.mrb[24].mxu1 }
 0x115   : > { %v375_v27 = vpop.f32.mrb[25].mxu0  ;;  %v488_v28 = vpop.f32.mrb[25].mxu1 }
 0x116   : > { %v888_v29 = vpack.c.bf16 %v375_v27, %v373_v25  ;;  %v889_v30 = vpack.c.bf16 %v488_v28, %v486_v26  ;;  %v377_v31 = vpop.f32.mrb[26].mxu0  ;;  %v490_v32 = vpop.f32.mrb[26].mxu1 }
 0x117   : > { %v379_v33 = vpop.f32.mrb[27].mxu0  ;;  %v492_v34 = vpop.f32.mrb[27].mxu1 }
 0x118   : > { %721 = vst [vmem:[%s1017_s7 + $0xc0] sm:$0xff] %v888_v29  ;;  %722 = vst [vmem:[%s1017_s7 + $0xc8] sm:$0xff] %v889_v30  ;;  %v890_v35 = vpack.c.bf16 %v379_v33, %v377_v31  ;;  %v891_v36 = vpack.c.bf16 %v492_v34, %v490_v32 }
 0x11a   : > { %723 = vst [vmem:[%s1017_s7 + $0xd0] sm:$0xff] %v890_v35  ;;  %724 = vst [vmem:[%s1017_s7 + $0xd8] sm:$0xff] %v891_v36 }
 0x11c   : > { %v383_v37 = vpop.f32.mrb[28].mxu0  ;;  %v496_v38 = vpop.f32.mrb[28].mxu1 }
 0x11d   : > { %v385_v39 = vpop.f32.mrb[29].mxu0  ;;  %v498_v40 = vpop.f32.mrb[29].mxu1 }
 0x11e   : > { %v892_v41 = vpack.c.bf16 %v385_v39, %v383_v37  ;;  %v893_v42 = vpack.c.bf16 %v498_v40, %v496_v38  ;;  %v387_v43 = vpop.f32.mrb[30].mxu0  ;;  %v500_v44 = vpop.f32.mrb[30].mxu1 }
 0x11f   : > { %v389_v45 = vpop.f32.mrb[31].mxu0  ;;  %v502_v46 = vpop.f32.mrb[31].mxu1 }
 0x120   : > { %725 = vst [vmem:[%s1017_s7 + $0xe0] sm:$0xff] %v892_v41  ;;  %726 = vst [vmem:[%s1017_s7 + $0xe8] sm:$0xff] %v893_v42  ;;  %v894_v47 = vpack.c.bf16 %v389_v45, %v387_v43  ;;  %v895_v48 = vpack.c.bf16 %v502_v46, %v500_v44 }
 0x122   : > { %727 = vst [vmem:[%s1017_s7 + $0xf0] sm:$0xff] %v894_v47  ;;  %728 = vst [vmem:[%s1017_s7 + $0xf8] sm:$0xff] %v895_v48 }
 0x123 PF: > { %s12_s9 = sadd.s32 1, %s931_s9  }
 0x124   : > { %p9_p4 = scmp.ge.s32.totalorder %s12_s9, 6  }
 0x126   :  { %11 = sbr.rel (!%p9_p4) target bundleno = 1 (0x1), region = 58 }

// kernel: factor_vae2_forward.17
= control target key start
LH: loop header
LB: loop body
LE: loop exit
PB: predicated region body
PF: predicated region fallthrough
CT: control target
= control target key end

     0   :  { %s1717_s9 = smov 0   ;;  %s1847_s0 = inlined_call_operand.vmem [shape: bf16[2048,32], index: 0, kind: input, shape index: {}]   ;;  %s1848_s1 = inlined_call_operand.vmem [shape: bf16[32,128], index: 1, kind: input, shape index: {}]   ;;  %s1849_s2 = inlined_call_operand.vmem [shape: bf16[2048,128], index: 2, kind: output, shape index: {}]  }
   0x1 LB: > { %s1150_s10 = sadd.s32 4294967295, %s1700_s9   ;;  %p1154_p0 = scmp.ge.s32.totalorder %s1700_s9, 1  ;;  %s1700_s9 = sphi %s1717_s9, %s12_s9  }
   0x2   : > { %p113_p1 = scmp.lt.s32.totalorder %s1700_s9, 5 }
   0x4   : > { %p114_p2 = pnand %p1154_p0, %p113_p1 }
   0x5   : > { %v1660_v0 = vld [vmem:[%s1848_s1] sm:$0xff] (!%p114_p2)   ;;  %s1155_s13 = sshll.u32 (!%p114_p2), %s1150_s10, 6  ;;  %v1661_v1 = vld [vmem:[%s1848_s1 + $0x8] sm:$0xff] (!%p114_p2)   ;;  %vm388_vm0 = vcmask (!%p114_p2), 261120  }
   0x6   : > { %117 = sbr.rel (%p114_p2) target bundleno = 293 (0x125), region = 28  ;;  %p136_p3 = scmp.lt.s32.totalorder (!%p114_p2), %s1155_s13, 255  ;;  %1580 = vmatprep.subr.bf16.mxu0 (!%p114_p2), %v1660_v0  ;;  %1648 = vmatprep.subr.bf16.mxu1 (!%p114_p2), %v1660_v0 }
   0x7   : > { %1581 = vmatpush3.bf16.msra.mxu0 (!%p114_p2), %v1660_v0  ;;  %1650 = vmatpush3.bf16.msra.mxu1 (!%p114_p2), %v1660_v0 }
   0x8   : > { %1582 = vmatprep.subr.bf16.mxu0 (!%p114_p2), %v1661_v1  ;;  %1649 = vmatprep.subr.bf16.mxu1 (!%p114_p2), %v1661_v1 }
   0xb   : > { %1583 = vmatpush3.bf16.msra.mxu0 (!%p114_p2), %v1661_v1  ;;  %1651 = vmatpush3.bf16.msra.mxu1 (!%p114_p2), %v1661_v1 }
   0xd   : > { %s1851_s13 = smov (!%p136_p3, %s1155_s13), 255 }
   0xe   : > { %s1156_s16 = sshll.u32 %s1851_s13, 2 }
   0xf   : > { %s1739_s19 = scalar_lea.vmem %s1847_s0, %s1156_s16  ;;  %s1810_s22 = scalar_lea.vmem %s1849_s2, %s1156_s16 }
  0x10   : > { %v1662_v2 = vld [vmem:[%s1739_s19] sm:$0xff]   ;;  %v1664_v4 = vld [vmem:[%s1739_s19 + $0x8] sm:$0xff]   ;;  %v1666_v6 = vld [vmem:[%s1739_s19 + $0x10] sm:$0xff]  }
  0x11   : > { %v1663_v3 = vld [vmem:[%s1739_s19 + $0x80] sm:$0xff]   ;;  %1584 = vmatprep.mubr.msk.bf16.mxu0 %vm388_vm0, %v1662_v2  ;;  %v1665_v5 = vld [vmem:[%s1739_s19 + $0x88] sm:$0xff]   ;;  %v1667_v7 = vld [vmem:[%s1739_s19 + $0x90] sm:$0xff]  }
  0x12   : > { %1616 = vmatprep.mubr.msk.bf16.mxu1 %vm388_vm0, %v1663_v3  ;;  %1585 = vmatmul.mubr.msk.bf16.vlgmr.msra.gmra.mrb[0].mxu0 %vm388_vm0, %v1664_v4  ;;  %v1668_v8 = vld [vmem:[%s1739_s19 + $0x18] sm:$0xff]   ;;  %v1670_v10 = vld [vmem:[%s1739_s19 + $0x20] sm:$0xff]   ;;  %v1672_v12 = vld [vmem:[%s1739_s19 + $0x28] sm:$0xff]  }
  0x13   : > { %1617 = vmatmul.mubr.msk.bf16.vlgmr.msra.gmra.mrb[0].mxu1 %vm388_vm0, %v1665_v5  ;;  %1588 = vmatprep.mubr.msk.bf16.mxu0 %vm388_vm0, %v1666_v6  ;;  %v1669_v9 = vld [vmem:[%s1739_s19 + $0x98] sm:$0xff]   ;;  %v1671_v11 = vld [vmem:[%s1739_s19 + $0xa0] sm:$0xff]   ;;  %v1673_v13 = vld [vmem:[%s1739_s19 + $0xa8] sm:$0xff]  }
  0x14   : > { %1620 = vmatprep.mubr.msk.bf16.mxu1 %vm388_vm0, %v1667_v7  ;;  %v1674_v14 = vld [vmem:[%s1739_s19 + $0x30] sm:$0xff]   ;;  %v1676_v16 = vld [vmem:[%s1739_s19 + $0x38] sm:$0xff]   ;;  %v1678_v18 = vld [vmem:[%s1739_s19 + $0x40] sm:$0xff]  }
  0x15   : > { %v1675_v15 = vld [vmem:[%s1739_s19 + $0xb0] sm:$0xff]   ;;  %v1677_v17 = vld [vmem:[%s1739_s19 + $0xb8] sm:$0xff]   ;;  %v1679_v19 = vld [vmem:[%s1739_s19 + $0xc0] sm:$0xff]  }
  0x16   : > { %v1680_v20 = vld [vmem:[%s1739_s19 + $0x48] sm:$0xff]   ;;  %v1682_v22 = vld [vmem:[%s1739_s19 + $0x50] sm:$0xff]   ;;  %v1684_v24 = vld [vmem:[%s1739_s19 + $0x58] sm:$0xff]  }
  0x17   : > { %v1681_v21 = vld [vmem:[%s1739_s19 + $0xc8] sm:$0xff]   ;;  %v1683_v23 = vld [vmem:[%s1739_s19 + $0xd0] sm:$0xff]   ;;  %v1685_v25 = vld [vmem:[%s1739_s19 + $0xd8] sm:$0xff]  }
  0x18   : > { %v1686_v26 = vld [vmem:[%s1739_s19 + $0x60] sm:$0xff]   ;;  %v1688_v28 = vld [vmem:[%s1739_s19 + $0x68] sm:$0xff]   ;;  %v1690_v30 = vld [vmem:[%s1739_s19 + $0x70] sm:$0xff]  }
  0x19   : > { %v1687_v27 = vld [vmem:[%s1739_s19 + $0xe0] sm:$0xff]   ;;  %v1689_v29 = vld [vmem:[%s1739_s19 + $0xe8] sm:$0xff]   ;;  %v1691_v31 = vld [vmem:[%s1739_s19 + $0xf0] sm:$0xff]  }
  0x1a   : > { %1589 = vmatmul.mubr.msk.bf16.gmra.mrb[4].mxu0 %vm388_vm0, %v1668_v8  ;;  %v1692_v32 = vld [vmem:[%s1739_s19 + $0x78] sm:$0xff]  }
  0x1b   : > { %1621 = vmatmul.mubr.msk.bf16.gmra.mrb[4].mxu1 %vm388_vm0, %v1669_v9  ;;  %1592 = vmatprep.mubr.msk.bf16.mxu0 %vm388_vm0, %v1670_v10  ;;  %v1693_v33 = vld [vmem:[%s1739_s19 + $0xf8] sm:$0xff]  }
  0x1c   : > { %1624 = vmatprep.mubr.msk.bf16.mxu1 %vm388_vm0, %v1671_v11 }
  0x22   : > { %1593 = vmatmul.mubr.msk.bf16.gmra.mrb[8].mxu0 %vm388_vm0, %v1672_v12 }
  0x23   : > { %1625 = vmatmul.mubr.msk.bf16.gmra.mrb[8].mxu1 %vm388_vm0, %v1673_v13  ;;  %1596 = vmatprep.mubr.msk.bf16.mxu0 %vm388_vm0, %v1674_v14 }
  0x24   : > { %1628 = vmatprep.mubr.msk.bf16.mxu1 %vm388_vm0, %v1675_v15 }
  0x2a   : > { %1597 = vmatmul.mubr.msk.bf16.gmra.mrb[12].mxu0 %vm388_vm0, %v1676_v16 }
  0x2b   : > { %1629 = vmatmul.mubr.msk.bf16.gmra.mrb[12].mxu1 %vm388_vm0, %v1677_v17  ;;  %1600 = vmatprep.mubr.msk.bf16.mxu0 %vm388_vm0, %v1678_v18 }
  0x2c   : > { %1632 = vmatprep.mubr.msk.bf16.mxu1 %vm388_vm0, %v1679_v19 }
  0x32   : > { %1601 = vmatmul.mubr.msk.bf16.gmra.mrb[16].mxu0 %vm388_vm0, %v1680_v20 }
  0x33   : > { %1633 = vmatmul.mubr.msk.bf16.gmra.mrb[16].mxu1 %vm388_vm0, %v1681_v21  ;;  %1604 = vmatprep.mubr.msk.bf16.mxu0 %vm388_vm0, %v1682_v22 }
  0x34   : > { %1636 = vmatprep.mubr.msk.bf16.mxu1 %vm388_vm0, %v1683_v23 }
  0x3a   : > { %1605 = vmatmul.mubr.msk.bf16.gmra.mrb[20].mxu0 %vm388_vm0, %v1684_v24 }
  0x3b   : > { %1637 = vmatmul.mubr.msk.bf16.gmra.mrb[20].mxu1 %vm388_vm0, %v1685_v25  ;;  %1608 = vmatprep.mubr.msk.bf16.mxu0 %vm388_vm0, %v1686_v26 }
  0x3c   : > { %1640 = vmatprep.mubr.msk.bf16.mxu1 %vm388_vm0, %v1687_v27 }
  0x42   : > { %1609 = vmatmul.mubr.msk.bf16.gmra.mrb[24].mxu0 %vm388_vm0, %v1688_v28 }
  0x43   : > { %1641 = vmatmul.mubr.msk.bf16.gmra.mrb[24].mxu1 %vm388_vm0, %v1689_v29  ;;  %1612 = vmatprep.mubr.msk.bf16.mxu0 %vm388_vm0, %v1690_v30 }
  0x44   : > { %1644 = vmatprep.mubr.msk.bf16.mxu1 %vm388_vm0, %v1691_v31 }
  0x4a   : > { %1613 = vmatmul.mubr.msk.bf16.gmra.mrb[28].mxu0 %vm388_vm0, %v1692_v32 }
  0x4b   : > { %1645 = vmatmul.mubr.msk.bf16.gmra.mrb[28].mxu1 %vm388_vm0, %v1693_v33 }
  0xe5   : > { %v1586_v34 = vpop.f32.mrb[0].mxu0 }
  0xe6   : > { %v1618_v35 = vpop.f32.mrb[0].mxu1  ;;  %v519_v36 = vpop.f32.mrb[1].mxu0 }
  0xe7   : > { %v647_v37 = vpop.f32.mrb[1].mxu1  ;;  %v1587_v38 = vpop.f32.mrb[2].mxu0 }
  0xe8   : > { %v1363_v39 = vpack.c.bf16 %v1587_v38, %v1586_v34  ;;  %v1619_v40 = vpop.f32.mrb[2].mxu1  ;;  %v522_v41 = vpop.f32.mrb[3].mxu0 }
  0xe9   : > { %v1443_v42 = vpack.c.bf16 %v1619_v40, %v1618_v35  ;;  %v1358_v43 = vpack.c.bf16 %v522_v41, %v519_v36  ;;  %v650_v44 = vpop.f32.mrb[3].mxu1 }
  0xea   : > { %1515 = vst [vmem:[%s1810_s22 + $0x8] sm:$0xff] %v1363_v39   ;;  %v1438_v45 = vpack.c.bf16 %v650_v44, %v647_v37 }
  0xeb   : > { %1531 = vst [vmem:[%s1810_s22 + $0x88] sm:$0xff] %v1443_v42   ;;  %1359 = vst [vmem:[%s1810_s22] sm:$0xff] %v1358_v43  }
  0xec   : > { %1530 = vst [vmem:[%s1810_s22 + $0x80] sm:$0xff] %v1438_v45  }
  0xed   : > { %v1590_v46 = vpop.f32.mrb[4].mxu0 }
  0xee   : > { %v1622_v47 = vpop.f32.mrb[4].mxu1  ;;  %v535_v48 = vpop.f32.mrb[5].mxu0 }
  0xef   : > { %v663_v49 = vpop.f32.mrb[5].mxu1  ;;  %v1591_v50 = vpop.f32.mrb[6].mxu0 }
  0xf0   : > { %v1373_v51 = vpack.c.bf16 %v1591_v50, %v1590_v46  ;;  %v1623_v52 = vpop.f32.mrb[6].mxu1  ;;  %v538_v53 = vpop.f32.mrb[7].mxu0 }
  0xf1   : > { %v1453_v54 = vpack.c.bf16 %v1623_v52, %v1622_v47  ;;  %v1368_v55 = vpack.c.bf16 %v538_v53, %v535_v48  ;;  %v666_v56 = vpop.f32.mrb[7].mxu1 }
  0xf2   : > { %1517 = vst [vmem:[%s1810_s22 + $0x18] sm:$0xff] %v1373_v51   ;;  %v1448_v57 = vpack.c.bf16 %v666_v56, %v663_v49 }
  0xf3   : > { %1533 = vst [vmem:[%s1810_s22 + $0x98] sm:$0xff] %v1453_v54   ;;  %1516 = vst [vmem:[%s1810_s22 + $0x10] sm:$0xff] %v1368_v55  }
  0xf4   : > { %1532 = vst [vmem:[%s1810_s22 + $0x90] sm:$0xff] %v1448_v57  }
  0xf5   : > { %v1594_v58 = vpop.f32.mrb[8].mxu0 }
  0xf6   : > { %v1626_v59 = vpop.f32.mrb[8].mxu1  ;;  %v551_v60 = vpop.f32.mrb[9].mxu0 }
  0xf7   : > { %v679_v61 = vpop.f32.mrb[9].mxu1  ;;  %v1595_v62 = vpop.f32.mrb[10].mxu0 }
  0xf8   : > { %v1383_v63 = vpack.c.bf16 %v1595_v62, %v1594_v58  ;;  %v1627_v0 = vpop.f32.mrb[10].mxu1  ;;  %v554_v1 = vpop.f32.mrb[11].mxu0 }
  0xf9   : > { %v1463_v2 = vpack.c.bf16 %v1627_v0, %v1626_v59  ;;  %v1378_v3 = vpack.c.bf16 %v554_v1, %v551_v60  ;;  %v682_v4 = vpop.f32.mrb[11].mxu1 }
  0xfa   : > { %1519 = vst [vmem:[%s1810_s22 + $0x28] sm:$0xff] %v1383_v63   ;;  %v1458_v5 = vpack.c.bf16 %v682_v4, %v679_v61 }
  0xfb   : > { %1535 = vst [vmem:[%s1810_s22 + $0xa8] sm:$0xff] %v1463_v2   ;;  %1518 = vst [vmem:[%s1810_s22 + $0x20] sm:$0xff] %v1378_v3  }
  0xfc   : > { %1534 = vst [vmem:[%s1810_s22 + $0xa0] sm:$0xff] %v1458_v5  }
  0xfd   : > { %v1598_v6 = vpop.f32.mrb[12].mxu0 }
  0xfe   : > { %v1630_v7 = vpop.f32.mrb[12].mxu1  ;;  %v567_v8 = vpop.f32.mrb[13].mxu0 }
  0xff   : > { %v695_v9 = vpop.f32.mrb[13].mxu1  ;;  %v1599_v10 = vpop.f32.mrb[14].mxu0 }
 0x100   : > { %v1393_v11 = vpack.c.bf16 %v1599_v10, %v1598_v6  ;;  %v1631_v12 = vpop.f32.mrb[14].mxu1  ;;  %v570_v13 = vpop.f32.mrb[15].mxu0 }
 0x101   : > { %v1473_v14 = vpack.c.bf16 %v1631_v12, %v1630_v7  ;;  %v1388_v15 = vpack.c.bf16 %v570_v13, %v567_v8  ;;  %v698_v16 = vpop.f32.mrb[15].mxu1 }
 0x102   : > { %1521 = vst [vmem:[%s1810_s22 + $0x38] sm:$0xff] %v1393_v11   ;;  %v1468_v17 = vpack.c.bf16 %v698_v16, %v695_v9 }
 0x103   : > { %1537 = vst [vmem:[%s1810_s22 + $0xb8] sm:$0xff] %v1473_v14   ;;  %1520 = vst [vmem:[%s1810_s22 + $0x30] sm:$0xff] %v1388_v15  }
 0x104   : > { %1536 = vst [vmem:[%s1810_s22 + $0xb0] sm:$0xff] %v1468_v17  }
 0x105   : > { %v1602_v18 = vpop.f32.mrb[16].mxu0 }
 0x106   : > { %v1634_v19 = vpop.f32.mrb[16].mxu1  ;;  %v583_v20 = vpop.f32.mrb[17].mxu0 }
 0x107   : > { %v711_v21 = vpop.f32.mrb[17].mxu1  ;;  %v1603_v22 = vpop.f32.mrb[18].mxu0 }
 0x108   : > { %v1403_v23 = vpack.c.bf16 %v1603_v22, %v1602_v18  ;;  %v1635_v24 = vpop.f32.mrb[18].mxu1  ;;  %v586_v25 = vpop.f32.mrb[19].mxu0 }
 0x109   : > { %v1483_v26 = vpack.c.bf16 %v1635_v24, %v1634_v19  ;;  %v1398_v27 = vpack.c.bf16 %v586_v25, %v583_v20  ;;  %v714_v28 = vpop.f32.mrb[19].mxu1 }
 0x10a   : > { %1523 = vst [vmem:[%s1810_s22 + $0x48] sm:$0xff] %v1403_v23   ;;  %v1478_v29 = vpack.c.bf16 %v714_v28, %v711_v21 }
 0x10b   : > { %1539 = vst [vmem:[%s1810_s22 + $0xc8] sm:$0xff] %v1483_v26   ;;  %1522 = vst [vmem:[%s1810_s22 + $0x40] sm:$0xff] %v1398_v27  }
 0x10c   : > { %1538 = vst [vmem:[%s1810_s22 + $0xc0] sm:$0xff] %v1478_v29  }
 0x10d   : > { %v1606_v30 = vpop.f32.mrb[20].mxu0 }
 0x10e   : > { %v1638_v31 = vpop.f32.mrb[20].mxu1  ;;  %v599_v32 = vpop.f32.mrb[21].mxu0 }
 0x10f   : > { %v727_v33 = vpop.f32.mrb[21].mxu1  ;;  %v1607_v34 = vpop.f32.mrb[22].mxu0 }
 0x110   : > { %v1413_v35 = vpack.c.bf16 %v1607_v34, %v1606_v30  ;;  %v1639_v36 = vpop.f32.mrb[22].mxu1  ;;  %v602_v37 = vpop.f32.mrb[23].mxu0 }
 0x111   : > { %v1493_v38 = vpack.c.bf16 %v1639_v36, %v1638_v31  ;;  %v1408_v39 = vpack.c.bf16 %v602_v37, %v599_v32  ;;  %v730_v40 = vpop.f32.mrb[23].mxu1 }
 0x112   : > { %1525 = vst [vmem:[%s1810_s22 + $0x58] sm:$0xff] %v1413_v35   ;;  %v1488_v41 = vpack.c.bf16 %v730_v40, %v727_v33 }
 0x113   : > { %1541 = vst [vmem:[%s1810_s22 + $0xd8] sm:$0xff] %v1493_v38   ;;  %1524 = vst [vmem:[%s1810_s22 + $0x50] sm:$0xff] %v1408_v39  }
 0x114   : > { %1540 = vst [vmem:[%s1810_s22 + $0xd0] sm:$0xff] %v1488_v41  }
 0x115   : > { %v1610_v42 = vpop.f32.mrb[24].mxu0 }
 0x116   : > { %v1642_v43 = vpop.f32.mrb[24].mxu1  ;;  %v615_v44 = vpop.f32.mrb[25].mxu0 }
 0x117   : > { %v743_v45 = vpop.f32.mrb[25].mxu1  ;;  %v1611_v46 = vpop.f32.mrb[26].mxu0 }
 0x118   : > { %v1423_v47 = vpack.c.bf16 %v1611_v46, %v1610_v42  ;;  %v1643_v48 = vpop.f32.mrb[26].mxu1  ;;  %v618_v49 = vpop.f32.mrb[27].mxu0 }
 0x119   : > { %v1503_v50 = vpack.c.bf16 %v1643_v48, %v1642_v43  ;;  %v1418_v51 = vpack.c.bf16 %v618_v49, %v615_v44  ;;  %v746_v52 = vpop.f32.mrb[27].mxu1 }
 0x11a   : > { %1527 = vst [vmem:[%s1810_s22 + $0x68] sm:$0xff] %v1423_v47   ;;  %v1498_v53 = vpack.c.bf16 %v746_v52, %v743_v45 }
 0x11b   : > { %1543 = vst [vmem:[%s1810_s22 + $0xe8] sm:$0xff] %v1503_v50   ;;  %1526 = vst [vmem:[%s1810_s22 + $0x60] sm:$0xff] %v1418_v51  }
 0x11c   : > { %1542 = vst [vmem:[%s1810_s22 + $0xe0] sm:$0xff] %v1498_v53  }
 0x11d   : > { %v1614_v54 = vpop.f32.mrb[28].mxu0 }
 0x11e   : > { %v1646_v55 = vpop.f32.mrb[28].mxu1  ;;  %v631_v56 = vpop.f32.mrb[29].mxu0 }
 0x11f   : > { %v759_v57 = vpop.f32.mrb[29].mxu1  ;;  %v1615_v58 = vpop.f32.mrb[30].mxu0 }
 0x120   : > { %v1433_v59 = vpack.c.bf16 %v1615_v58, %v1614_v54  ;;  %v1647_v60 = vpop.f32.mrb[30].mxu1  ;;  %v634_v61 = vpop.f32.mrb[31].mxu0 }
 0x121   : > { %v1513_v62 = vpack.c.bf16 %v1647_v60, %v1646_v55  ;;  %v1428_v63 = vpack.c.bf16 %v634_v61, %v631_v56  ;;  %v762_v0 = vpop.f32.mrb[31].mxu1 }
 0x122   : > { %1529 = vst [vmem:[%s1810_s22 + $0x78] sm:$0xff] %v1433_v59   ;;  %v1508_v1 = vpack.c.bf16 %v762_v0, %v759_v57 }
 0x123   : > { %1545 = vst [vmem:[%s1810_s22 + $0xf8] sm:$0xff] %v1513_v62   ;;  %1528 = vst [vmem:[%s1810_s22 + $0x70] sm:$0xff] %v1428_v63  }
 0x124   : > { %1544 = vst [vmem:[%s1810_s22 + $0xf0] sm:$0xff] %v1508_v1  }
 0x125 PF: > { %s12_s9 = sadd.s32 1, %s1700_s9  }
 0x126   : > { %p9_p4 = scmp.ge.s32.totalorder %s12_s9, 6  }
 0x128   :  { %11 = sbr.rel (!%p9_p4) target bundleno = 1 (0x1), region = 58 }

</bundles_post_ra>
